<compile_context>
chip_gen: v7x
topology: tpu7x:2x2x1
jax: 0.10.0
libtpu: 0.0.40
codegen_flags: <defaults>
</compile_context>

<pallas_src>
import functools

import jax
import jax.numpy as jnp
from jax.experimental import pallas as pl
from jax.experimental.pallas import tpu as pltpu


# ----------------------------- Pallas kernels ------------------------------

def _conv3x3_band_kernel(x_ref, w_ref, b_ref, o_ref, *, wp, m_out):
    """Fused 3x3 conv + bias + ReLU on a flattened (rows, Cin) band (Cin >= 32).

    x_ref : (1, m_in, Cin)   bf16  padded + flattened activation (one image)
    w_ref : (9, Cin, TCO)    bf16  conv weights, tap-major (dy*3 + dx)
    b_ref : (1, TCO)         f32
    o_ref : (1, m_out, TCO)  bf16  rows = H*(W+2); garbage cols trimmed in glue
    """
    tco = o_ref.shape[-1]
    xb = x_ref[0]                                   # single bf16 load of the band
    acc = jnp.zeros((m_out, tco), dtype=jnp.float32)
    # 9-tap accumulation, fully unrolled (fixed trip count).  The tap shift is
    # applied to the f32 dot result (32-bit sublane-offset slice) rather than
    # to the packed bf16 operand, so there are no per-tap casts and no
    # unaligned packed-dtype slices.
    for dy in range(3):
        for dx in range(3):
            off = dy * wp + dx                      # static row offset
            y = jnp.dot(xb, w_ref[dy * 3 + dx],
                        preferred_element_type=jnp.float32)      # (m_in, TCO)
            acc = acc + y[off:off + m_out, :]
    acc = jnp.maximum(acc + b_ref[...], 0.0)        # bias + ReLU (f32)
    o_ref[0] = acc.astype(o_ref.dtype)


def _conv3x3_im2col_kernel(x_ref, w_ref, b_ref, o_ref):
    """3x3 conv + bias + ReLU as ONE K=9*Cin dot (tiny Cin, i.e. conv1).

    x_ref : (1, H*W, 9*Cin) bf16   im2col patches (one image)
    w_ref : (9*Cin, Cout)   bf16
    b_ref : (1, Cout)       f32
    o_ref : (1, H*W, Cout)  bf16
    """
    acc = jnp.dot(x_ref[0], w_ref[...], preferred_element_type=jnp.float32)
    o_ref[0] = jnp.maximum(acc + b_ref[...], 0.0).astype(o_ref.dtype)


def _head_kernel(x_ref, w_ref, b_ref, o_ref):
    """AdaptiveAvgPool2d((1,1)) + Linear, fused.  x: (N, H*W, C) bf16."""
    feat = jnp.mean(x_ref[...].astype(jnp.float32), axis=1)      # (N, C) f32
    out = jnp.dot(feat.astype(jnp.bfloat16), w_ref[...],         # bf16 MXU path
                  preferred_element_type=jnp.float32)
    o_ref[...] = (out + b_ref[...]).astype(o_ref.dtype)          # bias in f32


# ------------------------------- layer wrappers -----------------------------

def _conv_band(x, w, b, *, pool):
    """x: (N,H,W,Cin) bf16 NHWC, w: (3,3,Cin,Cout) HWIO, b: (Cout,)."""
    N, H, W, Cin = x.shape
    Cout = w.shape[-1]
    Hp, Wp = H + 2, W + 2
    m_out = H * Wp              # conv computed on (H, W+2): 2 garbage cols / row
    m_in = Hp * Wp + 2          # +2 rows so the last tap's window stays in bounds

    x = x.astype(jnp.bfloat16)
    xp = jnp.pad(x, ((0, 0), (1, 1), (1, 1), (0, 0)))             # bf16 pad
    xf = jnp.pad(xp.reshape(N, Hp * Wp, Cin), ((0, 0), (0, 2), (0, 0)))
    wf = w.astype(jnp.bfloat16).reshape(9, Cin, Cout)
    bf = b.astype(jnp.float32).reshape(1, Cout)

    tco = min(Cout, 256)        # 256-wide Cout tiles match the v6e/v7x MXU
    n_co = Cout // tco
    kernel = functools.partial(_conv3x3_band_kernel, wp=Wp, m_out=m_out)
    flops = 2 * N * m_in * Cout * 9 * Cin
    bytes_accessed = (2 * xf.size + 2 * wf.size + 4 * Cout
                      + 2 * N * m_out * Cout)

    out = pl.pallas_call(
        kernel,
        out_shape=jax.ShapeDtypeStruct((N, m_out, Cout), jnp.bfloat16),
        grid=(N, n_co),
        in_specs=[
            pl.BlockSpec((1, m_in, Cin), lambda n, co: (n, 0, 0)),
            pl.BlockSpec((9, Cin, tco), lambda n, co: (0, 0, co)),
            pl.BlockSpec((1, tco), lambda n, co: (0, co)),
        ],
        out_specs=pl.BlockSpec((1, m_out, tco), lambda n, co: (n, 0, co)),
        compiler_params=pltpu.CompilerParams(
            dimension_semantics=("parallel", "parallel")),
        cost_estimate=pl.CostEstimate(flops=int(flops), transcendentals=0,
                                      bytes_accessed=int(bytes_accessed)),
    )(xf, wf, bf)

    y = out.reshape(N, H, Wp, Cout)
    if pool:
        # Trim the 2 garbage columns + MaxPool2d(2,2) in ONE fused XLA
        # expression: one read of the band, one 1/4-size bf16 write.
        return jnp.max(y[:, :, :W, :].reshape(N, H // 2, 2, W // 2, 2, Cout),
                       axis=(2, 4))
    return y[:, :, :W, :]


def _conv_im2col(x, w, b, *, pool):
    """conv1 path (Cin < 32): one K=9*Cin dot per image instead of 9 K=Cin dots."""
    N, H, W, Cin = x.shape
    Cout = w.shape[-1]
    x = x.astype(jnp.bfloat16)
    xp = jnp.pad(x, ((0, 0), (1, 1), (1, 1), (0, 0)))
    patches = jnp.concatenate(
        [xp[:, dy:dy + H, dx:dx + W, :] for dy in range(3) for dx in range(3)],
        axis=-1).reshape(N, H * W, 9 * Cin)                       # bf16, tiny
    wf = w.astype(jnp.bfloat16).reshape(9 * Cin, Cout)
    bf = b.astype(jnp.float32).reshape(1, Cout)

    flops = 2 * N * H * W * 9 * Cin * Cout
    bytes_accessed = (2 * patches.size + 2 * wf.size + 4 * Cout
                      + 2 * N * H * W * Cout)

    out = pl.pallas_call(
        _conv3x3_im2col_kernel,
        out_shape=jax.ShapeDtypeStruct((N, H * W, Cout), jnp.bfloat16),
        grid=(N,),
        in_specs=[
            pl.BlockSpec((1, H * W, 9 * Cin), lambda n: (n, 0, 0)),
            pl.BlockSpec((9 * Cin, Cout), lambda n: (0, 0)),
            pl.BlockSpec((1, Cout), lambda n: (0, 0)),
        ],
        out_specs=pl.BlockSpec((1, H * W, Cout), lambda n: (n, 0, 0)),
        compiler_params=pltpu.CompilerParams(dimension_semantics=("parallel",)),
        cost_estimate=pl.CostEstimate(flops=int(flops), transcendentals=0,
                                      bytes_accessed=int(bytes_accessed)),
    )(patches, wf, bf)

    y = out.reshape(N, H, W, Cout)
    if pool:
        return jnp.max(y.reshape(N, H // 2, 2, W // 2, 2, Cout), axis=(2, 4))
    return y


def conv3x3_relu(x, w, b, *, pool=False):
    """3x3/pad=1 conv + ReLU (+ optional fused trim+MaxPool2d(2,2))."""
    if x.shape[-1] < 32:
        return _conv_im2col(x, w, b, pool=pool)
    return _conv_band(x, w, b, pool=pool)


def head(feat, w_fc, b_fc):
    """feat: (N,H,W,256) bf16 -> logits (N, num_classes) f32 (avgpool + FC fused)."""
    N, H, W, C = feat.shape
    ncls = w_fc.shape[-1]
    ncls_pad = 128                                  # lane-dense output columns
    x = feat.reshape(N, H * W, C)
    w_pad = jnp.zeros((C, ncls_pad), jnp.bfloat16).at[:, :ncls].set(
        w_fc.astype(jnp.bfloat16))
    b_pad = jnp.zeros((1, ncls_pad), jnp.float32).at[:, :ncls].set(
        b_fc.astype(jnp.float32))
    out = pl.pallas_call(
        _head_kernel,
        out_shape=jax.ShapeDtypeStruct((N, ncls_pad), jnp.float32),
        grid=(1,),
        in_specs=[
            pl.BlockSpec((N, H * W, C), lambda i: (0, 0, 0)),
            pl.BlockSpec((C, ncls_pad), lambda i: (0, 0)),
            pl.BlockSpec((1, ncls_pad), lambda i: (0, 0)),
        ],
        out_specs=pl.BlockSpec((N, ncls_pad), lambda i: (0, 0)),
        compiler_params=pltpu.CompilerParams(dimension_semantics=("arbitrary",)),
    )(x, w_pad, b_pad)
    return out[:, :ncls]


# ------------------------------- parameters ---------------------------------

def init_params(key, num_classes=5):
    # Synthetic deterministic init (shapes of vgg11.features[:10] + fc).
    # TODO(synk): pretrained VGG11_Weights are not loaded (no file I/O allowed).
    conv_shapes = [
        ("conv1", (3, 3, 3, 64)),
        ("conv2", (3, 3, 64, 128)),
        ("conv3", (3, 3, 128, 256)),
        ("conv4", (3, 3, 256, 256)),
    ]
    params = {}
    for name, shp in conv_shapes:
        key, kw, kb = jax.random.split(key, 3)
        fan_in = shp[0] * shp[1] * shp[2]
        params[name + "_w"] = (jax.random.normal(kw, shp, jnp.float32)
                               * (2.0 / fan_in) ** 0.5)
        params[name + "_b"] = jax.random.normal(kb, (shp[-1],), jnp.float32) * 0.01
    key, kw, kb = jax.random.split(key, 3)
    params["fc_w"] = (jax.random.normal(kw, (256, num_classes), jnp.float32)
                      * (1.0 / 256.0) ** 0.5)
    params["fc_b"] = jax.random.normal(kb, (num_classes,), jnp.float32) * 0.01
    return params


# --------------------------------- forward ----------------------------------

def vgg_forward(params, x_nchw, features=False):
    """Mirrors VGG.forward: vgg11.features[:10] -> avgpool -> flatten -> fc."""
    x = jnp.transpose(x_nchw, (0, 2, 3, 1)).astype(jnp.bfloat16)   # NCHW -> NHWC
    x = conv3x3_relu(x, params["conv1_w"], params["conv1_b"], pool=True)   # 3->64, /2
    x = conv3x3_relu(x, params["conv2_w"], params["conv2_b"], pool=True)   # 64->128, /2
    x = conv3x3_relu(x, params["conv3_w"], params["conv3_b"])              # 128->256
    x = conv3x3_relu(x, params["conv4_w"], params["conv4_b"])              # 256->256
    if features:
        feat = jnp.mean(x.astype(jnp.float32), axis=(1, 2))        # AdaptiveAvgPool2d((1,1))
        return feat.reshape(x.shape[0], 256, 1, 1)                 # NCHW-like (N,256,1,1)
    # Dropout(0.5) is identity in eval mode.
    return head(x, params["fc_w"], params["fc_b"])


if __name__ == "__main__":
    key = jax.random.PRNGKey(0)
    pkey, xkey = jax.random.split(key)
    params = init_params(pkey, num_classes=5)
    # PyTorch-layout input: (batch=2, channels=3, H=16, W=16)
    x = jax.random.normal(xkey, (2, 3, 16, 16), jnp.float32)
    fwd = jax.jit(vgg_forward, static_argnames=("features",))
    logits = fwd(params, x)
    jax.block_until_ready(logits)
    assert logits.shape == (2, 5), logits.shape
    feat = fwd(params, x, features=True)
    jax.block_until_ready(feat)
    assert feat.shape == (2, 256, 1, 1), feat.shape
    print("KERNEL_OK")
</pallas_src>

<mosaic_0001>
module attributes {stable_mosaic.version = 11 : i64} {
  func.func @_conv3x3_im2col_kernel(%arg0: i32, %arg1: memref<1x256x27xbf16, #tpu.memory_space<vmem>>, %arg2: memref<27x64xbf16, #tpu.memory_space<vmem>>, %arg3: memref<1x64xf32, #tpu.memory_space<vmem>>, %arg4: memref<1x256x64xbf16, #tpu.memory_space<vmem>>) attributes {dimension_semantics = [#tpu.dimension_semantics<parallel>], iteration_bounds = array<i64: 2>, scalar_prefetch = 0 : i64, scratch_operands = 0 : i64, tpu.core_type = #tpu.core_type<tc>, window_params = [{transform_indices = @transform_0, window_bounds = array<i64: 1, 256, 27>}, {pipeline_mode = #tpu.pipeline_mode<synchronous>, transform_indices = @transform_1, window_bounds = array<i64: 27, 64>}, {pipeline_mode = #tpu.pipeline_mode<synchronous>, transform_indices = @transform_2, window_bounds = array<i64: 1, 64>}, {transform_indices = @transform_3, window_bounds = array<i64: 1, 256, 64>}]} {
    %c0 = arith.constant 0 : index
    %c0_0 = arith.constant 0 : index
    %c0_1 = arith.constant 0 : index
    %0 = vector.load %arg1[%c0, %c0_0, %c0_1] : memref<1x256x27xbf16, #tpu.memory_space<vmem>>, vector<1x256x27xbf16>
    %1 = vector.shape_cast %0 : vector<1x256x27xbf16> to vector<256x27xbf16>
    %c0_2 = arith.constant 0 : index
    %c0_3 = arith.constant 0 : index
    %2 = vector.load %arg2[%c0_2, %c0_3] : memref<27x64xbf16, #tpu.memory_space<vmem>>, vector<27x64xbf16>
    %cst = arith.constant dense<0.000000e+00> : vector<256x64xf32>
    %3 = tpu.matmul %1, %2, %cst {dimension_numbers = #tpu.dot_dimension_numbers<[1], [0], [0], [1], [0, 0, 1, 1], [], []>} : vector<256x27xbf16>, vector<27x64xbf16>, vector<256x64xf32> -> vector<256x64xf32>
    %c0_4 = arith.constant 0 : index
    %c0_5 = arith.constant 0 : index
    %4 = vector.load %arg3[%c0_4, %c0_5] : memref<1x64xf32, #tpu.memory_space<vmem>>, vector<1x64xf32>
    %5 = vector.broadcast %4 : vector<1x64xf32> to vector<256x64xf32>
    %6 = arith.addf %3, %5 : vector<256x64xf32>
    %cst_6 = arith.constant 0.000000e+00 : f32
    %7 = vector.broadcast %cst_6 : f32 to vector<256x64xf32>
    %8 = arith.maximumf %6, %7 : vector<256x64xf32>
    %9 = arith.truncf %8 : vector<256x64xf32> to vector<256x64xbf16>
    %c0_7 = arith.constant 0 : index
    %c0_8 = arith.constant 0 : index
    %c0_9 = arith.constant 0 : index
    %10 = vector.load %arg4[%c0_7, %c0_8, %c0_9] : memref<1x256x64xbf16, #tpu.memory_space<vmem>>, vector<1x256x64xbf16>
    %11 = vector.shape_cast %10 : vector<1x256x64xbf16> to vector<256x64xbf16>
    %12 = vector.shape_cast %9 : vector<256x64xbf16> to vector<1x256x64xbf16>
    tpu.vector_store %arg4[%c0_7, %c0_8, %c0_9], %12 {strides = array<i32>} : memref<1x256x64xbf16, #tpu.memory_space<vmem>>, vector<1x256x64xbf16>,
    return
  }
  func.func @transform_0(%arg0: i32) -> (i32, i32, i32) {
    %c0_i32 = arith.constant 0 : i32
    %c0_i32_0 = arith.constant 0 : i32
    %c0_i32_1 = arith.constant 0 : i32
    return %arg0, %c0_i32, %c0_i32_0 : i32, i32, i32
  }
  func.func @transform_1(%arg0: i32) -> (i32, i32) {
    %c0_i32 = arith.constant 0 : i32
    %c0_i32_0 = arith.constant 0 : i32
    %c0_i32_1 = arith.constant 0 : i32
    return %c0_i32, %c0_i32_0 : i32, i32
  }
  func.func @transform_2(%arg0: i32) -> (i32, i32) {
    %c0_i32 = arith.constant 0 : i32
    %c0_i32_0 = arith.constant 0 : i32
    %c0_i32_1 = arith.constant 0 : i32
    return %c0_i32, %c0_i32_0 : i32, i32
  }
  func.func @transform_3(%arg0: i32) -> (i32, i32, i32) {
    %c0_i32 = arith.constant 0 : i32
    %c0_i32_0 = arith.constant 0 : i32
    %c0_i32_1 = arith.constant 0 : i32
    return %arg0, %c0_i32, %c0_i32_0 : i32, i32, i32
  }
}

module attributes {stable_mosaic.version = 11 : i64} {
  func.func @_conv3x3_band_kernel(%arg0: i32, %arg1: i32, %arg2: memref<1x102x64xbf16, #tpu.memory_space<vmem>>, %arg3: memref<9x64x128xbf16, #tpu.memory_space<vmem>>, %arg4: memref<1x128xf32, #tpu.memory_space<vmem>>, %arg5: memref<1x80x128xbf16, #tpu.memory_space<vmem>>) attributes {dimension_semantics = [#tpu.dimension_semantics<parallel>, #tpu.dimension_semantics<parallel>], iteration_bounds = array<i64: 2, 1>, scalar_prefetch = 0 : i64, scratch_operands = 0 : i64, tpu.core_type = #tpu.core_type<tc>, window_params = [{transform_indices = @transform_0, window_bounds = array<i64: 1, 102, 64>}, {transform_indices = @transform_1, window_bounds = array<i64: 9, 64, 128>}, {transform_indices = @transform_2, window_bounds = array<i64: 1, 128>}, {transform_indices = @transform_3, window_bounds = array<i64: 1, 80, 128>}]} {
    %c0 = arith.constant 0 : index
    %c0_0 = arith.constant 0 : index
    %c0_1 = arith.constant 0 : index
    %0 = vector.load %arg2[%c0, %c0_0, %c0_1] : memref<1x102x64xbf16, #tpu.memory_space<vmem>>, vector<1x102x64xbf16>
    %1 = vector.shape_cast %0 : vector<1x102x64xbf16> to vector<102x64xbf16>
    %cst = arith.constant 0.000000e+00 : f32
    %2 = vector.broadcast %cst : f32 to vector<80x128xf32>
    %c0_2 = arith.constant 0 : index
    %c0_3 = arith.constant 0 : index
    %c0_4 = arith.constant 0 : index
    %3 = vector.load %arg3[%c0_2, %c0_3, %c0_4] : memref<9x64x128xbf16, #tpu.memory_space<vmem>>, vector<1x64x128xbf16>
    %4 = vector.shape_cast %3 : vector<1x64x128xbf16> to vector<64x128xbf16>
    %cst_5 = arith.constant dense<0.000000e+00> : vector<102x128xf32>
    %5 = tpu.matmul %1, %4, %cst_5 {dimension_numbers = #tpu.dot_dimension_numbers<[1], [0], [0], [1], [0, 0, 1, 1], [], []>} : vector<102x64xbf16>, vector<64x128xbf16>, vector<102x128xf32> -> vector<102x128xf32>
    %6 = vector.extract_strided_slice %5 {offsets = [0, 0], sizes = [80, 128], strides = [1, 1]} : vector<102x128xf32> to vector<80x128xf32>
    %7 = arith.addf %2, %6 : vector<80x128xf32>
    %c1 = arith.constant 1 : index
    %c0_6 = arith.constant 0 : index
    %c0_7 = arith.constant 0 : index
    %8 = vector.load %arg3[%c1, %c0_6, %c0_7] : memref<9x64x128xbf16, #tpu.memory_space<vmem>>, vector<1x64x128xbf16>
    %9 = vector.shape_cast %8 : vector<1x64x128xbf16> to vector<64x128xbf16>
    %cst_8 = arith.constant dense<0.000000e+00> : vector<102x128xf32>
    %10 = tpu.matmul %1, %9, %cst_8 {dimension_numbers = #tpu.dot_dimension_numbers<[1], [0], [0], [1], [0, 0, 1, 1], [], []>} : vector<102x64xbf16>, vector<64x128xbf16>, vector<102x128xf32> -> vector<102x128xf32>
    %11 = vector.extract_strided_slice %10 {offsets = [1, 0], sizes = [80, 128], strides = [1, 1]} : vector<102x128xf32> to vector<80x128xf32>
    %12 = arith.addf %7, %11 : vector<80x128xf32>
    %c2 = arith.constant 2 : index
    %c0_9 = arith.constant 0 : index
    %c0_10 = arith.constant 0 : index
    %13 = vector.load %arg3[%c2, %c0_9, %c0_10] : memref<9x64x128xbf16, #tpu.memory_space<vmem>>, vector<1x64x128xbf16>
    %14 = vector.shape_cast %13 : vector<1x64x128xbf16> to vector<64x128xbf16>
    %cst_11 = arith.constant dense<0.000000e+00> : vector<102x128xf32>
    %15 = tpu.matmul %1, %14, %cst_11 {dimension_numbers = #tpu.dot_dimension_numbers<[1], [0], [0], [1], [0, 0, 1, 1], [], []>} : vector<102x64xbf16>, vector<64x128xbf16>, vector<102x128xf32> -> vector<102x128xf32>
    %16 = vector.extract_strided_slice %15 {offsets = [2, 0], sizes = [80, 128], strides = [1, 1]} : vector<102x128xf32> to vector<80x128xf32>
    %17 = arith.addf %12, %16 : vector<80x128xf32>
    %c3 = arith.constant 3 : index
    %c0_12 = arith.constant 0 : index
    %c0_13 = arith.constant 0 : index
    %18 = vector.load %arg3[%c3, %c0_12, %c0_13] : memref<9x64x128xbf16, #tpu.memory_space<vmem>>, vector<1x64x128xbf16>
    %19 = vector.shape_cast %18 : vector<1x64x128xbf16> to vector<64x128xbf16>
    %cst_14 = arith.constant dense<0.000000e+00> : vector<102x128xf32>
    %20 = tpu.matmul %1, %19, %cst_14 {dimension_numbers = #tpu.dot_dimension_numbers<[1], [0], [0], [1], [0, 0, 1, 1], [], []>} : vector<102x64xbf16>, vector<64x128xbf16>, vector<102x128xf32> -> vector<102x128xf32>
    %21 = vector.extract_strided_slice %20 {offsets = [10, 0], sizes = [80, 128], strides = [1, 1]} : vector<102x128xf32> to vector<80x128xf32>
    %22 = arith.addf %17, %21 : vector<80x128xf32>
    %c4 = arith.constant 4 : index
    %c0_15 = arith.constant 0 : index
    %c0_16 = arith.constant 0 : index
    %23 = vector.load %arg3[%c4, %c0_15, %c0_16] : memref<9x64x128xbf16, #tpu.memory_space<vmem>>, vector<1x64x128xbf16>
    %24 = vector.shape_cast %23 : vector<1x64x128xbf16> to vector<64x128xbf16>
    %cst_17 = arith.constant dense<0.000000e+00> : vector<102x128xf32>
    %25 = tpu.matmul %1, %24, %cst_17 {dimension_numbers = #tpu.dot_dimension_numbers<[1], [0], [0], [1], [0, 0, 1, 1], [], []>} : vector<102x64xbf16>, vector<64x128xbf16>, vector<102x128xf32> -> vector<102x128xf32>
    %26 = vector.extract_strided_slice %25 {offsets = [11, 0], sizes = [80, 128], strides = [1, 1]} : vector<102x128xf32> to vector<80x128xf32>
    %27 = arith.addf %22, %26 : vector<80x128xf32>
    %c5 = arith.constant 5 : index
    %c0_18 = arith.constant 0 : index
    %c0_19 = arith.constant 0 : index
    %28 = vector.load %arg3[%c5, %c0_18, %c0_19] : memref<9x64x128xbf16, #tpu.memory_space<vmem>>, vector<1x64x128xbf16>
    %29 = vector.shape_cast %28 : vector<1x64x128xbf16> to vector<64x128xbf16>
    %cst_20 = arith.constant dense<0.000000e+00> : vector<102x128xf32>
    %30 = tpu.matmul %1, %29, %cst_20 {dimension_numbers = #tpu.dot_dimension_numbers<[1], [0], [0], [1], [0, 0, 1, 1], [], []>} : vector<102x64xbf16>, vector<64x128xbf16>, vector<102x128xf32> -> vector<102x128xf32>
    %31 = vector.extract_strided_slice %30 {offsets = [12, 0], sizes = [80, 128], strides = [1, 1]} : vector<102x128xf32> to vector<80x128xf32>
    %32 = arith.addf %27, %31 : vector<80x128xf32>
    %c6 = arith.constant 6 : index
    %c0_21 = arith.constant 0 : index
    %c0_22 = arith.constant 0 : index
    %33 = vector.load %arg3[%c6, %c0_21, %c0_22] : memref<9x64x128xbf16, #tpu.memory_space<vmem>>, vector<1x64x128xbf16>
    %34 = vector.shape_cast %33 : vector<1x64x128xbf16> to vector<64x128xbf16>
    %cst_23 = arith.constant dense<0.000000e+00> : vector<102x128xf32>
    %35 = tpu.matmul %1, %34, %cst_23 {dimension_numbers = #tpu.dot_dimension_numbers<[1], [0], [0], [1], [0, 0, 1, 1], [], []>} : vector<102x64xbf16>, vector<64x128xbf16>, vector<102x128xf32> -> vector<102x128xf32>
    %36 = vector.extract_strided_slice %35 {offsets = [20, 0], sizes = [80, 128], strides = [1, 1]} : vector<102x128xf32> to vector<80x128xf32>
    %37 = arith.addf %32, %36 : vector<80x128xf32>
    %c7 = arith.constant 7 : index
    %c0_24 = arith.constant 0 : index
    %c0_25 = arith.constant 0 : index
    %38 = vector.load %arg3[%c7, %c0_24, %c0_25] : memref<9x64x128xbf16, #tpu.memory_space<vmem>>, vector<1x64x128xbf16>
    %39 = vector.shape_cast %38 : vector<1x64x128xbf16> to vector<64x128xbf16>
    %cst_26 = arith.constant dense<0.000000e+00> : vector<102x128xf32>
    %40 = tpu.matmul %1, %39, %cst_26 {dimension_numbers = #tpu.dot_dimension_numbers<[1], [0], [0], [1], [0, 0, 1, 1], [], []>} : vector<102x64xbf16>, vector<64x128xbf16>, vector<102x128xf32> -> vector<102x128xf32>
    %41 = vector.extract_strided_slice %40 {offsets = [21, 0], sizes = [80, 128], strides = [1, 1]} : vector<102x128xf32> to vector<80x128xf32>
    %42 = arith.addf %37, %41 : vector<80x128xf32>
    %c8 = arith.constant 8 : index
    %c0_27 = arith.constant 0 : index
    %c0_28 = arith.constant 0 : index
    %43 = vector.load %arg3[%c8, %c0_27, %c0_28] : memref<9x64x128xbf16, #tpu.memory_space<vmem>>, vector<1x64x128xbf16>
    %44 = vector.shape_cast %43 : vector<1x64x128xbf16> to vector<64x128xbf16>
    %cst_29 = arith.constant dense<0.000000e+00> : vector<102x128xf32>
    %45 = tpu.matmul %1, %44, %cst_29 {dimension_numbers = #tpu.dot_dimension_numbers<[1], [0], [0], [1], [0, 0, 1, 1], [], []>} : vector<102x64xbf16>, vector<64x128xbf16>, vector<102x128xf32> -> vector<102x128xf32>
    %46 = vector.extract_strided_slice %45 {offsets = [22, 0], sizes = [80, 128], strides = [1, 1]} : vector<102x128xf32> to vector<80x128xf32>
    %47 = arith.addf %42, %46 : vector<80x128xf32>
    %c0_30 = arith.constant 0 : index
    %c0_31 = arith.constant 0 : index
    %48 = vector.load %arg4[%c0_30, %c0_31] : memref<1x128xf32, #tpu.memory_space<vmem>>, vector<1x128xf32>
    %49 = vector.broadcast %48 : vector<1x128xf32> to vector<80x128xf32>
    %50 = arith.addf %47, %49 : vector<80x128xf32>
    %cst_32 = arith.constant 0.000000e+00 : f32
    %51 = vector.broadcast %cst_32 : f32 to vector<80x128xf32>
    %52 = arith.maximumf %50, %51 : vector<80x128xf32>
    %53 = arith.truncf %52 : vector<80x128xf32> to vector<80x128xbf16>
    %c0_33 = arith.constant 0 : index
    %c0_34 = arith.constant 0 : index
    %c0_35 = arith.constant 0 : index
    %54 = vector.load %arg5[%c0_33, %c0_34, %c0_35] : memref<1x80x128xbf16, #tpu.memory_space<vmem>>, vector<1x80x128xbf16>
    %55 = vector.shape_cast %54 : vector<1x80x128xbf16> to vector<80x128xbf16>
    %56 = vector.shape_cast %53 : vector<80x128xbf16> to vector<1x80x128xbf16>
    tpu.vector_store %arg5[%c0_33, %c0_34, %c0_35], %56 {strides = array<i32>} : memref<1x80x128xbf16, #tpu.memory_space<vmem>>, vector<1x80x128xbf16>,
    return
  }
  func.func @transform_0(%arg0: i32, %arg1: i32) -> (i32, i32, i32) {
    %c0_i32 = arith.constant 0 : i32
    %c0_i32_0 = arith.constant 0 : i32
    %c0_i32_1 = arith.constant 0 : i32
    return %arg0, %c0_i32, %c0_i32_0 : i32, i32, i32
  }
  func.func @transform_1(%arg0: i32, %arg1: i32) -> (i32, i32, i32) {
    %c0_i32 = arith.constant 0 : i32
    %c0_i32_0 = arith.constant 0 : i32
    %c0_i32_1 = arith.constant 0 : i32
    return %c0_i32, %c0_i32_0, %arg1 : i32, i32, i32
  }
  func.func @transform_2(%arg0: i32, %arg1: i32) -> (i32, i32) {
    %c0_i32 = arith.constant 0 : i32
    %c0_i32_0 = arith.constant 0 : i32
    return %c0_i32, %arg1 : i32, i32
  }
  func.func @transform_3(%arg0: i32, %arg1: i32) -> (i32, i32, i32) {
    %c0_i32 = arith.constant 0 : i32
    %c0_i32_0 = arith.constant 0 : i32
    return %arg0, %c0_i32, %arg1 : i32, i32, i32
  }
}

module attributes {stable_mosaic.version = 11 : i64} {
  func.func @_conv3x3_band_kernel(%arg0: i32, %arg1: i32, %arg2: memref<1x38x128xbf16, #tpu.memory_space<vmem>>, %arg3: memref<9x128x256xbf16, #tpu.memory_space<vmem>>, %arg4: memref<1x256xf32, #tpu.memory_space<vmem>>, %arg5: memref<1x24x256xbf16, #tpu.memory_space<vmem>>) attributes {dimension_semantics = [#tpu.dimension_semantics<parallel>, #tpu.dimension_semantics<parallel>], iteration_bounds = array<i64: 2, 1>, scalar_prefetch = 0 : i64, scratch_operands = 0 : i64, tpu.core_type = #tpu.core_type<tc>, window_params = [{transform_indices = @transform_0, window_bounds = array<i64: 1, 38, 128>}, {transform_indices = @transform_1, window_bounds = array<i64: 9, 128, 256>}, {transform_indices = @transform_2, window_bounds = array<i64: 1, 256>}, {transform_indices = @transform_3, window_bounds = array<i64: 1, 24, 256>}]} {
    %c0 = arith.constant 0 : index
    %c0_0 = arith.constant 0 : index
    %c0_1 = arith.constant 0 : index
    %0 = vector.load %arg2[%c0, %c0_0, %c0_1] : memref<1x38x128xbf16, #tpu.memory_space<vmem>>, vector<1x38x128xbf16>
    %1 = vector.shape_cast %0 : vector<1x38x128xbf16> to vector<38x128xbf16>
    %cst = arith.constant 0.000000e+00 : f32
    %2 = vector.broadcast %cst : f32 to vector<24x256xf32>
    %c0_2 = arith.constant 0 : index
    %c0_3 = arith.constant 0 : index
    %c0_4 = arith.constant 0 : index
    %3 = vector.load %arg3[%c0_2, %c0_3, %c0_4] : memref<9x128x256xbf16, #tpu.memory_space<vmem>>, vector<1x128x256xbf16>
    %4 = vector.shape_cast %3 : vector<1x128x256xbf16> to vector<128x256xbf16>
    %cst_5 = arith.constant dense<0.000000e+00> : vector<38x256xf32>
    %5 = tpu.matmul %1, %4, %cst_5 {dimension_numbers = #tpu.dot_dimension_numbers<[1], [0], [0], [1], [0, 0, 1, 1], [], []>} : vector<38x128xbf16>, vector<128x256xbf16>, vector<38x256xf32> -> vector<38x256xf32>
    %6 = vector.extract_strided_slice %5 {offsets = [0, 0], sizes = [24, 256], strides = [1, 1]} : vector<38x256xf32> to vector<24x256xf32>
    %7 = arith.addf %2, %6 : vector<24x256xf32>
    %c1 = arith.constant 1 : index
    %c0_6 = arith.constant 0 : index
    %c0_7 = arith.constant 0 : index
    %8 = vector.load %arg3[%c1, %c0_6, %c0_7] : memref<9x128x256xbf16, #tpu.memory_space<vmem>>, vector<1x128x256xbf16>
    %9 = vector.shape_cast %8 : vector<1x128x256xbf16> to vector<128x256xbf16>
    %cst_8 = arith.constant dense<0.000000e+00> : vector<38x256xf32>
    %10 = tpu.matmul %1, %9, %cst_8 {dimension_numbers = #tpu.dot_dimension_numbers<[1], [0], [0], [1], [0, 0, 1, 1], [], []>} : vector<38x128xbf16>, vector<128x256xbf16>, vector<38x256xf32> -> vector<38x256xf32>
    %11 = vector.extract_strided_slice %10 {offsets = [1, 0], sizes = [24, 256], strides = [1, 1]} : vector<38x256xf32> to vector<24x256xf32>
    %12 = arith.addf %7, %11 : vector<24x256xf32>
    %c2 = arith.constant 2 : index
    %c0_9 = arith.constant 0 : index
    %c0_10 = arith.constant 0 : index
    %13 = vector.load %arg3[%c2, %c0_9, %c0_10] : memref<9x128x256xbf16, #tpu.memory_space<vmem>>, vector<1x128x256xbf16>
    %14 = vector.shape_cast %13 : vector<1x128x256xbf16> to vector<128x256xbf16>
    %cst_11 = arith.constant dense<0.000000e+00> : vector<38x256xf32>
    %15 = tpu.matmul %1, %14, %cst_11 {dimension_numbers = #tpu.dot_dimension_numbers<[1], [0], [0], [1], [0, 0, 1, 1], [], []>} : vector<38x128xbf16>, vector<128x256xbf16>, vector<38x256xf32> -> vector<38x256xf32>
    %16 = vector.extract_strided_slice %15 {offsets = [2, 0], sizes = [24, 256], strides = [1, 1]} : vector<38x256xf32> to vector<24x256xf32>
    %17 = arith.addf %12, %16 : vector<24x256xf32>
    %c3 = arith.constant 3 : index
    %c0_12 = arith.constant 0 : index
    %c0_13 = arith.constant 0 : index
    %18 = vector.load %arg3[%c3, %c0_12, %c0_13] : memref<9x128x256xbf16, #tpu.memory_space<vmem>>, vector<1x128x256xbf16>
    %19 = vector.shape_cast %18 : vector<1x128x256xbf16> to vector<128x256xbf16>
    %cst_14 = arith.constant dense<0.000000e+00> : vector<38x256xf32>
    %20 = tpu.matmul %1, %19, %cst_14 {dimension_numbers = #tpu.dot_dimension_numbers<[1], [0], [0], [1], [0, 0, 1, 1], [], []>} : vector<38x128xbf16>, vector<128x256xbf16>, vector<38x256xf32> -> vector<38x256xf32>
    %21 = vector.extract_strided_slice %20 {offsets = [6, 0], sizes = [24, 256], strides = [1, 1]} : vector<38x256xf32> to vector<24x256xf32>
    %22 = arith.addf %17, %21 : vector<24x256xf32>
    %c4 = arith.constant 4 : index
    %c0_15 = arith.constant 0 : index
    %c0_16 = arith.constant 0 : index
    %23 = vector.load %arg3[%c4, %c0_15, %c0_16] : memref<9x128x256xbf16, #tpu.memory_space<vmem>>, vector<1x128x256xbf16>
    %24 = vector.shape_cast %23 : vector<1x128x256xbf16> to vector<128x256xbf16>
    %cst_17 = arith.constant dense<0.000000e+00> : vector<38x256xf32>
    %25 = tpu.matmul %1, %24, %cst_17 {dimension_numbers = #tpu.dot_dimension_numbers<[1], [0], [0], [1], [0, 0, 1, 1], [], []>} : vector<38x128xbf16>, vector<128x256xbf16>, vector<38x256xf32> -> vector<38x256xf32>
    %26 = vector.extract_strided_slice %25 {offsets = [7, 0], sizes = [24, 256], strides = [1, 1]} : vector<38x256xf32> to vector<24x256xf32>
    %27 = arith.addf %22, %26 : vector<24x256xf32>
    %c5 = arith.constant 5 : index
    %c0_18 = arith.constant 0 : index
    %c0_19 = arith.constant 0 : index
    %28 = vector.load %arg3[%c5, %c0_18, %c0_19] : memref<9x128x256xbf16, #tpu.memory_space<vmem>>, vector<1x128x256xbf16>
    %29 = vector.shape_cast %28 : vector<1x128x256xbf16> to vector<128x256xbf16>
    %cst_20 = arith.constant dense<0.000000e+00> : vector<38x256xf32>
    %30 = tpu.matmul %1, %29, %cst_20 {dimension_numbers = #tpu.dot_dimension_numbers<[1], [0], [0], [1], [0, 0, 1, 1], [], []>} : vector<38x128xbf16>, vector<128x256xbf16>, vector<38x256xf32> -> vector<38x256xf32>
    %31 = vector.extract_strided_slice %30 {offsets = [8, 0], sizes = [24, 256], strides = [1, 1]} : vector<38x256xf32> to vector<24x256xf32>
    %32 = arith.addf %27, %31 : vector<24x256xf32>
    %c6 = arith.constant 6 : index
    %c0_21 = arith.constant 0 : index
    %c0_22 = arith.constant 0 : index
    %33 = vector.load %arg3[%c6, %c0_21, %c0_22] : memref<9x128x256xbf16, #tpu.memory_space<vmem>>, vector<1x128x256xbf16>
    %34 = vector.shape_cast %33 : vector<1x128x256xbf16> to vector<128x256xbf16>
    %cst_23 = arith.constant dense<0.000000e+00> : vector<38x256xf32>
    %35 = tpu.matmul %1, %34, %cst_23 {dimension_numbers = #tpu.dot_dimension_numbers<[1], [0], [0], [1], [0, 0, 1, 1], [], []>} : vector<38x128xbf16>, vector<128x256xbf16>, vector<38x256xf32> -> vector<38x256xf32>
    %36 = vector.extract_strided_slice %35 {offsets = [12, 0], sizes = [24, 256], strides = [1, 1]} : vector<38x256xf32> to vector<24x256xf32>
    %37 = arith.addf %32, %36 : vector<24x256xf32>
    %c7 = arith.constant 7 : index
    %c0_24 = arith.constant 0 : index
    %c0_25 = arith.constant 0 : index
    %38 = vector.load %arg3[%c7, %c0_24, %c0_25] : memref<9x128x256xbf16, #tpu.memory_space<vmem>>, vector<1x128x256xbf16>
    %39 = vector.shape_cast %38 : vector<1x128x256xbf16> to vector<128x256xbf16>
    %cst_26 = arith.constant dense<0.000000e+00> : vector<38x256xf32>
    %40 = tpu.matmul %1, %39, %cst_26 {dimension_numbers = #tpu.dot_dimension_numbers<[1], [0], [0], [1], [0, 0, 1, 1], [], []>} : vector<38x128xbf16>, vector<128x256xbf16>, vector<38x256xf32> -> vector<38x256xf32>
    %41 = vector.extract_strided_slice %40 {offsets = [13, 0], sizes = [24, 256], strides = [1, 1]} : vector<38x256xf32> to vector<24x256xf32>
    %42 = arith.addf %37, %41 : vector<24x256xf32>
    %c8 = arith.constant 8 : index
    %c0_27 = arith.constant 0 : index
    %c0_28 = arith.constant 0 : index
    %43 = vector.load %arg3[%c8, %c0_27, %c0_28] : memref<9x128x256xbf16, #tpu.memory_space<vmem>>, vector<1x128x256xbf16>
    %44 = vector.shape_cast %43 : vector<1x128x256xbf16> to vector<128x256xbf16>
    %cst_29 = arith.constant dense<0.000000e+00> : vector<38x256xf32>
    %45 = tpu.matmul %1, %44, %cst_29 {dimension_numbers = #tpu.dot_dimension_numbers<[1], [0], [0], [1], [0, 0, 1, 1], [], []>} : vector<38x128xbf16>, vector<128x256xbf16>, vector<38x256xf32> -> vector<38x256xf32>
    %46 = vector.extract_strided_slice %45 {offsets = [14, 0], sizes = [24, 256], strides = [1, 1]} : vector<38x256xf32> to vector<24x256xf32>
    %47 = arith.addf %42, %46 : vector<24x256xf32>
    %c0_30 = arith.constant 0 : index
    %c0_31 = arith.constant 0 : index
    %48 = vector.load %arg4[%c0_30, %c0_31] : memref<1x256xf32, #tpu.memory_space<vmem>>, vector<1x256xf32>
    %49 = vector.broadcast %48 : vector<1x256xf32> to vector<24x256xf32>
    %50 = arith.addf %47, %49 : vector<24x256xf32>
    %cst_32 = arith.constant 0.000000e+00 : f32
    %51 = vector.broadcast %cst_32 : f32 to vector<24x256xf32>
    %52 = arith.maximumf %50, %51 : vector<24x256xf32>
    %53 = arith.truncf %52 : vector<24x256xf32> to vector<24x256xbf16>
    %c0_33 = arith.constant 0 : index
    %c0_34 = arith.constant 0 : index
    %c0_35 = arith.constant 0 : index
    %54 = vector.load %arg5[%c0_33, %c0_34, %c0_35] : memref<1x24x256xbf16, #tpu.memory_space<vmem>>, vector<1x24x256xbf16>
    %55 = vector.shape_cast %54 : vector<1x24x256xbf16> to vector<24x256xbf16>
    %56 = vector.shape_cast %53 : vector<24x256xbf16> to vector<1x24x256xbf16>
    tpu.vector_store %arg5[%c0_33, %c0_34, %c0_35], %56 {strides = array<i32>} : memref<1x24x256xbf16, #tpu.memory_space<vmem>>, vector<1x24x256xbf16>,
    return
  }
  func.func @transform_0(%arg0: i32, %arg1: i32) -> (i32, i32, i32) {
    %c0_i32 = arith.constant 0 : i32
    %c0_i32_0 = arith.constant 0 : i32
    %c0_i32_1 = arith.constant 0 : i32
    return %arg0, %c0_i32, %c0_i32_0 : i32, i32, i32
  }
  func.func @transform_1(%arg0: i32, %arg1: i32) -> (i32, i32, i32) {
    %c0_i32 = arith.constant 0 : i32
    %c0_i32_0 = arith.constant 0 : i32
    %c0_i32_1 = arith.constant 0 : i32
    return %c0_i32, %c0_i32_0, %arg1 : i32, i32, i32
  }
  func.func @transform_2(%arg0: i32, %arg1: i32) -> (i32, i32) {
    %c0_i32 = arith.constant 0 : i32
    %c0_i32_0 = arith.constant 0 : i32
    return %c0_i32, %arg1 : i32, i32
  }
  func.func @transform_3(%arg0: i32, %arg1: i32) -> (i32, i32, i32) {
    %c0_i32 = arith.constant 0 : i32
    %c0_i32_0 = arith.constant 0 : i32
    return %arg0, %c0_i32, %arg1 : i32, i32, i32
  }
}

module attributes {stable_mosaic.version = 11 : i64} {
  func.func @_conv3x3_band_kernel(%arg0: i32, %arg1: i32, %arg2: memref<1x38x256xbf16, #tpu.memory_space<vmem>>, %arg3: memref<9x256x256xbf16, #tpu.memory_space<vmem>>, %arg4: memref<1x256xf32, #tpu.memory_space<vmem>>, %arg5: memref<1x24x256xbf16, #tpu.memory_space<vmem>>) attributes {dimension_semantics = [#tpu.dimension_semantics<parallel>, #tpu.dimension_semantics<parallel>], iteration_bounds = array<i64: 2, 1>, scalar_prefetch = 0 : i64, scratch_operands = 0 : i64, tpu.core_type = #tpu.core_type<tc>, window_params = [{transform_indices = @transform_0, window_bounds = array<i64: 1, 38, 256>}, {transform_indices = @transform_1, window_bounds = array<i64: 9, 256, 256>}, {transform_indices = @transform_2, window_bounds = array<i64: 1, 256>}, {transform_indices = @transform_3, window_bounds = array<i64: 1, 24, 256>}]} {
    %c0 = arith.constant 0 : index
    %c0_0 = arith.constant 0 : index
    %c0_1 = arith.constant 0 : index
    %0 = vector.load %arg2[%c0, %c0_0, %c0_1] : memref<1x38x256xbf16, #tpu.memory_space<vmem>>, vector<1x38x256xbf16>
    %1 = vector.shape_cast %0 : vector<1x38x256xbf16> to vector<38x256xbf16>
    %cst = arith.constant 0.000000e+00 : f32
    %2 = vector.broadcast %cst : f32 to vector<24x256xf32>
    %c0_2 = arith.constant 0 : index
    %c0_3 = arith.constant 0 : index
    %c0_4 = arith.constant 0 : index
    %3 = vector.load %arg3[%c0_2, %c0_3, %c0_4] : memref<9x256x256xbf16, #tpu.memory_space<vmem>>, vector<1x256x256xbf16>
    %4 = vector.shape_cast %3 : vector<1x256x256xbf16> to vector<256x256xbf16>
    %cst_5 = arith.constant dense<0.000000e+00> : vector<38x256xf32>
    %5 = tpu.matmul %1, %4, %cst_5 {dimension_numbers = #tpu.dot_dimension_numbers<[1], [0], [0], [1], [0, 0, 1, 1], [], []>} : vector<38x256xbf16>, vector<256x256xbf16>, vector<38x256xf32> -> vector<38x256xf32>
    %6 = vector.extract_strided_slice %5 {offsets = [0, 0], sizes = [24, 256], strides = [1, 1]} : vector<38x256xf32> to vector<24x256xf32>
    %7 = arith.addf %2, %6 : vector<24x256xf32>
    %c1 = arith.constant 1 : index
    %c0_6 = arith.constant 0 : index
    %c0_7 = arith.constant 0 : index
    %8 = vector.load %arg3[%c1, %c0_6, %c0_7] : memref<9x256x256xbf16, #tpu.memory_space<vmem>>, vector<1x256x256xbf16>
    %9 = vector.shape_cast %8 : vector<1x256x256xbf16> to vector<256x256xbf16>
    %cst_8 = arith.constant dense<0.000000e+00> : vector<38x256xf32>
    %10 = tpu.matmul %1, %9, %cst_8 {dimension_numbers = #tpu.dot_dimension_numbers<[1], [0], [0], [1], [0, 0, 1, 1], [], []>} : vector<38x256xbf16>, vector<256x256xbf16>, vector<38x256xf32> -> vector<38x256xf32>
    %11 = vector.extract_strided_slice %10 {offsets = [1, 0], sizes = [24, 256], strides = [1, 1]} : vector<38x256xf32> to vector<24x256xf32>
    %12 = arith.addf %7, %11 : vector<24x256xf32>
    %c2 = arith.constant 2 : index
    %c0_9 = arith.constant 0 : index
    %c0_10 = arith.constant 0 : index
    %13 = vector.load %arg3[%c2, %c0_9, %c0_10] : memref<9x256x256xbf16, #tpu.memory_space<vmem>>, vector<1x256x256xbf16>
    %14 = vector.shape_cast %13 : vector<1x256x256xbf16> to vector<256x256xbf16>
    %cst_11 = arith.constant dense<0.000000e+00> : vector<38x256xf32>
    %15 = tpu.matmul %1, %14, %cst_11 {dimension_numbers = #tpu.dot_dimension_numbers<[1], [0], [0], [1], [0, 0, 1, 1], [], []>} : vector<38x256xbf16>, vector<256x256xbf16>, vector<38x256xf32> -> vector<38x256xf32>
    %16 = vector.extract_strided_slice %15 {offsets = [2, 0], sizes = [24, 256], strides = [1, 1]} : vector<38x256xf32> to vector<24x256xf32>
    %17 = arith.addf %12, %16 : vector<24x256xf32>
    %c3 = arith.constant 3 : index
    %c0_12 = arith.constant 0 : index
    %c0_13 = arith.constant 0 : index
    %18 = vector.load %arg3[%c3, %c0_12, %c0_13] : memref<9x256x256xbf16, #tpu.memory_space<vmem>>, vector<1x256x256xbf16>
    %19 = vector.shape_cast %18 : vector<1x256x256xbf16> to vector<256x256xbf16>
    %cst_14 = arith.constant dense<0.000000e+00> : vector<38x256xf32>
    %20 = tpu.matmul %1, %19, %cst_14 {dimension_numbers = #tpu.dot_dimension_numbers<[1], [0], [0], [1], [0, 0, 1, 1], [], []>} : vector<38x256xbf16>, vector<256x256xbf16>, vector<38x256xf32> -> vector<38x256xf32>
    %21 = vector.extract_strided_slice %20 {offsets = [6, 0], sizes = [24, 256], strides = [1, 1]} : vector<38x256xf32> to vector<24x256xf32>
    %22 = arith.addf %17, %21 : vector<24x256xf32>
    %c4 = arith.constant 4 : index
    %c0_15 = arith.constant 0 : index
    %c0_16 = arith.constant 0 : index
    %23 = vector.load %arg3[%c4, %c0_15, %c0_16] : memref<9x256x256xbf16, #tpu.memory_space<vmem>>, vector<1x256x256xbf16>
    %24 = vector.shape_cast %23 : vector<1x256x256xbf16> to vector<256x256xbf16>
    %cst_17 = arith.constant dense<0.000000e+00> : vector<38x256xf32>
    %25 = tpu.matmul %1, %24, %cst_17 {dimension_numbers = #tpu.dot_dimension_numbers<[1], [0], [0], [1], [0, 0, 1, 1], [], []>} : vector<38x256xbf16>, vector<256x256xbf16>, vector<38x256xf32> -> vector<38x256xf32>
    %26 = vector.extract_strided_slice %25 {offsets = [7, 0], sizes = [24, 256], strides = [1, 1]} : vector<38x256xf32> to vector<24x256xf32>
    %27 = arith.addf %22, %26 : vector<24x256xf32>
    %c5 = arith.constant 5 : index
    %c0_18 = arith.constant 0 : index
    %c0_19 = arith.constant 0 : index
    %28 = vector.load %arg3[%c5, %c0_18, %c0_19] : memref<9x256x256xbf16, #tpu.memory_space<vmem>>, vector<1x256x256xbf16>
    %29 = vector.shape_cast %28 : vector<1x256x256xbf16> to vector<256x256xbf16>
    %cst_20 = arith.constant dense<0.000000e+00> : vector<38x256xf32>
    %30 = tpu.matmul %1, %29, %cst_20 {dimension_numbers = #tpu.dot_dimension_numbers<[1], [0], [0], [1], [0, 0, 1, 1], [], []>} : vector<38x256xbf16>, vector<256x256xbf16>, vector<38x256xf32> -> vector<38x256xf32>
    %31 = vector.extract_strided_slice %30 {offsets = [8, 0], sizes = [24, 256], strides = [1, 1]} : vector<38x256xf32> to vector<24x256xf32>
    %32 = arith.addf %27, %31 : vector<24x256xf32>
    %c6 = arith.constant 6 : index
    %c0_21 = arith.constant 0 : index
    %c0_22 = arith.constant 0 : index
    %33 = vector.load %arg3[%c6, %c0_21, %c0_22] : memref<9x256x256xbf16, #tpu.memory_space<vmem>>, vector<1x256x256xbf16>
    %34 = vector.shape_cast %33 : vector<1x256x256xbf16> to vector<256x256xbf16>
    %cst_23 = arith.constant dense<0.000000e+00> : vector<38x256xf32>
    %35 = tpu.matmul %1, %34, %cst_23 {dimension_numbers = #tpu.dot_dimension_numbers<[1], [0], [0], [1], [0, 0, 1, 1], [], []>} : vector<38x256xbf16>, vector<256x256xbf16>, vector<38x256xf32> -> vector<38x256xf32>
    %36 = vector.extract_strided_slice %35 {offsets = [12, 0], sizes = [24, 256], strides = [1, 1]} : vector<38x256xf32> to vector<24x256xf32>
    %37 = arith.addf %32, %36 : vector<24x256xf32>
    %c7 = arith.constant 7 : index
    %c0_24 = arith.constant 0 : index
    %c0_25 = arith.constant 0 : index
    %38 = vector.load %arg3[%c7, %c0_24, %c0_25] : memref<9x256x256xbf16, #tpu.memory_space<vmem>>, vector<1x256x256xbf16>
    %39 = vector.shape_cast %38 : vector<1x256x256xbf16> to vector<256x256xbf16>
    %cst_26 = arith.constant dense<0.000000e+00> : vector<38x256xf32>
    %40 = tpu.matmul %1, %39, %cst_26 {dimension_numbers = #tpu.dot_dimension_numbers<[1], [0], [0], [1], [0, 0, 1, 1], [], []>} : vector<38x256xbf16>, vector<256x256xbf16>, vector<38x256xf32> -> vector<38x256xf32>
    %41 = vector.extract_strided_slice %40 {offsets = [13, 0], sizes = [24, 256], strides = [1, 1]} : vector<38x256xf32> to vector<24x256xf32>
    %42 = arith.addf %37, %41 : vector<24x256xf32>
    %c8 = arith.constant 8 : index
    %c0_27 = arith.constant 0 : index
    %c0_28 = arith.constant 0 : index
    %43 = vector.load %arg3[%c8, %c0_27, %c0_28] : memref<9x256x256xbf16, #tpu.memory_space<vmem>>, vector<1x256x256xbf16>
    %44 = vector.shape_cast %43 : vector<1x256x256xbf16> to vector<256x256xbf16>
    %cst_29 = arith.constant dense<0.000000e+00> : vector<38x256xf32>
    %45 = tpu.matmul %1, %44, %cst_29 {dimension_numbers = #tpu.dot_dimension_numbers<[1], [0], [0], [1], [0, 0, 1, 1], [], []>} : vector<38x256xbf16>, vector<256x256xbf16>, vector<38x256xf32> -> vector<38x256xf32>
    %46 = vector.extract_strided_slice %45 {offsets = [14, 0], sizes = [24, 256], strides = [1, 1]} : vector<38x256xf32> to vector<24x256xf32>
    %47 = arith.addf %42, %46 : vector<24x256xf32>
    %c0_30 = arith.constant 0 : index
    %c0_31 = arith.constant 0 : index
    %48 = vector.load %arg4[%c0_30, %c0_31] : memref<1x256xf32, #tpu.memory_space<vmem>>, vector<1x256xf32>
    %49 = vector.broadcast %48 : vector<1x256xf32> to vector<24x256xf32>
    %50 = arith.addf %47, %49 : vector<24x256xf32>
    %cst_32 = arith.constant 0.000000e+00 : f32
    %51 = vector.broadcast %cst_32 : f32 to vector<24x256xf32>
    %52 = arith.maximumf %50, %51 : vector<24x256xf32>
    %53 = arith.truncf %52 : vector<24x256xf32> to vector<24x256xbf16>
    %c0_33 = arith.constant 0 : index
    %c0_34 = arith.constant 0 : index
    %c0_35 = arith.constant 0 : index
    %54 = vector.load %arg5[%c0_33, %c0_34, %c0_35] : memref<1x24x256xbf16, #tpu.memory_space<vmem>>, vector<1x24x256xbf16>
    %55 = vector.shape_cast %54 : vector<1x24x256xbf16> to vector<24x256xbf16>
    %56 = vector.shape_cast %53 : vector<24x256xbf16> to vector<1x24x256xbf16>
    tpu.vector_store %arg5[%c0_33, %c0_34, %c0_35], %56 {strides = array<i32>} : memref<1x24x256xbf16, #tpu.memory_space<vmem>>, vector<1x24x256xbf16>,
    return
  }
  func.func @transform_0(%arg0: i32, %arg1: i32) -> (i32, i32, i32) {
    %c0_i32 = arith.constant 0 : i32
    %c0_i32_0 = arith.constant 0 : i32
    %c0_i32_1 = arith.constant 0 : i32
    return %arg0, %c0_i32, %c0_i32_0 : i32, i32, i32
  }
  func.func @transform_1(%arg0: i32, %arg1: i32) -> (i32, i32, i32) {
    %c0_i32 = arith.constant 0 : i32
    %c0_i32_0 = arith.constant 0 : i32
    %c0_i32_1 = arith.constant 0 : i32
    return %c0_i32, %c0_i32_0, %arg1 : i32, i32, i32
  }
  func.func @transform_2(%arg0: i32, %arg1: i32) -> (i32, i32) {
    %c0_i32 = arith.constant 0 : i32
    %c0_i32_0 = arith.constant 0 : i32
    return %c0_i32, %arg1 : i32, i32
  }
  func.func @transform_3(%arg0: i32, %arg1: i32) -> (i32, i32, i32) {
    %c0_i32 = arith.constant 0 : i32
    %c0_i32_0 = arith.constant 0 : i32
    return %arg0, %c0_i32, %arg1 : i32, i32, i32
  }
}

module attributes {stable_mosaic.version = 11 : i64} {
  func.func @_head_kernel(%arg0: i32, %arg1: memref<2x16x256xbf16, #tpu.memory_space<vmem>>, %arg2: memref<256x128xbf16, #tpu.memory_space<vmem>>, %arg3: memref<1x128xf32, #tpu.memory_space<vmem>>, %arg4: memref<2x128xf32, #tpu.memory_space<vmem>>) attributes {dimension_semantics = [#tpu.dimension_semantics<arbitrary>], iteration_bounds = array<i64: 1>, scalar_prefetch = 0 : i64, scratch_operands = 0 : i64, tpu.core_type = #tpu.core_type<tc>, window_params = [{pipeline_mode = #tpu.pipeline_mode<synchronous>, transform_indices = @transform_0, window_bounds = array<i64: 2, 16, 256>}, {pipeline_mode = #tpu.pipeline_mode<synchronous>, transform_indices = @transform_1, window_bounds = array<i64: 256, 128>}, {pipeline_mode = #tpu.pipeline_mode<synchronous>, transform_indices = @transform_2, window_bounds = array<i64: 1, 128>}, {pipeline_mode = #tpu.pipeline_mode<synchronous>, transform_indices = @transform_3, window_bounds = array<i64: 2, 128>}]} {
    %c0 = arith.constant 0 : index
    %c0_0 = arith.constant 0 : index
    %c0_1 = arith.constant 0 : index
    %0 = vector.load %arg1[%c0, %c0_0, %c0_1] : memref<2x16x256xbf16, #tpu.memory_space<vmem>>, vector<2x16x256xbf16>
    %1 = arith.extf %0 : vector<2x16x256xbf16> to vector<2x16x256xf32>
    %cst = arith.constant dense<0.000000e+00> : vector<2x256xf32>
    %2 = vector.multi_reduction <add>, %1, %cst [1] : vector<2x16x256xf32> to vector<2x256xf32>
    %cst_2 = arith.constant 1.600000e+01 : f32
    %3 = vector.broadcast %cst_2 : f32 to vector<2x256xf32>
    %4 = arith.divf %2, %3 : vector<2x256xf32>
    %5 = arith.truncf %4 : vector<2x256xf32> to vector<2x256xbf16>
    %c0_3 = arith.constant 0 : index
    %c0_4 = arith.constant 0 : index
    %6 = vector.load %arg2[%c0_3, %c0_4] : memref<256x128xbf16, #tpu.memory_space<vmem>>, vector<256x128xbf16>
    %cst_5 = arith.constant dense<0.000000e+00> : vector<2x128xf32>
    %7 = tpu.matmul %5, %6, %cst_5 {dimension_numbers = #tpu.dot_dimension_numbers<[1], [0], [0], [1], [0, 0, 1, 1], [], []>} : vector<2x256xbf16>, vector<256x128xbf16>, vector<2x128xf32> -> vector<2x128xf32>
    %c0_6 = arith.constant 0 : index
    %c0_7 = arith.constant 0 : index
    %8 = vector.load %arg3[%c0_6, %c0_7] : memref<1x128xf32, #tpu.memory_space<vmem>>, vector<1x128xf32>
    %9 = vector.broadcast %8 : vector<1x128xf32> to vector<2x128xf32>
    %10 = arith.addf %7, %9 : vector<2x128xf32>
    %c0_8 = arith.constant 0 : index
    %c0_9 = arith.constant 0 : index
    %11 = vector.load %arg4[%c0_8, %c0_9] : memref<2x128xf32, #tpu.memory_space<vmem>>, vector<2x128xf32>
    tpu.vector_store %arg4[%c0_8, %c0_9], %10 {strides = array<i32>} : memref<2x128xf32, #tpu.memory_space<vmem>>, vector<2x128xf32>,
    return
  }
  func.func @transform_0(%arg0: i32) -> (i32, i32, i32) {
    %c0_i32 = arith.constant 0 : i32
    %c0_i32_0 = arith.constant 0 : i32
    %c0_i32_1 = arith.constant 0 : i32
    %c0_i32_2 = arith.constant 0 : i32
    return %c0_i32, %c0_i32_0, %c0_i32_1 : i32, i32, i32
  }
  func.func @transform_1(%arg0: i32) -> (i32, i32) {
    %c0_i32 = arith.constant 0 : i32
    %c0_i32_0 = arith.constant 0 : i32
    %c0_i32_1 = arith.constant 0 : i32
    return %c0_i32, %c0_i32_0 : i32, i32
  }
  func.func @transform_2(%arg0: i32) -> (i32, i32) {
    %c0_i32 = arith.constant 0 : i32
    %c0_i32_0 = arith.constant 0 : i32
    %c0_i32_1 = arith.constant 0 : i32
    return %c0_i32, %c0_i32_0 : i32, i32
  }
  func.func @transform_3(%arg0: i32) -> (i32, i32) {
    %c0_i32 = arith.constant 0 : i32
    %c0_i32_0 = arith.constant 0 : i32
    %c0_i32_1 = arith.constant 0 : i32
    return %c0_i32, %c0_i32_0 : i32, i32
  }
}

</mosaic_0001>

<bundles_post_ra>
// kernel: vgg_forward.5
= control target key start
LH: loop header
LB: loop body
LE: loop exit
PB: predicated region body
PF: predicated region fallthrough
CT: control target
= control target key end

     0   :  { %8 = vsyncpa [#allocation3], 0  ;;  %s1068_s12 = smov 0   ;;  %s1271_s0 = inlined_call_operand.vmem [shape: bf16[2,256,27], index: 0, kind: input, shape index: {}]   ;;  %s1272_s1 = inlined_call_operand.vmem [shape: bf16[27,64], index: 1, kind: input, shape index: {}]   ;;  %s1273_s2 = inlined_call_operand.hbm [shape: f32[1,64], index: 2, kind: input, shape index: {}]   ;;  %s1274_s3 = inlined_call_operand.vmem [shape: bf16[2,256,64], index: 3, kind: output, shape index: {}]  }
   0x1 LB: > { %s1074_s13 = sadd.s32 4294967295, %s1044_s12   ;;  %p798_p0 = scmp.ge.s32.totalorder %s1044_s12, 1  ;;  %s1044_s12 = sphi %s1068_s12, %s14_s12  }
   0x2   : > { %p113_p1 = scmp.lt.s32.totalorder %s1044_s12, 3  ;;  %p1275_p3 = scmp.eq.s32.totalorder %s1074_s13, 0 }
   0x3   : > { %s1046_s15 = smov [#allocation2]   ;;  %s1006_s20 = scalar_lea.hbm %s1273_s2, 16 }
   0x4   : > { %p1078_p2 = pnand %p798_p0, %p113_p1  ;;  %s129_s16 = sshll.u32 %s1046_s15, 4  ;;  %s130_s16 = int_to_ptr.vmem [resolvable:$true] %s129_s16 }
   0x5   : > { %p1007_p6 = scmp.ne.s32.totalorder %s1273_s2, %s1006_s20  ;;  %p1013_p10 = scmp.lt.u32.totalorder %s1006_s20, %s1273_s2 }
   0x6   : > { %s1277_s14 = scalar_select %p1078_p2, 1, 0 }
   0x7   : > { %p972_p4 = pneg %p1078_p2 }
   0x9   : > { %p1087_p5 = pnand %p1275_p3, %p972_p4 }
   0xb   : > { %p1008_p7 = pneg %p1087_p5 }
   0xd   : > { %p1009_p8 = pnand %p1008_p7, %p1007_p6 }
   0xf   : > { %p1010_p9 = pneg %p1009_p8 }
  0x11   : > { %p1015_p11 = pnand %p1013_p10, %p1010_p9 }
  0x13   : > { %1018 = shalt.err (!%p1015_p11)
}
  0x14   : > { %s1019_s25 = scalar_lea.vmem %s130_s16, 16  ;;  %s1026_s26 = scalar_lea.vmem %s130_s16, 32 }
  0x15   : > { %p1020_p12 = scmp.ne.s32.totalorder %s130_s16, %s1019_s25  ;;  %p1027_p1 = scmp.lt.s32.totalorder %s130_s16, %s130_s16 }
  0x16   : > { %p1028_p4 = scmp.lt.s32.totalorder %s1026_s26, %s1019_s25 }
  0x17   : > { %p1022_p13 = pnand %p1020_p12, %p1008_p7 }
  0x18   : > { %p1029_p3 = por %p1028_p4, %p1027_p1 }
  0x19   : > { %p1023_p0 = pneg %p1022_p13 }
  0x1b   : > { %p1030_p2 = pnand %p1029_p3, %p1023_p0 }
  0x1d   : > { %1033 = shalt.err (!%p1030_p2)
}
  0x1e   : > { %975 = dma.hbm_to_vmem [thread:$0]  (!%p1087_p5), %s1273_s2, 16, %s130_s16, [#allocation3]  }
  0x1f   : > { %p1279_p6 = scmp.ne.s32.totalorder %s1277_s14, 0 }
  0x20   : > { %p1280_p8 = scmp.eq.s32.totalorder (!%p1279_p6), %s1074_s13, 0 }
  0x21   : > { %150 = sbr.rel (%p1279_p6) target bundleno = 297 (0x129), region = 32 }
  0x28   : > { %1039 = dma.done.wait (%p1280_p8), [#allocation3], 16   ;;  %p1281_p7 = pmov %p1280_p8 }
  0x29   : > { %p174_p9 = scmp.lt.s32.totalorder %s1074_s13, 1  ;;  %vm368_vm0 = vcmask 1044480   ;;  %vm369_vm1 = vcmask 1045504   ;;  %v1047_v0 = vmov 65535   ;;  %vm319_vm2 = vcmask 220160   ;;  %v988_v2 = vld [vmem:[%s1272_s1] sm:$0xff]  }
  0x2a   : > { %1041 = vsyncadd (%p1281_p7), [#allocation3], 4294967280  ;;  %v370_v1 = vsel %vm368_vm0, 4294967295, %v1047_v0  ;;  %v989_v4 = vld [vmem:[%s1272_s1 + $0x8] sm:$0x3f]   ;;  %928 = vmatprep.subr.bf16.mxu0 %v988_v2  ;;  %964 = vmatprep.subr.bf16.mxu1 %v988_v2  ;;  %vm696_vm3 = vcmask 519168  }
  0x2b   : > { %s1283_s13 = smov (!%p174_p9, %s1074_s13), 1  ;;  %v371_v3 = vsel %vm369_vm1, %v370_v1, 0  ;;  %929 = vmatpush3.bf16.msra.mxu0 %v988_v2  ;;  %966 = vmatpush3.bf16.msra.mxu1 %v988_v2  ;;  %v1163_v22 = vld [vmem:[#allocation2] ss:$0 sm:$0xff] }
  0x2c   : > { %s876_s29 = sshll.u32 %s1283_s13, 7  ;;  %v373_v6 = vand.u32 %v989_v4, %v371_v3 }
  0x2d   : > { %s1123_s5 = scalar_lea.vmem %s1271_s0, %s876_s29  ;;  %s1176_s14 = scalar_lea.vmem %s1274_s3, %s876_s29 }
  0x2e   : > { %v990_v5 = vld [vmem:[%s1123_s5] sm:$0xff]   ;;  %v992_v8 = vld [vmem:[%s1123_s5 + $0x8] sm:$0xff]   ;;  %930 = vmatprep.subr.bf16.mxu0 %v373_v6  ;;  %965 = vmatprep.subr.bf16.mxu1 %v373_v6  ;;  %v994_v10 = vld [vmem:[%s1123_s5 + $0x10] sm:$0xff]  }
  0x2f   : > { %v991_v7 = vld [vmem:[%s1123_s5 + $0x40] sm:$0xff]   ;;  %932 = vmatprep.mubr.msk.bf16.mxu0 %vm319_vm2, %v990_v5  ;;  %v993_v9 = vld [vmem:[%s1123_s5 + $0x48] sm:$0xff]   ;;  %931 = vmatpush3.bf16.msra.mxu0 %v373_v6  ;;  %v995_v11 = vld [vmem:[%s1123_s5 + $0x50] sm:$0xff]  }
  0x30   : > { %948 = vmatprep.mubr.msk.bf16.mxu1 %vm319_vm2, %v991_v7  ;;  %967 = vmatpush3.bf16.msra.mxu1 %v373_v6  ;;  %v996_v12 = vld [vmem:[%s1123_s5 + $0x18] sm:$0xff]   ;;  %v998_v14 = vld [vmem:[%s1123_s5 + $0x20] sm:$0xff]   ;;  %v1000_v16 = vld [vmem:[%s1123_s5 + $0x28] sm:$0xff]  }
  0x31   : > { %v997_v13 = vld [vmem:[%s1123_s5 + $0x58] sm:$0xff]   ;;  %v999_v15 = vld [vmem:[%s1123_s5 + $0x60] sm:$0xff]   ;;  %v1001_v17 = vld [vmem:[%s1123_s5 + $0x68] sm:$0xff]  }
  0x32   : > { %933 = vmatmul.mubr.msk.bf16.vlgmr.msra.gmra.mrb[0].mxu0 %vm319_vm2, %v992_v8  ;;  %v1002_v18 = vld [vmem:[%s1123_s5 + $0x30] sm:$0xff]   ;;  %v1004_v20 = vld [vmem:[%s1123_s5 + $0x38] sm:$0xff]  }
  0x33   : > { %949 = vmatmul.mubr.msk.bf16.vlgmr.msra.gmra.mrb[0].mxu1 %vm319_vm2, %v993_v9  ;;  %936 = vmatprep.mubr.msk.bf16.mxu0 %vm319_vm2, %v994_v10  ;;  %v1003_v19 = vld [vmem:[%s1123_s5 + $0x70] sm:$0xff]   ;;  %v1005_v21 = vld [vmem:[%s1123_s5 + $0x78] sm:$0xff]  }
  0x34   : > { %952 = vmatprep.mubr.msk.bf16.mxu1 %vm319_vm2, %v995_v11 }
  0x3a   : > { %937 = vmatmul.mubr.msk.bf16.gmra.mrb[4].mxu0 %vm319_vm2, %v996_v12 }
  0x3b   : > { %953 = vmatmul.mubr.msk.bf16.gmra.mrb[4].mxu1 %vm319_vm2, %v997_v13  ;;  %940 = vmatprep.mubr.msk.bf16.mxu0 %vm319_vm2, %v998_v14 }
  0x3c   : > { %956 = vmatprep.mubr.msk.bf16.mxu1 %vm319_vm2, %v999_v15 }
  0x42   : > { %941 = vmatmul.mubr.msk.bf16.gmra.mrb[8].mxu0 %vm319_vm2, %v1000_v16 }
  0x43   : > { %957 = vmatmul.mubr.msk.bf16.gmra.mrb[8].mxu1 %vm319_vm2, %v1001_v17  ;;  %944 = vmatprep.mubr.msk.bf16.mxu0 %vm319_vm2, %v1002_v18 }
  0x44   : > { %960 = vmatprep.mubr.msk.bf16.mxu1 %vm319_vm2, %v1003_v19 }
  0x4a   : > { %945 = vmatmul.mubr.msk.bf16.gmra.mrb[12].mxu0 %vm319_vm2, %v1004_v20 }
  0x4b   : > { %961 = vmatmul.mubr.msk.bf16.gmra.mrb[12].mxu1 %vm319_vm2, %v1005_v21 }
 0x105   : > { %v934_v23 = vpop.f32.mrb[0].mxu0 }
 0x106   : > { %v950_v24 = vpop.f32.mrb[0].mxu1  ;;  %v418_v25 = vadd.f32 %v934_v23, %v1163_v22  ;;  %v409_v27 = vpop.f32.mrb[1].mxu0 }
 0x107   : > { %v482_v26 = vadd.f32 %v950_v24, %v1163_v22  ;;  %v473_v28 = vpop.f32.mrb[1].mxu1  ;;  %v410_v29 = vadd.f32 %v1163_v22, %v409_v27  ;;  %v935_v31 = vpop.f32.mrb[2].mxu0 }
 0x108   : > { %v474_v30 = vadd.f32 %v1163_v22, %v473_v28  ;;  %v951_v32 = vpop.f32.mrb[2].mxu1  ;;  %v538_v33 = vmax.f32 %v418_v25, 0.0  ;;  %v421_v35 = vadd.f32 %v935_v31, %v1163_v22  ;;  %v412_v37 = vpop.f32.mrb[3].mxu0 }
 0x109   : > { %v554_v34 = vmax.f32 %v482_v26, 0.0  ;;  %v485_v36 = vadd.f32 %v951_v32, %v1163_v22  ;;  %v476_v38 = vpop.f32.mrb[3].mxu1  ;;  %v536_v39 = vmax.f32 %v410_v29, 0.0  ;;  %v413_v41 = vadd.f32 %v1163_v22, %v412_v37 }
 0x10a   : > { %v552_v40 = vmax.f32 %v474_v30, 0.0  ;;  %v477_v42 = vadd.f32 %v1163_v22, %v476_v38  ;;  %v880_v43 = vpack.c.bf16 %v538_v33, %v538_v33  ;;  %v539_v45 = vmax.f32 %v421_v35, 0.0 }
 0x10b   : > { %v896_v44 = vpack.c.bf16 %v554_v34, %v554_v34  ;;  %v555_v46 = vmax.f32 %v485_v36, 0.0  ;;  %v878_v47 = vpack.c.bf16 %v536_v39, %v536_v39  ;;  %v537_v49 = vmax.f32 %v413_v41, 0.0 }
 0x10c   : > { %v894_v48 = vpack.c.bf16 %v552_v40, %v552_v40  ;;  %v553_v50 = vmax.f32 %v477_v42, 0.0  ;;  %699 = vst.msk [vmem:[%s1176_s14 + $0x8] sm:$0xf] %vm696_vm3, %v880_v43  ;;  %v881_v51 = vpack.c.bf16 %v539_v45, %v539_v45 }
 0x10d   : > { %715 = vst.msk [vmem:[%s1176_s14 + $0x48] sm:$0xf] %vm696_vm3, %v896_v44  ;;  %v897_v52 = vpack.c.bf16 %v555_v46, %v555_v46  ;;  %697 = vst.msk [vmem:[%s1176_s14] sm:$0xf] %vm696_vm3, %v878_v47  ;;  %v879_v53 = vpack.c.bf16 %v537_v49, %v537_v49  ;;  %v938_v55 = vpop.f32.mrb[4].mxu0 }
 0x10e   : > { %713 = vst.msk [vmem:[%s1176_s14 + $0x40] sm:$0xf] %vm696_vm3, %v894_v48  ;;  %v895_v54 = vpack.c.bf16 %v553_v50, %v553_v50  ;;  %v954_v56 = vpop.f32.mrb[4].mxu1  ;;  %700 = vst.msk [vmem:[%s1176_s14 + $0xc] sm:$0xf] %vm696_vm3, %v881_v51  ;;  %v434_v57 = vadd.f32 %v938_v55, %v1163_v22  ;;  %v425_v59 = vpop.f32.mrb[5].mxu0 }
 0x10f   : > { %716 = vst.msk [vmem:[%s1176_s14 + $0x4c] sm:$0xf] %vm696_vm3, %v897_v52  ;;  %v498_v58 = vadd.f32 %v954_v56, %v1163_v22  ;;  %v489_v60 = vpop.f32.mrb[5].mxu1  ;;  %698 = vst.msk [vmem:[%s1176_s14 + $0x4] sm:$0xf] %vm696_vm3, %v879_v53  ;;  %v426_v61 = vadd.f32 %v1163_v22, %v425_v59  ;;  %v939_v63 = vpop.f32.mrb[6].mxu0 }
 0x110   : > { %714 = vst.msk [vmem:[%s1176_s14 + $0x44] sm:$0xf] %vm696_vm3, %v895_v54  ;;  %v490_v62 = vadd.f32 %v1163_v22, %v489_v60  ;;  %v955_v0 = vpop.f32.mrb[6].mxu1  ;;  %v542_v1 = vmax.f32 %v434_v57, 0.0  ;;  %v437_v3 = vadd.f32 %v939_v63, %v1163_v22  ;;  %v428_v5 = vpop.f32.mrb[7].mxu0 }
 0x111   : > { %v558_v2 = vmax.f32 %v498_v58, 0.0  ;;  %v501_v4 = vadd.f32 %v955_v0, %v1163_v22  ;;  %v492_v6 = vpop.f32.mrb[7].mxu1  ;;  %v540_v7 = vmax.f32 %v426_v61, 0.0  ;;  %v429_v9 = vadd.f32 %v1163_v22, %v428_v5 }
 0x112   : > { %v556_v8 = vmax.f32 %v490_v62, 0.0  ;;  %v493_v10 = vadd.f32 %v1163_v22, %v492_v6  ;;  %v884_v11 = vpack.c.bf16 %v542_v1, %v542_v1  ;;  %v543_v13 = vmax.f32 %v437_v3, 0.0 }
 0x113   : > { %v900_v12 = vpack.c.bf16 %v558_v2, %v558_v2  ;;  %v559_v14 = vmax.f32 %v501_v4, 0.0  ;;  %v882_v15 = vpack.c.bf16 %v540_v7, %v540_v7  ;;  %v541_v17 = vmax.f32 %v429_v9, 0.0 }
 0x114   : > { %v898_v16 = vpack.c.bf16 %v556_v8, %v556_v8  ;;  %v557_v18 = vmax.f32 %v493_v10, 0.0  ;;  %703 = vst.msk [vmem:[%s1176_s14 + $0x18] sm:$0xf] %vm696_vm3, %v884_v11  ;;  %v885_v19 = vpack.c.bf16 %v543_v13, %v543_v13 }
 0x115   : > { %719 = vst.msk [vmem:[%s1176_s14 + $0x58] sm:$0xf] %vm696_vm3, %v900_v12  ;;  %v901_v20 = vpack.c.bf16 %v559_v14, %v559_v14  ;;  %701 = vst.msk [vmem:[%s1176_s14 + $0x10] sm:$0xf] %vm696_vm3, %v882_v15  ;;  %v883_v21 = vpack.c.bf16 %v541_v17, %v541_v17  ;;  %v942_v24 = vpop.f32.mrb[8].mxu0 }
 0x116   : > { %717 = vst.msk [vmem:[%s1176_s14 + $0x50] sm:$0xf] %vm696_vm3, %v898_v16  ;;  %v899_v23 = vpack.c.bf16 %v557_v18, %v557_v18  ;;  %v958_v25 = vpop.f32.mrb[8].mxu1  ;;  %704 = vst.msk [vmem:[%s1176_s14 + $0x1c] sm:$0xf] %vm696_vm3, %v885_v19  ;;  %v450_v26 = vadd.f32 %v942_v24, %v1163_v22  ;;  %v441_v28 = vpop.f32.mrb[9].mxu0 }
 0x117   : > { %720 = vst.msk [vmem:[%s1176_s14 + $0x5c] sm:$0xf] %vm696_vm3, %v901_v20  ;;  %v514_v27 = vadd.f32 %v958_v25, %v1163_v22  ;;  %v505_v29 = vpop.f32.mrb[9].mxu1  ;;  %702 = vst.msk [vmem:[%s1176_s14 + $0x14] sm:$0xf] %vm696_vm3, %v883_v21  ;;  %v442_v30 = vadd.f32 %v1163_v22, %v441_v28  ;;  %v943_v32 = vpop.f32.mrb[10].mxu0 }
 0x118   : > { %718 = vst.msk [vmem:[%s1176_s14 + $0x54] sm:$0xf] %vm696_vm3, %v899_v23  ;;  %v506_v31 = vadd.f32 %v1163_v22, %v505_v29  ;;  %v959_v33 = vpop.f32.mrb[10].mxu1  ;;  %v546_v34 = vmax.f32 %v450_v26, 0.0  ;;  %v453_v36 = vadd.f32 %v943_v32, %v1163_v22  ;;  %v444_v38 = vpop.f32.mrb[11].mxu0 }
 0x119   : > { %v562_v35 = vmax.f32 %v514_v27, 0.0  ;;  %v517_v37 = vadd.f32 %v959_v33, %v1163_v22  ;;  %v508_v39 = vpop.f32.mrb[11].mxu1  ;;  %v544_v40 = vmax.f32 %v442_v30, 0.0  ;;  %v445_v42 = vadd.f32 %v1163_v22, %v444_v38 }
 0x11a   : > { %v560_v41 = vmax.f32 %v506_v31, 0.0  ;;  %v509_v43 = vadd.f32 %v1163_v22, %v508_v39  ;;  %v888_v44 = vpack.c.bf16 %v546_v34, %v546_v34  ;;  %v547_v46 = vmax.f32 %v453_v36, 0.0 }
 0x11b   : > { %v904_v45 = vpack.c.bf16 %v562_v35, %v562_v35  ;;  %v563_v47 = vmax.f32 %v517_v37, 0.0  ;;  %v886_v48 = vpack.c.bf16 %v544_v40, %v544_v40  ;;  %v545_v50 = vmax.f32 %v445_v42, 0.0 }
 0x11c   : > { %v902_v49 = vpack.c.bf16 %v560_v41, %v560_v41  ;;  %v561_v51 = vmax.f32 %v509_v43, 0.0  ;;  %707 = vst.msk [vmem:[%s1176_s14 + $0x28] sm:$0xf] %vm696_vm3, %v888_v44  ;;  %v889_v52 = vpack.c.bf16 %v547_v46, %v547_v46 }
 0x11d   : > { %723 = vst.msk [vmem:[%s1176_s14 + $0x68] sm:$0xf] %vm696_vm3, %v904_v45  ;;  %v905_v53 = vpack.c.bf16 %v563_v47, %v563_v47  ;;  %705 = vst.msk [vmem:[%s1176_s14 + $0x20] sm:$0xf] %vm696_vm3, %v886_v48  ;;  %v887_v54 = vpack.c.bf16 %v545_v50, %v545_v50  ;;  %v946_v56 = vpop.f32.mrb[12].mxu0 }
 0x11e   : > { %721 = vst.msk [vmem:[%s1176_s14 + $0x60] sm:$0xf] %vm696_vm3, %v902_v49  ;;  %v903_v55 = vpack.c.bf16 %v561_v51, %v561_v51  ;;  %v962_v57 = vpop.f32.mrb[12].mxu1  ;;  %708 = vst.msk [vmem:[%s1176_s14 + $0x2c] sm:$0xf] %vm696_vm3, %v889_v52  ;;  %v466_v58 = vadd.f32 %v946_v56, %v1163_v22  ;;  %v457_v60 = vpop.f32.mrb[13].mxu0 }
 0x11f   : > { %724 = vst.msk [vmem:[%s1176_s14 + $0x6c] sm:$0xf] %vm696_vm3, %v905_v53  ;;  %v530_v59 = vadd.f32 %v962_v57, %v1163_v22  ;;  %v521_v61 = vpop.f32.mrb[13].mxu1  ;;  %706 = vst.msk [vmem:[%s1176_s14 + $0x24] sm:$0xf] %vm696_vm3, %v887_v54  ;;  %v458_v62 = vadd.f32 %v1163_v22, %v457_v60  ;;  %v947_v0 = vpop.f32.mrb[14].mxu0 }
 0x120   : > { %722 = vst.msk [vmem:[%s1176_s14 + $0x64] sm:$0xf] %vm696_vm3, %v903_v55  ;;  %v522_v63 = vadd.f32 %v1163_v22, %v521_v61  ;;  %v963_v1 = vpop.f32.mrb[14].mxu1  ;;  %v550_v2 = vmax.f32 %v466_v58, 0.0  ;;  %v469_v4 = vadd.f32 %v947_v0, %v1163_v22  ;;  %v460_v6 = vpop.f32.mrb[15].mxu0 }
 0x121   : > { %v566_v3 = vmax.f32 %v530_v59, 0.0  ;;  %v533_v5 = vadd.f32 %v963_v1, %v1163_v22  ;;  %v524_v7 = vpop.f32.mrb[15].mxu1  ;;  %v548_v8 = vmax.f32 %v458_v62, 0.0  ;;  %v461_v10 = vadd.f32 %v1163_v22, %v460_v6 }
 0x122   : > { %v564_v9 = vmax.f32 %v522_v63, 0.0  ;;  %v525_v11 = vadd.f32 %v1163_v22, %v524_v7  ;;  %v892_v12 = vpack.c.bf16 %v550_v2, %v550_v2  ;;  %v551_v14 = vmax.f32 %v469_v4, 0.0 }
 0x123   : > { %v908_v13 = vpack.c.bf16 %v566_v3, %v566_v3  ;;  %v567_v15 = vmax.f32 %v533_v5, 0.0  ;;  %v890_v16 = vpack.c.bf16 %v548_v8, %v548_v8  ;;  %v549_v18 = vmax.f32 %v461_v10, 0.0 }
 0x124   : > { %v906_v17 = vpack.c.bf16 %v564_v9, %v564_v9  ;;  %v565_v19 = vmax.f32 %v525_v11, 0.0  ;;  %711 = vst.msk [vmem:[%s1176_s14 + $0x38] sm:$0xf] %vm696_vm3, %v892_v12  ;;  %v893_v20 = vpack.c.bf16 %v551_v14, %v551_v14 }
 0x125   : > { %727 = vst.msk [vmem:[%s1176_s14 + $0x78] sm:$0xf] %vm696_vm3, %v908_v13  ;;  %v909_v21 = vpack.c.bf16 %v567_v15, %v567_v15  ;;  %709 = vst.msk [vmem:[%s1176_s14 + $0x30] sm:$0xf] %vm696_vm3, %v890_v16  ;;  %v891_v22 = vpack.c.bf16 %v549_v18, %v549_v18 }
 0x126   : > { %725 = vst.msk [vmem:[%s1176_s14 + $0x70] sm:$0xf] %vm696_vm3, %v906_v17  ;;  %v907_v23 = vpack.c.bf16 %v565_v19, %v565_v19  ;;  %712 = vst.msk [vmem:[%s1176_s14 + $0x3c] sm:$0xf] %vm696_vm3, %v893_v20 }
 0x127   : > { %728 = vst.msk [vmem:[%s1176_s14 + $0x7c] sm:$0xf] %vm696_vm3, %v909_v21  ;;  %710 = vst.msk [vmem:[%s1176_s14 + $0x34] sm:$0xf] %vm696_vm3, %v891_v22 }
 0x128   : > { %726 = vst.msk [vmem:[%s1176_s14 + $0x74] sm:$0xf] %vm696_vm3, %v907_v23 }
 0x129 PF: > { %s14_s12 = sadd.s32 1, %s1044_s12  }
 0x12a   : > { %p11_p2 = scmp.ge.s32.totalorder %s14_s12, 4  }
 0x12c   :  { %13 = sbr.rel (!%p11_p2) target bundleno = 1 (0x1), region = 67 }
 0x133   :  { %750 = vsyncpa [#allocation3], 1 }
 0x134   :  { %752 = vsyncpa [#allocation3 + $0x1], 1 }

// kernel: vgg_forward.6
= control target key start
LH: loop header
LB: loop body
LE: loop exit
PB: predicated region body
PF: predicated region fallthrough
CT: control target
= control target key end

     0   :  { %s2753_s12 = smov 0   ;;  %s2755_s13 = smov 0   ;;  %s3426_s0 = inlined_call_operand.vmem [shape: bf16[2,102,64], index: 0, kind: input, shape index: {}]   ;;  %s3427_s1 = inlined_call_operand.vmem [shape: bf16[9,64,128], index: 1, kind: input, shape index: {}]   ;;  %s3428_s2 = inlined_call_operand.vmem [shape: f32[1,128], index: 2, kind: input, shape index: {}]   ;;  %s3429_s3 = inlined_call_operand.vmem [shape: bf16[2,80,128], index: 3, kind: output, shape index: {}]  }
   0x1   :  { %s2757_s14 = smov 0  }
   0x2 LB: > { %s25_s15 = sadd.s32 1, %s2725_s13  ;;  %p1980_p0 = scmp.ge.s32.totalorder %s2729_s14, 1  ;;  %s2729_s14 = sphi %s2757_s14, %s13_s14   ;;  %s2725_s13 = sphi %s2755_s13, %s3431_s13   ;;  %s2721_s12 = sphi %s2753_s12, %s3430_s12  }
   0x3   : > { %p27_p1 = scmp.ge.s32.totalorder %s25_s15, 2  ;;  %p168_p2 = scmp.lt.s32.totalorder %s2729_s14, 3 }
   0x5   : > { %s3433_s15 = smov (%p27_p1, %s25_s15), 0  ;;  %p169_p3 = pnand %p1980_p0, %p168_p2 }
   0x6   : > { %v2664_v0 = vld [vmem:[%s3427_s1] sm:$0xff] (!%p169_p3)   ;;  %v2731_v1 = vmov (!%p169_p3), 0.0   ;;  %v2665_v2 = vld [vmem:[%s3427_s1 + $0x8] sm:$0xff] (!%p169_p3)   ;;  %p202_p4 = scmp.lt.s32.totalorder (!%p169_p3), %s2721_s12, 1  ;;  %vm2732_vm0 = vmmov (!%p169_p3), 0   ;;  %v2666_v3 = vld [vmem:[%s3427_s1 + $0x10] sm:$0xff] (!%p169_p3)  }
   0x7   : > { %172 = sbr.rel (%p169_p3) target bundleno = 495 (0x1ef), region = 32  ;;  %2304 = vmatprep.subr.bf16.mxu0 (!%p169_p3), %v2731_v1  ;;  %2628 = vmatprep.subr.bf16.mxu1 (!%p169_p3), %v2731_v1  ;;  %v2667_v4 = vld [vmem:[%s3427_s1 + $0x18] sm:$0xff] (!%p169_p3)   ;;  %vm301_vm1 = vcmask (!%p169_p3), 523264   ;;  %v2670_v7 = vld [vmem:[%s3427_s1 + $0x40] sm:$0xff] (!%p169_p3)   ;;  %v2674_v9 = vld [vmem:[%s3427_s1 + $0x48] sm:$0xff] (!%p169_p3)   ;;  %vm548_vm2 = vcmask (!%p169_p3), 1046528  }
   0x8   : > { %2305 = vmatpush3.bf16.msra.mxu0 (!%p169_p3), %v2664_v0  ;;  %2632 = vmatpush3.bf16.msra.mxu1 (!%p169_p3), %v2664_v0  ;;  %v2671_v8 = vld [vmem:[%s3427_s1 + $0x20] sm:$0xff] (!%p169_p3)   ;;  %v2675_v10 = vld [vmem:[%s3427_s1 + $0x28] sm:$0xff] (!%p169_p3)   ;;  %v2678_v13 = vld [vmem:[%s3427_s1 + $0x30] sm:$0xff] (!%p169_p3)   ;;  %vm720_vm3 = vcmask (!%p169_p3), 1045504   ;;  %vm1063_vm4 = vcmask (!%p169_p3), 1044480   ;;  %vm1235_vm5 = vcmask (!%p169_p3), 1043456  }
   0x9   : > { %2306 = vmatprep.subr.bf16.mxu0 (!%p169_p3), %v2731_v1  ;;  %2629 = vmatprep.subr.bf16.mxu1 (!%p169_p3), %v2731_v1  ;;  %v2679_v14 = vld [vmem:[%s3427_s1 + $0x50] sm:$0xff] (!%p169_p3)   ;;  %v2680_v15 = vld [vmem:[%s3427_s1 + $0x38] sm:$0xff] (!%p169_p3)   ;;  %v2683_v20 = vld [vmem:[%s3427_s1 + $0x60] sm:$0xff] (!%p169_p3)   ;;  %vm1578_vm6 = vcmask (!%p169_p3), 1042432   ;;  %vm1750_vm7 = vcmask (!%p169_p3), 1041408  }
   0xa   : > { %2312 = vmatprep.mubr.msk.bf16.mxu0 (!%p169_p3), %vm2732_vm0, %v2731_v1  ;;  %2328 = vmatprep.mubr.msk.bf16.mxu1 (!%p169_p3), %vm2732_vm0, %v2731_v1  ;;  %v2682_v17 = vld [vmem:[%s3427_s1 + $0x58] sm:$0xff] (!%p169_p3)   ;;  %v2685_v21 = vld [vmem:[%s3427_s1 + $0x68] sm:$0xff] (!%p169_p3)   ;;  %v2684_v22 = vld [vmem:[%s3427_s1 + $0x80] sm:$0xff] (!%p169_p3)  }
   0xb   : > { %v2687_v23 = vld [vmem:[%s3427_s1 + $0x70] sm:$0xff] (!%p169_p3)   ;;  %v2686_v24 = vld [vmem:[%s3427_s1 + $0x88] sm:$0xff] (!%p169_p3)   ;;  %v2689_v25 = vld [vmem:[%s3427_s1 + $0x78] sm:$0xff] (!%p169_p3)  }
   0xc   : > { %2307 = vmatpush3.bf16.msra.mxu0 (!%p169_p3), %v2665_v2  ;;  %2633 = vmatpush3.bf16.msra.mxu1 (!%p169_p3), %v2665_v2  ;;  %v2688_v26 = vld [vmem:[%s3427_s1 + $0x90] sm:$0xff] (!%p169_p3)   ;;  %v2690_v27 = vld [vmem:[%s3427_s1 + $0x98] sm:$0xff] (!%p169_p3)   ;;  %v2691_v28 = vld [vmem:[%s3427_s1 + $0xa0] sm:$0xff] (!%p169_p3)  }
   0xd   : > { %2308 = vmatprep.subr.bf16.mxu0 (!%p169_p3), %v2731_v1  ;;  %2630 = vmatprep.subr.bf16.mxu1 (!%p169_p3), %v2731_v1  ;;  %v2693_v29 = vld [vmem:[%s3427_s1 + $0xa8] sm:$0xff] (!%p169_p3)   ;;  %v2692_v30 = vld [vmem:[%s3427_s1 + $0xc0] sm:$0xff] (!%p169_p3)   ;;  %v2695_v31 = vld [vmem:[%s3427_s1 + $0xb0] sm:$0xff] (!%p169_p3)  }
   0xe   : > { %s3435_s12 = smov (!%p202_p4, %s2721_s12), 1  ;;  %v2694_v32 = vld [vmem:[%s3427_s1 + $0xc8] sm:$0xff]   ;;  %v2697_v33 = vld [vmem:[%s3427_s1 + $0xb8] sm:$0xff]   ;;  %v2696_v34 = vld [vmem:[%s3427_s1 + $0xd0] sm:$0xff]  }
   0xf   : > { %s2636_s22 = smul.u32 52, %s3435_s12  ;;  %v2698_v35 = vld [vmem:[%s3427_s1 + $0xd8] sm:$0xff]   ;;  %v2699_v36 = vld [vmem:[%s3427_s1 + $0xe0] sm:$0xff]   ;;  %v2701_v37 = vld [vmem:[%s3427_s1 + $0xe8] sm:$0xff]  }
  0x10   : > { %2309 = vmatpush3.bf16.msra.mxu0 %v2666_v3  ;;  %2634 = vmatpush3.bf16.msra.mxu1 %v2666_v3  ;;  %v2700_v38 = vld [vmem:[%s3427_s1 + $0x100] sm:$0xff]   ;;  %v2703_v39 = vld [vmem:[%s3427_s1 + $0xf0] sm:$0xff]   ;;  %v2702_v40 = vld [vmem:[%s3427_s1 + $0x108] sm:$0xff]  }
  0x11   : > { %s2796_s25 = scalar_lea.vmem %s3426_s0, %s2636_s22  ;;  %2310 = vmatprep.subr.bf16.mxu0 %v2731_v1  ;;  %2631 = vmatprep.subr.bf16.mxu1 %v2731_v1  ;;  %v2705_v41 = vld [vmem:[%s3427_s1 + $0xf8] sm:$0xff]   ;;  %v2704_v42 = vld [vmem:[%s3427_s1 + $0x110] sm:$0xff]  }
  0x12   : > { %v2804_v5 = vld [vmem:[%s2796_s25] sm:$0xff]   ;;  %v2832_v11 = vld [vmem:[%s2796_s25 + $0x8] sm:$0xff]   ;;  %v2859_v16 = vld [vmem:[%s2796_s25 + $0x30] ss:$0 sps:$4 sm:$0x77]  }
  0x13   : > { %v2807_v6 = vld [vmem:[%s2796_s25 + $0x20] sm:$0xff]   ;;  %v2837_v12 = vld [vmem:[%s2796_s25 + $0x28] sm:$0xff]   ;;  %v2867_v18 = vld [vmem:[%s2796_s25 + $0x10] sm:$0xff]  }
  0x14   : > { %2311 = vmatpush3.bf16.msra.mxu0 %v2667_v4  ;;  %2635 = vmatpush3.bf16.msra.mxu1 %v2667_v4  ;;  %v2880_v19 = vld [vmem:[%s2796_s25 + $0x18] sm:$0xff]   ;;  %s2637_s25 = smul.u32 40, %s3435_s12 }
  0x15   : > { %2376 = vmatprep.subr.bf16.mxu0 %v2731_v1  ;;  %2340 = vmatprep.subr.bf16.mxu1 %v2731_v1  ;;  %v2706_v43 = vld [vmem:[%s3427_s1 + $0x118] sm:$0xff]  }
  0x16   : > { %s3385_s28 = scalar_lea.vmem %s3429_s3, %s2637_s25 }
  0x17   : > { %2313 = vmatmul.mubr.msk.bf16.vlgmr.msra.gmra.mrb[0].mxu0 %vm301_vm1, %v2804_v5  ;;  %2329 = vmatmul.mubr.msk.bf16.vlgmr.msra.gmra.mrb[0].mxu1 %vm301_vm1, %v2807_v6 }
  0x18   : > { %2377 = vmatpush3.bf16.msra.mxu0 %v2670_v7  ;;  %2316 = vmatprep.mubr.msk.bf16.mxu0 %vm2732_vm0, %v2731_v1 }
  0x19   : > { %2332 = vmatprep.mubr.msk.bf16.mxu1 %vm2732_vm0, %v2731_v1  ;;  %2341 = vmatpush3.bf16.msra.mxu1 %v2671_v8 }
  0x1a   : > { %2378 = vmatprep.subr.bf16.mxu0 %v2731_v1  ;;  %2342 = vmatprep.subr.bf16.mxu1 %v2731_v1 }
  0x1c   : > { %2379 = vmatpush3.bf16.msra.mxu0 %v2674_v9 }
  0x1d   : > { %2343 = vmatpush3.bf16.msra.mxu1 %v2675_v10  ;;  %2380 = vmatprep.subr.bf16.mxu0 %v2731_v1 }
  0x1e   : > { %2344 = vmatprep.subr.bf16.mxu1 %v2731_v1 }
  0x1f   : > { %2317 = vmatmul.mubr.msk.bf16.gmra.mrb[4].mxu0 %vm301_vm1, %v2832_v11  ;;  %2333 = vmatmul.mubr.msk.bf16.gmra.mrb[4].mxu1 %vm301_vm1, %v2837_v12 }
  0x20   : > { %2320 = vmatprep.mubr.msk.bf16.mxu0 %vm2732_vm0, %v2731_v1  ;;  %2336 = vmatprep.mubr.msk.bf16.mxu1 %vm2732_vm0, %v2731_v1 }
  0x21   : > { %2345 = vmatpush3.bf16.msra.mxu1 %v2678_v13  ;;  %2381 = vmatpush3.bf16.msra.mxu0 %v2679_v14 }
  0x22   : > { %2346 = vmatprep.subr.bf16.mxu1 %v2731_v1  ;;  %2382 = vmatprep.subr.bf16.mxu0 %v2731_v1 }
  0x25   : > { %2347 = vmatpush3.bf16.msra.mxu1 %v2680_v15  ;;  %2383 = vmatpush3.bf16.msra.mxu0 %v2682_v17 }
  0x26   : > { %2412 = vmatprep.subr.bf16.mxu1 %v2731_v1  ;;  %2448 = vmatprep.subr.bf16.mxu0 %v2731_v1 }
  0x27   : > { %2321 = vmatmul.mubr.msk.bf16.gmra.mrb[8].mxu0 %vm301_vm1, %v2867_v18  ;;  %2337 = vmatmul.mubr.msk.bf16.gmra.mrb[8].mxu1 %vm301_vm1, %v2859_v16 }
  0x28   : > { %2324 = vmatprep.mubr.msk.bf16.mxu0 %vm2732_vm0, %v2731_v1  ;;  %2348 = vmatprep.mubr.msk.bf16.mxu1 %vm2732_vm0, %v2731_v1 }
  0x2f   : > { %2325 = vmatmul.mubr.msk.bf16.gmra.mrb[12].mxu0 %vm301_vm1, %v2880_v19  ;;  %2349 = vmatmul.mubr.msk.bf16.vlgmr.msra.gmra.mrb[12].mxu1 %vm301_vm1, %v2804_v5 }
  0x30   : > { %2352 = vmatprep.mubr.msk.bf16.mxu1 %vm2732_vm0, %v2731_v1  ;;  %2384 = vmatprep.mubr.msk.bf16.mxu0 %vm2732_vm0, %v2731_v1 }
  0x31   : > { %2413 = vmatpush3.bf16.msra.mxu1 %v2683_v20 }
  0x32   : > { %2414 = vmatprep.subr.bf16.mxu1 %v2731_v1 }
  0x35   : > { %2415 = vmatpush3.bf16.msra.mxu1 %v2685_v21 }
  0x36   : > { %2416 = vmatprep.subr.bf16.mxu1 %v2731_v1 }
  0x37   : > { %2353 = vmatmul.mubr.msk.bf16.gmra.mrb[16].mxu1 %vm301_vm1, %v2832_v11  ;;  %2385 = vmatmul.mubr.msk.bf16.vlgmr.msra.gmra.mrb[16].mxu0 %vm301_vm1, %v2804_v5 }
  0x38   : > { %2449 = vmatpush3.bf16.msra.mxu0 %v2684_v22  ;;  %2356 = vmatprep.mubr.msk.bf16.mxu1 %vm2732_vm0, %v2731_v1 }
  0x39   : > { %2388 = vmatprep.mubr.msk.bf16.mxu0 %vm2732_vm0, %v2731_v1  ;;  %2450 = vmatprep.subr.bf16.mxu0 %v2731_v1 }
  0x3a   : > { %2417 = vmatpush3.bf16.msra.mxu1 %v2687_v23 }
  0x3b   : > { %2418 = vmatprep.subr.bf16.mxu1 %v2731_v1 }
  0x3c   : > { %2451 = vmatpush3.bf16.msra.mxu0 %v2686_v24 }
  0x3d   : > { %2452 = vmatprep.subr.bf16.mxu0 %v2731_v1 }
  0x3e   : > { %2419 = vmatpush3.bf16.msra.mxu1 %v2689_v25 }
  0x3f   : > { %2357 = vmatmul.mubr.msk.bf16.gmra.mrb[20].mxu1 %vm301_vm1, %v2867_v18  ;;  %2389 = vmatmul.mubr.msk.bf16.gmra.mrb[20].mxu0 %vm301_vm1, %v2832_v11 }
  0x40   : > { %2360 = vmatprep.mubr.msk.bf16.mxu1 %vm2732_vm0, %v2731_v1  ;;  %2392 = vmatprep.mubr.msk.bf16.mxu0 %vm2732_vm0, %v2731_v1 }
  0x41   : > { %2453 = vmatpush3.bf16.msra.mxu0 %v2688_v26  ;;  %2484 = vmatprep.subr.bf16.mxu1 %v2731_v1 }
  0x42   : > { %2454 = vmatprep.subr.bf16.mxu0 %v2731_v1 }
  0x45   : > { %2455 = vmatpush3.bf16.msra.mxu0 %v2690_v27 }
  0x46   : > { %2520 = vmatprep.subr.bf16.mxu0 %v2731_v1 }
  0x47   : > { %2361 = vmatmul.mubr.msk.bf16.gmra.mrb[24].mxu1 %vm301_vm1, %v2880_v19  ;;  %2393 = vmatmul.mubr.msk.bf16.gmra.mrb[24].mxu0 %vm301_vm1, %v2867_v18 }
  0x48   : > { %2364 = vmatprep.mubr.msk.bf16.mxu1 %vm2732_vm0, %v2731_v1  ;;  %2396 = vmatprep.mubr.msk.bf16.mxu0 %vm2732_vm0, %v2731_v1 }
  0x4f   : > { %2365 = vmatmul.mubr.msk.bf16.gmra.mrb[28].mxu1 %vm301_vm1, %v2807_v6  ;;  %2397 = vmatmul.mubr.msk.bf16.gmra.mrb[28].mxu0 %vm301_vm1, %v2880_v19 }
  0x50   : > { %2368 = vmatprep.mubr.msk.bf16.mxu1 %vm2732_vm0, %v2731_v1  ;;  %2400 = vmatprep.mubr.msk.bf16.mxu0 %vm2732_vm0, %v2731_v1 }
  0x57   : > { %2369 = vmatmul.mubr.msk.bf16.gmra.mrb[32].mxu1 %vm301_vm1, %v2837_v12  ;;  %2401 = vmatmul.mubr.msk.bf16.gmra.mrb[32].mxu0 %vm301_vm1, %v2807_v6 }
  0x58   : > { %2372 = vmatprep.mubr.msk.bf16.mxu1 %vm2732_vm0, %v2731_v1  ;;  %2404 = vmatprep.mubr.msk.bf16.mxu0 %vm2732_vm0, %v2731_v1 }
  0x5f   : > { %2373 = vmatmul.mubr.msk.bf16.gmra.mrb[36].mxu1 %vm301_vm1, %v2859_v16  ;;  %2405 = vmatmul.mubr.msk.bf16.gmra.mrb[36].mxu0 %vm301_vm1, %v2837_v12 }
  0x60   : > { %2408 = vmatprep.mubr.msk.bf16.mxu0 %vm2732_vm0, %v2731_v1  ;;  %2420 = vmatprep.mubr.msk.bf16.mxu1 %vm2732_vm0, %v2731_v1 }
  0x67   : > { %2409 = vmatmul.mubr.msk.bf16.gmra.mrb[40].mxu0 %vm301_vm1, %v2859_v16  ;;  %2421 = vmatmul.mubr.msk.bf16.vlgmr.msra.gmra.mrb[40].mxu1 %vm301_vm1, %v2804_v5 }
  0x68   : > { %2424 = vmatprep.mubr.msk.bf16.mxu1 %vm2732_vm0, %v2731_v1  ;;  %2456 = vmatprep.mubr.msk.bf16.mxu0 %vm2732_vm0, %v2731_v1 }
  0x69   : > { %2485 = vmatpush3.bf16.msra.mxu1 %v2691_v28 }
  0x6a   : > { %2486 = vmatprep.subr.bf16.mxu1 %v2731_v1 }
  0x6d   : > { %2487 = vmatpush3.bf16.msra.mxu1 %v2693_v29 }
  0x6e   : > { %2488 = vmatprep.subr.bf16.mxu1 %v2731_v1 }
  0x6f   : > { %2425 = vmatmul.mubr.msk.bf16.gmra.mrb[44].mxu1 %vm301_vm1, %v2832_v11  ;;  %2457 = vmatmul.mubr.msk.bf16.vlgmr.msra.gmra.mrb[44].mxu0 %vm301_vm1, %v2804_v5 }
  0x70   : > { %2521 = vmatpush3.bf16.msra.mxu0 %v2692_v30  ;;  %2428 = vmatprep.mubr.msk.bf16.mxu1 %vm2732_vm0, %v2731_v1 }
  0x71   : > { %2460 = vmatprep.mubr.msk.bf16.mxu0 %vm2732_vm0, %v2731_v1  ;;  %2522 = vmatprep.subr.bf16.mxu0 %v2731_v1 }
  0x72   : > { %2489 = vmatpush3.bf16.msra.mxu1 %v2695_v31 }
  0x73   : > { %2490 = vmatprep.subr.bf16.mxu1 %v2731_v1 }
  0x74   : > { %2523 = vmatpush3.bf16.msra.mxu0 %v2694_v32 }
  0x75   : > { %2524 = vmatprep.subr.bf16.mxu0 %v2731_v1 }
  0x76   : > { %2491 = vmatpush3.bf16.msra.mxu1 %v2697_v33 }
  0x77   : > { %2429 = vmatmul.mubr.msk.bf16.gmra.mrb[48].mxu1 %vm301_vm1, %v2867_v18  ;;  %2461 = vmatmul.mubr.msk.bf16.gmra.mrb[48].mxu0 %vm301_vm1, %v2832_v11 }
  0x78   : > { %2432 = vmatprep.mubr.msk.bf16.mxu1 %vm2732_vm0, %v2731_v1  ;;  %2464 = vmatprep.mubr.msk.bf16.mxu0 %vm2732_vm0, %v2731_v1 }
  0x79   : > { %2525 = vmatpush3.bf16.msra.mxu0 %v2696_v34  ;;  %2556 = vmatprep.subr.bf16.mxu1 %v2731_v1 }
  0x7a   : > { %2526 = vmatprep.subr.bf16.mxu0 %v2731_v1 }
  0x7d   : > { %2527 = vmatpush3.bf16.msra.mxu0 %v2698_v35 }
  0x7e   : > { %2592 = vmatprep.subr.bf16.mxu0 %v2731_v1 }
  0x7f   : > { %2433 = vmatmul.mubr.msk.bf16.gmra.mrb[52].mxu1 %vm301_vm1, %v2880_v19  ;;  %2465 = vmatmul.mubr.msk.bf16.gmra.mrb[52].mxu0 %vm301_vm1, %v2867_v18 }
  0x80   : > { %2436 = vmatprep.mubr.msk.bf16.mxu1 %vm2732_vm0, %v2731_v1  ;;  %2468 = vmatprep.mubr.msk.bf16.mxu0 %vm2732_vm0, %v2731_v1 }
  0x87   : > { %2437 = vmatmul.mubr.msk.bf16.gmra.mrb[56].mxu1 %vm301_vm1, %v2807_v6  ;;  %2469 = vmatmul.mubr.msk.bf16.gmra.mrb[56].mxu0 %vm301_vm1, %v2880_v19 }
  0x88   : > { %2440 = vmatprep.mubr.msk.bf16.mxu1 %vm2732_vm0, %v2731_v1  ;;  %2472 = vmatprep.mubr.msk.bf16.mxu0 %vm2732_vm0, %v2731_v1 }
  0x8f   : > { %2441 = vmatmul.mubr.msk.bf16.gmra.mrb[60].mxu1 %vm301_vm1, %v2837_v12  ;;  %2473 = vmatmul.mubr.msk.bf16.gmra.mrb[60].mxu0 %vm301_vm1, %v2807_v6 }
  0x90   : > { %2444 = vmatprep.mubr.msk.bf16.mxu1 %vm2732_vm0, %v2731_v1  ;;  %2476 = vmatprep.mubr.msk.bf16.mxu0 %vm2732_vm0, %v2731_v1 }
  0x97   : > { %2445 = vmatmul.mubr.msk.bf16.gmra.mrb[64].mxu1 %vm301_vm1, %v2859_v16  ;;  %2477 = vmatmul.mubr.msk.bf16.gmra.mrb[64].mxu0 %vm301_vm1, %v2837_v12 }
  0x98   : > { %2480 = vmatprep.mubr.msk.bf16.mxu0 %vm2732_vm0, %v2731_v1  ;;  %2492 = vmatprep.mubr.msk.bf16.mxu1 %vm2732_vm0, %v2731_v1 }
  0x9f   : > { %2481 = vmatmul.mubr.msk.bf16.gmra.mrb[68].mxu0 %vm301_vm1, %v2859_v16  ;;  %2493 = vmatmul.mubr.msk.bf16.vlgmr.msra.gmra.mrb[68].mxu1 %vm301_vm1, %v2804_v5 }
  0xa0   : > { %2496 = vmatprep.mubr.msk.bf16.mxu1 %vm2732_vm0, %v2731_v1  ;;  %2528 = vmatprep.mubr.msk.bf16.mxu0 %vm2732_vm0, %v2731_v1 }
  0xa1   : > { %2557 = vmatpush3.bf16.msra.mxu1 %v2699_v36 }
  0xa2   : > { %2558 = vmatprep.subr.bf16.mxu1 %v2731_v1 }
  0xa5   : > { %2559 = vmatpush3.bf16.msra.mxu1 %v2701_v37 }
  0xa6   : > { %2560 = vmatprep.subr.bf16.mxu1 %v2731_v1 }
  0xa7   : > { %2497 = vmatmul.mubr.msk.bf16.gmra.mrb[72].mxu1 %vm301_vm1, %v2832_v11  ;;  %2529 = vmatmul.mubr.msk.bf16.vlgmr.msra.gmra.mrb[72].mxu0 %vm301_vm1, %v2804_v5 }
  0xa8   : > { %2593 = vmatpush3.bf16.msra.mxu0 %v2700_v38  ;;  %2500 = vmatprep.mubr.msk.bf16.mxu1 %vm2732_vm0, %v2731_v1 }
  0xa9   : > { %2532 = vmatprep.mubr.msk.bf16.mxu0 %vm2732_vm0, %v2731_v1  ;;  %2594 = vmatprep.subr.bf16.mxu0 %v2731_v1 }
  0xaa   : > { %2561 = vmatpush3.bf16.msra.mxu1 %v2703_v39 }
  0xab   : > { %2562 = vmatprep.subr.bf16.mxu1 %v2731_v1 }
  0xac   : > { %2595 = vmatpush3.bf16.msra.mxu0 %v2702_v40 }
  0xad   : > { %2596 = vmatprep.subr.bf16.mxu0 %v2731_v1 }
  0xae   : > { %2563 = vmatpush3.bf16.msra.mxu1 %v2705_v41 }
  0xaf   : > { %2501 = vmatmul.mubr.msk.bf16.gmra.mrb[76].mxu1 %vm301_vm1, %v2867_v18  ;;  %2533 = vmatmul.mubr.msk.bf16.gmra.mrb[76].mxu0 %vm301_vm1, %v2832_v11 }
  0xb0   : > { %2504 = vmatprep.mubr.msk.bf16.mxu1 %vm2732_vm0, %v2731_v1  ;;  %2536 = vmatprep.mubr.msk.bf16.mxu0 %vm2732_vm0, %v2731_v1 }
  0xb1   : > { %2597 = vmatpush3.bf16.msra.mxu0 %v2704_v42 }
  0xb2   : > { %2598 = vmatprep.subr.bf16.mxu0 %v2731_v1 }
  0xb5   : > { %2599 = vmatpush3.bf16.msra.mxu0 %v2706_v43 }
  0xb7   : > { %2505 = vmatmul.mubr.msk.bf16.gmra.mrb[80].mxu1 %vm301_vm1, %v2880_v19  ;;  %2537 = vmatmul.mubr.msk.bf16.gmra.mrb[80].mxu0 %vm301_vm1, %v2867_v18 }
  0xb8   : > { %2508 = vmatprep.mubr.msk.bf16.mxu1 %vm2732_vm0, %v2731_v1  ;;  %2540 = vmatprep.mubr.msk.bf16.mxu0 %vm2732_vm0, %v2731_v1 }
  0xbf   : > { %2509 = vmatmul.mubr.msk.bf16.gmra.mrb[84].mxu1 %vm301_vm1, %v2807_v6  ;;  %2541 = vmatmul.mubr.msk.bf16.gmra.mrb[84].mxu0 %vm301_vm1, %v2880_v19 }
  0xc0   : > { %2512 = vmatprep.mubr.msk.bf16.mxu1 %vm2732_vm0, %v2731_v1  ;;  %2544 = vmatprep.mubr.msk.bf16.mxu0 %vm2732_vm0, %v2731_v1 }
  0xc7   : > { %2513 = vmatmul.mubr.msk.bf16.gmra.mrb[88].mxu1 %vm301_vm1, %v2837_v12  ;;  %2545 = vmatmul.mubr.msk.bf16.gmra.mrb[88].mxu0 %vm301_vm1, %v2807_v6 }
  0xc8   : > { %2516 = vmatprep.mubr.msk.bf16.mxu1 %vm2732_vm0, %v2731_v1  ;;  %2548 = vmatprep.mubr.msk.bf16.mxu0 %vm2732_vm0, %v2731_v1 }
  0xcf   : > { %2517 = vmatmul.mubr.msk.bf16.gmra.mrb[92].mxu1 %vm301_vm1, %v2859_v16  ;;  %2549 = vmatmul.mubr.msk.bf16.gmra.mrb[92].mxu0 %vm301_vm1, %v2837_v12 }
  0xd0   : > { %2552 = vmatprep.mubr.msk.bf16.mxu0 %vm2732_vm0, %v2731_v1  ;;  %2564 = vmatprep.mubr.msk.bf16.mxu1 %vm2732_vm0, %v2731_v1 }
  0xd7   : > { %2553 = vmatmul.mubr.msk.bf16.gmra.mrb[96].mxu0 %vm301_vm1, %v2859_v16  ;;  %2565 = vmatmul.mubr.msk.bf16.vlgmr.msra.gmra.mrb[96].mxu1 %vm301_vm1, %v2804_v5 }
  0xd8   : > { %2568 = vmatprep.mubr.msk.bf16.mxu1 %vm2732_vm0, %v2731_v1  ;;  %2600 = vmatprep.mubr.msk.bf16.mxu0 %vm2732_vm0, %v2731_v1 }
  0xdf   : > { %2569 = vmatmul.mubr.msk.bf16.gmra.mrb[100].mxu1 %vm301_vm1, %v2832_v11  ;;  %2601 = vmatmul.mubr.msk.bf16.vlgmr.msra.gmra.mrb[100].mxu0 %vm301_vm1, %v2804_v5 }
  0xe0   : > { %2572 = vmatprep.mubr.msk.bf16.mxu1 %vm2732_vm0, %v2731_v1  ;;  %2604 = vmatprep.mubr.msk.bf16.mxu0 %vm2732_vm0, %v2731_v1 }
  0xe7   : > { %2573 = vmatmul.mubr.msk.bf16.gmra.mrb[104].mxu1 %vm301_vm1, %v2867_v18  ;;  %2605 = vmatmul.mubr.msk.bf16.gmra.mrb[104].mxu0 %vm301_vm1, %v2832_v11 }
  0xe8   : > { %2576 = vmatprep.mubr.msk.bf16.mxu1 %vm2732_vm0, %v2731_v1  ;;  %2608 = vmatprep.mubr.msk.bf16.mxu0 %vm2732_vm0, %v2731_v1 }
  0xea   : > { %v357_v44 = vpop.f32.mrb[0].mxu0  ;;  %v3168_v45 = vpop.f32.mrb[0].mxu1 }
  0xeb   : > { %v2314_v46 = vpop.f32.mrb[1].mxu0  ;;  %v2330_v47 = vpop.f32.mrb[1].mxu1 }
  0xec   : > { %v360_v48 = vpop.f32.mrb[2].mxu0  ;;  %v3170_v49 = vpop.f32.mrb[2].mxu1 }
  0xed   : > { %v2315_v50 = vpop.f32.mrb[3].mxu0  ;;  %v2331_v51 = vpop.f32.mrb[3].mxu1 }
  0xef   : > { %2577 = vmatmul.mubr.msk.bf16.gmra.mrb[108].mxu1 %vm301_vm1, %v2880_v19  ;;  %2609 = vmatmul.mubr.msk.bf16.gmra.mrb[108].mxu0 %vm301_vm1, %v2867_v18 }
  0xf0   : > { %2580 = vmatprep.mubr.msk.bf16.mxu1 %vm2732_vm0, %v2731_v1  ;;  %2612 = vmatprep.mubr.msk.bf16.mxu0 %vm2732_vm0, %v2731_v1 }
  0xf2   : > { %v365_v52 = vpop.f32.mrb[4].mxu0  ;;  %v397_v53 = vpop.f32.mrb[4].mxu1 }
  0xf3   : > { %v2318_v54 = vpop.f32.mrb[5].mxu0  ;;  %v2334_v55 = vpop.f32.mrb[5].mxu1 }
  0xf4   : > { %v3180_v56 = vpop.f32.mrb[6].mxu0  ;;  %v399_v57 = vpop.f32.mrb[6].mxu1 }
  0xf5   : > { %v2319_v58 = vpop.f32.mrb[7].mxu0  ;;  %v2335_v59 = vpop.f32.mrb[7].mxu1 }
  0xf7   : > { %2581 = vmatmul.mubr.msk.bf16.gmra.mrb[112].mxu1 %vm301_vm1, %v2807_v6  ;;  %2613 = vmatmul.mubr.msk.bf16.gmra.mrb[112].mxu0 %vm301_vm1, %v2880_v19 }
  0xf8   : > { %2584 = vmatprep.mubr.msk.bf16.mxu1 %vm2732_vm0, %v2731_v1  ;;  %2616 = vmatprep.mubr.msk.bf16.mxu0 %vm2732_vm0, %v2731_v1 }
  0xfa   : > { %v3190_v60 = vpop.f32.mrb[8].mxu0  ;;  %v403_v61 = vpop.f32.mrb[8].mxu1 }
  0xfb   : > { %v2322_v62 = vpop.f32.mrb[9].mxu0  ;;  %v2338_v63 = vpop.f32.mrb[9].mxu1 }
  0xfc   : > { %v3192_v0 = vpop.f32.mrb[10].mxu0  ;;  %v405_v2 = vpop.f32.mrb[10].mxu1 }
  0xfd   : > { %v2323_v3 = vpop.f32.mrb[11].mxu0  ;;  %v2339_v4 = vpop.f32.mrb[11].mxu1 }
  0xff   : > { %2585 = vmatmul.mubr.msk.bf16.gmra.mrb[116].mxu1 %vm301_vm1, %v2837_v12  ;;  %2617 = vmatmul.mubr.msk.bf16.gmra.mrb[116].mxu0 %vm301_vm1, %v2807_v6 }
 0x100   : > { %2588 = vmatprep.mubr.msk.bf16.mxu1 %vm2732_vm0, %v2731_v1  ;;  %2620 = vmatprep.mubr.msk.bf16.mxu0 %vm2732_vm0, %v2731_v1 }
 0x102   : > { %v3202_v5 = vpop.f32.mrb[12].mxu0  ;;  %v485_v7 = vpop.f32.mrb[12].mxu1 }
 0x103   : > { %v549_v8 = vrot.slane %v485_v7, 1  ;;  %v2326_v9 = vpop.f32.mrb[13].mxu0  ;;  %v2350_v10 = vpop.f32.mrb[13].mxu1 }
 0x104   : > { %v3204_v11 = vpop.f32.mrb[14].mxu0  ;;  %v488_v13 = vpop.f32.mrb[14].mxu1 }
 0x105   : > { %v550_v14 = vrot.slane %v488_v13, 1  ;;  %v2327_v15 = vpop.f32.mrb[15].mxu0  ;;  %v2351_v17 = vpop.f32.mrb[15].mxu1 }
 0x107   : > { %v551_v6 = vsel %vm548_vm2, %v549_v8, %v550_v14  ;;  %2589 = vmatmul.mubr.msk.bf16.gmra.mrb[120].mxu1 %vm301_vm1, %v2859_v16  ;;  %2621 = vmatmul.mubr.msk.bf16.gmra.mrb[120].mxu0 %vm301_vm1, %v2837_v12 }
 0x108   : > { %v580_v18 = vadd.f32 %v551_v6, %v357_v44  ;;  %2624 = vmatprep.mubr.msk.bf16.mxu0 %vm2732_vm0, %v2731_v1 }
 0x10a   : > { %v493_v19 = vpop.f32.mrb[16].mxu1  ;;  %v657_v20 = vpop.f32.mrb[16].mxu0 }
 0x10b   : > { %v552_v21 = vrot.slane %v493_v19, 1  ;;  %v2354_v22 = vpop.f32.mrb[17].mxu1  ;;  %v2386_v23 = vpop.f32.mrb[17].mxu0  ;;  %v721_v27 = vrot.slane %v657_v20, 2 }
 0x10c   : > { %v496_v24 = vpop.f32.mrb[18].mxu1  ;;  %v660_v25 = vpop.f32.mrb[18].mxu0 }
 0x10d   : > { %v553_v26 = vsel %vm548_vm2, %v550_v14, %v552_v21  ;;  %v554_v28 = vrot.slane %v496_v24, 1  ;;  %v722_v29 = vrot.slane %v660_v25, 2  ;;  %v2387_v30 = vpop.f32.mrb[19].mxu0  ;;  %v2355_v31 = vpop.f32.mrb[19].mxu1 }
 0x10e   : > { %v581_v12 = vadd.f32 %v553_v26, %v360_v48 }
 0x10f   : > { %v555_v32 = vsel %vm548_vm2, %v552_v21, %v554_v28  ;;  %v723_v1 = vsel %vm720_vm3, %v721_v27, %v722_v29  ;;  %2625 = vmatmul.mubr.msk.bf16.gmra.mrb[124].mxu0 %vm301_vm1, %v2859_v16 }
 0x110   : > { %v582_v33 = vadd.f32 %v555_v32, %v365_v52  ;;  %v3218_v34 = vadd.f32 %v723_v1, %v580_v18 }
 0x112   : > { %v501_v35 = vpop.f32.mrb[20].mxu1  ;;  %v665_v36 = vpop.f32.mrb[20].mxu0 }
 0x113   : > { %v556_v37 = vrot.slane %v501_v35, 1  ;;  %v724_v38 = vrot.slane %v665_v36, 2  ;;  %v2358_v39 = vpop.f32.mrb[21].mxu1  ;;  %v2390_v40 = vpop.f32.mrb[21].mxu0 }
 0x114   : > { %v504_v41 = vpop.f32.mrb[22].mxu1  ;;  %v668_v42 = vpop.f32.mrb[22].mxu0 }
 0x115   : > { %v557_v43 = vsel %vm548_vm2, %v554_v28, %v556_v37  ;;  %v725_v44 = vsel %vm720_vm3, %v722_v29, %v724_v38  ;;  %v558_v46 = vrot.slane %v504_v41, 1  ;;  %v726_v47 = vrot.slane %v668_v42, 2  ;;  %v2391_v48 = vpop.f32.mrb[23].mxu0  ;;  %v2359_v50 = vpop.f32.mrb[23].mxu1 }
 0x116   : > { %v583_v16 = vadd.f32 %v557_v43, %v3180_v56  ;;  %v3223_v51 = vadd.f32 %v725_v44, %v581_v12 }
 0x117   : > { %v559_v52 = vsel %vm548_vm2, %v556_v37, %v558_v46  ;;  %v727_v53 = vsel %vm720_vm3, %v724_v38, %v726_v47 }
 0x118   : > { %v584_v54 = vadd.f32 %v559_v52, %v3190_v60  ;;  %v3228_v55 = vadd.f32 %v727_v53, %v582_v33 }
 0x11a   : > { %v509_v57 = vpop.f32.mrb[24].mxu1  ;;  %v673_v58 = vpop.f32.mrb[24].mxu0 }
 0x11b   : > { %v560_v59 = vrot.slane %v509_v57, 1  ;;  %v728_v61 = vrot.slane %v673_v58, 2  ;;  %v2362_v62 = vpop.f32.mrb[25].mxu1  ;;  %v2394_v63 = vpop.f32.mrb[25].mxu0 }
 0x11c   : > { %v512_v2 = vpop.f32.mrb[26].mxu1  ;;  %v676_v3 = vpop.f32.mrb[26].mxu0 }
 0x11d   : > { %v561_v56 = vsel %vm548_vm2, %v558_v46, %v560_v59  ;;  %v729_v4 = vsel %vm720_vm3, %v726_v47, %v728_v61  ;;  %v562_v7 = vrot.slane %v512_v2, 1  ;;  %v730_v8 = vrot.slane %v676_v3, 2  ;;  %v2395_v9 = vpop.f32.mrb[27].mxu0  ;;  %v2363_v10 = vpop.f32.mrb[27].mxu1 }
 0x11e   : > { %v585_v60 = vadd.f32 %v561_v56, %v3192_v0  ;;  %v3233_v13 = vadd.f32 %v729_v4, %v583_v16 }
 0x11f   : > { %v563_v14 = vsel %vm548_vm2, %v560_v59, %v562_v7  ;;  %v731_v15 = vsel %vm720_vm3, %v728_v61, %v730_v8 }
 0x120   : > { %v586_v17 = vadd.f32 %v563_v14, %v3202_v5  ;;  %v3238_v6 = vadd.f32 %v731_v15, %v584_v54 }
 0x122   : > { %v517_v18 = vpop.f32.mrb[28].mxu1  ;;  %v681_v19 = vpop.f32.mrb[28].mxu0 }
 0x123   : > { %v564_v20 = vrot.slane %v517_v18, 1  ;;  %v732_v21 = vrot.slane %v681_v19, 2  ;;  %v2366_v22 = vpop.f32.mrb[29].mxu1  ;;  %v2398_v23 = vpop.f32.mrb[29].mxu0 }
 0x124   : > { %v520_v24 = vpop.f32.mrb[30].mxu1  ;;  %v684_v25 = vpop.f32.mrb[30].mxu0 }
 0x125   : > { %v565_v0 = vsel %vm548_vm2, %v562_v7, %v564_v20  ;;  %v733_v26 = vsel %vm720_vm3, %v730_v8, %v732_v21  ;;  %v566_v27 = vrot.slane %v520_v24, 1  ;;  %v734_v28 = vrot.slane %v684_v25, 2  ;;  %v2399_v29 = vpop.f32.mrb[31].mxu0  ;;  %v2367_v30 = vpop.f32.mrb[31].mxu1 }
 0x126   : > { %v587_v5 = vadd.f32 %v565_v0, %v3204_v11  ;;  %v3243_v31 = vadd.f32 %v733_v26, %v585_v60 }
 0x127   : > { %v567_v12 = vsel %vm548_vm2, %v564_v20, %v566_v27  ;;  %v735_v32 = vsel %vm720_vm3, %v732_v21, %v734_v28 }
 0x128   : > { %v588_v1 = vadd.f32 %v567_v12, %v3168_v45  ;;  %v3248_v33 = vadd.f32 %v735_v32, %v586_v17 }
 0x12a   : > { %v525_v35 = vpop.f32.mrb[32].mxu1  ;;  %v689_v36 = vpop.f32.mrb[32].mxu0 }
 0x12b   : > { %v568_v37 = vrot.slane %v525_v35, 1  ;;  %v736_v38 = vrot.slane %v689_v36, 2  ;;  %v2402_v39 = vpop.f32.mrb[33].mxu0  ;;  %v2370_v40 = vpop.f32.mrb[33].mxu1 }
 0x12c   : > { %v692_v41 = vpop.f32.mrb[34].mxu0  ;;  %v528_v42 = vpop.f32.mrb[34].mxu1 }
 0x12d   : > { %v569_v11 = vsel %vm548_vm2, %v566_v27, %v568_v37  ;;  %v737_v43 = vsel %vm720_vm3, %v734_v28, %v736_v38  ;;  %v738_v44 = vrot.slane %v692_v41, 2  ;;  %v2403_v46 = vpop.f32.mrb[35].mxu0  ;;  %v2371_v47 = vpop.f32.mrb[35].mxu1 }
 0x12e   : > { %v589_v48 = vadd.f32 %v569_v11, %v3170_v49  ;;  %v3253_v45 = vadd.f32 %v737_v43, %v587_v5 }
 0x12f   : > { %v739_v50 = vsel %vm720_vm3, %v736_v38, %v738_v44 }
 0x130   : > { %v3256_v16 = vadd.f32 %v739_v50, %v588_v1 }
 0x132   : > { %v697_v52 = vpop.f32.mrb[36].mxu0  ;;  %v532_v53 = vpop.f32.mrb[36].mxu1 }
 0x133   : > { %v740_v54 = vrot.slane %v697_v52, 2  ;;  %v2406_v57 = vpop.f32.mrb[37].mxu0  ;;  %v2374_v58 = vpop.f32.mrb[37].mxu1 }
 0x134   : > { %v700_v59 = vpop.f32.mrb[38].mxu0  ;;  %v534_v61 = vpop.f32.mrb[38].mxu1 }
 0x135   : > { %v741_v62 = vsel %vm720_vm3, %v738_v44, %v740_v54  ;;  %v2407_v63 = vpop.f32.mrb[39].mxu0  ;;  %v2375_v2 = vpop.f32.mrb[39].mxu1 }
 0x136   : > { %v3259_v3 = vadd.f32 %v741_v62, %v589_v48 }
 0x13a   : > { %v704_v49 = vpop.f32.mrb[40].mxu0  ;;  %v829_v56 = vpop.f32.mrb[40].mxu1 }
 0x13b   : > { %v2410_v4 = vpop.f32.mrb[41].mxu0  ;;  %v2422_v7 = vpop.f32.mrb[41].mxu1 }
 0x13c   : > { %v706_v8 = vpop.f32.mrb[42].mxu0  ;;  %v831_v9 = vpop.f32.mrb[42].mxu1 }
 0x13d   : > { %v2411_v10 = vpop.f32.mrb[43].mxu0  ;;  %v2423_v60 = vpop.f32.mrb[43].mxu1  ;;  %v892_v17 = vrot.slane %v831_v9, 2 }
 0x142   : > { %v836_v14 = vpop.f32.mrb[44].mxu1  ;;  %v1000_v15 = vpop.f32.mrb[44].mxu0 }
 0x143   : > { %v893_v18 = vrot.slane %v836_v14, 2  ;;  %v2426_v19 = vpop.f32.mrb[45].mxu1  ;;  %v2458_v20 = vpop.f32.mrb[45].mxu0 }
 0x144   : > { %v839_v21 = vpop.f32.mrb[46].mxu1  ;;  %v1002_v22 = vpop.f32.mrb[46].mxu0 }
 0x145   : > { %v894_v23 = vsel %vm720_vm3, %v892_v17, %v893_v18  ;;  %v895_v24 = vrot.slane %v839_v21, 2  ;;  %v2459_v25 = vpop.f32.mrb[47].mxu0  ;;  %v2427_v0 = vpop.f32.mrb[47].mxu1  ;;  %v1064_v5 = vrot.slane %v1002_v22, 3 }
 0x146   : > { %v923_v26 = vadd.f32 %v894_v23, %v3218_v34 }
 0x147   : > { %v896_v27 = vsel %vm720_vm3, %v893_v18, %v895_v24 }
 0x148   : > { %v924_v28 = vadd.f32 %v896_v27, %v3223_v51 }
 0x14a   : > { %v844_v29 = vpop.f32.mrb[48].mxu1  ;;  %v1007_v30 = vpop.f32.mrb[48].mxu0 }
 0x14b   : > { %v897_v12 = vrot.slane %v844_v29, 2  ;;  %v1065_v32 = vrot.slane %v1007_v30, 3  ;;  %v2430_v1 = vpop.f32.mrb[49].mxu1  ;;  %v2462_v35 = vpop.f32.mrb[49].mxu0 }
 0x14c   : > { %v847_v36 = vpop.f32.mrb[50].mxu1  ;;  %v1010_v37 = vpop.f32.mrb[50].mxu0 }
 0x14d   : > { %v898_v38 = vsel %vm720_vm3, %v895_v24, %v897_v12  ;;  %v1066_v39 = vsel %vm1063_vm4, %v1064_v5, %v1065_v32  ;;  %v899_v40 = vrot.slane %v847_v36, 2  ;;  %v1067_v34 = vrot.slane %v1010_v37, 3  ;;  %v2463_v41 = vpop.f32.mrb[51].mxu0  ;;  %v2431_v42 = vpop.f32.mrb[51].mxu1 }
 0x14e   : > { %v925_v51 = vadd.f32 %v898_v38, %v3228_v55  ;;  %v3268_v11 = vadd.f32 %v1066_v39, %v923_v26 }
 0x14f   : > { %v900_v43 = vsel %vm720_vm3, %v897_v12, %v899_v40  ;;  %v1068_v44 = vsel %vm1063_vm4, %v1065_v32, %v1067_v34 }
 0x150   : > { %v926_v46 = vadd.f32 %v900_v43, %v3233_v13  ;;  %v3273_v47 = vadd.f32 %v1068_v44, %v924_v28 }
 0x152   : > { %v852_v48 = vpop.f32.mrb[52].mxu1  ;;  %v1015_v50 = vpop.f32.mrb[52].mxu0 }
 0x153   : > { %v901_v52 = vrot.slane %v852_v48, 2  ;;  %v1069_v53 = vrot.slane %v1015_v50, 3  ;;  %v2434_v54 = vpop.f32.mrb[53].mxu1  ;;  %v2466_v57 = vpop.f32.mrb[53].mxu0 }
 0x154   : > { %v855_v58 = vpop.f32.mrb[54].mxu1  ;;  %v1018_v59 = vpop.f32.mrb[54].mxu0 }
 0x155   : > { %v902_v55 = vsel %vm720_vm3, %v899_v40, %v901_v52  ;;  %v1070_v61 = vsel %vm1063_vm4, %v1067_v34, %v1069_v53  ;;  %v903_v62 = vrot.slane %v855_v58, 2  ;;  %v1071_v63 = vrot.slane %v1018_v59, 3  ;;  %v2467_v2 = vpop.f32.mrb[55].mxu0  ;;  %v2435_v49 = vpop.f32.mrb[55].mxu1 }
 0x156   : > { %v927_v13 = vadd.f32 %v902_v55, %v3238_v6  ;;  %v3278_v56 = vadd.f32 %v1070_v61, %v925_v51 }
 0x157   : > { %v904_v4 = vsel %vm720_vm3, %v901_v52, %v903_v62  ;;  %v1072_v7 = vsel %vm1063_vm4, %v1069_v53, %v1071_v63 }
 0x158   : > { %v928_v8 = vadd.f32 %v904_v4, %v3243_v31  ;;  %v3283_v9 = vadd.f32 %v1072_v7, %v926_v46 }
 0x15a   : > { %v860_v10 = vpop.f32.mrb[56].mxu1  ;;  %v1023_v60 = vpop.f32.mrb[56].mxu0 }
 0x15b   : > { %v905_v14 = vrot.slane %v860_v10, 2  ;;  %v1073_v15 = vrot.slane %v1023_v60, 3  ;;  %v2438_v17 = vpop.f32.mrb[57].mxu1  ;;  %v2470_v18 = vpop.f32.mrb[57].mxu0 }
 0x15c   : > { %v863_v19 = vpop.f32.mrb[58].mxu1  ;;  %v1026_v20 = vpop.f32.mrb[58].mxu0 }
 0x15d   : > { %v906_v6 = vsel %vm720_vm3, %v903_v62, %v905_v14  ;;  %v1074_v21 = vsel %vm1063_vm4, %v1071_v63, %v1073_v15  ;;  %v907_v22 = vrot.slane %v863_v19, 2  ;;  %v1075_v23 = vrot.slane %v1026_v20, 3  ;;  %v2471_v24 = vpop.f32.mrb[59].mxu0  ;;  %v2439_v25 = vpop.f32.mrb[59].mxu1 }
 0x15e   : > { %v929_v31 = vadd.f32 %v906_v6, %v3248_v33  ;;  %v3288_v0 = vadd.f32 %v1074_v21, %v927_v13 }
 0x15f   : > { %v908_v26 = vsel %vm720_vm3, %v905_v14, %v907_v22  ;;  %v1076_v27 = vsel %vm1063_vm4, %v1073_v15, %v1075_v23 }
 0x160   : > { %v930_v28 = vadd.f32 %v908_v26, %v3253_v45  ;;  %v3293_v29 = vadd.f32 %v1076_v27, %v928_v8 }
 0x162   : > { %v868_v30 = vpop.f32.mrb[60].mxu1  ;;  %v1031_v5 = vpop.f32.mrb[60].mxu0 }
 0x163   : > { %v909_v12 = vrot.slane %v868_v30, 2  ;;  %v1077_v32 = vrot.slane %v1031_v5, 3  ;;  %v2442_v1 = vpop.f32.mrb[61].mxu1  ;;  %v2474_v35 = vpop.f32.mrb[61].mxu0 }
 0x164   : > { %v871_v36 = vpop.f32.mrb[62].mxu1  ;;  %v1034_v37 = vpop.f32.mrb[62].mxu0 }
 0x165   : > { %v910_v33 = vsel %vm720_vm3, %v907_v22, %v909_v12  ;;  %v1078_v38 = vsel %vm1063_vm4, %v1075_v23, %v1077_v32  ;;  %v911_v39 = vrot.slane %v871_v36, 2  ;;  %v1079_v40 = vrot.slane %v1034_v37, 3  ;;  %v2475_v34 = vpop.f32.mrb[63].mxu0  ;;  %v2443_v41 = vpop.f32.mrb[63].mxu1 }
 0x166   : > { %v931_v45 = vadd.f32 %v910_v33, %v3256_v16  ;;  %v3298_v42 = vadd.f32 %v1078_v38, %v929_v31 }
 0x167   : > { %v912_v51 = vsel %vm720_vm3, %v909_v12, %v911_v39  ;;  %v1080_v43 = vsel %vm1063_vm4, %v1077_v32, %v1079_v40 }
 0x168   : > { %v932_v44 = vadd.f32 %v912_v51, %v3259_v3  ;;  %v3303_v46 = vadd.f32 %v1080_v43, %v930_v28 }
 0x16a   : > { %v1039_v48 = vpop.f32.mrb[64].mxu0  ;;  %v876_v50 = vpop.f32.mrb[64].mxu1 }
 0x16b   : > { %v1081_v52 = vrot.slane %v1039_v48, 3  ;;  %v2478_v53 = vpop.f32.mrb[65].mxu0  ;;  %v2446_v54 = vpop.f32.mrb[65].mxu1 }
 0x16c   : > { %v1042_v57 = vpop.f32.mrb[66].mxu0  ;;  %v878_v58 = vpop.f32.mrb[66].mxu1 }
 0x16d   : > { %v1082_v59 = vsel %vm1063_vm4, %v1079_v40, %v1081_v52  ;;  %v1083_v16 = vrot.slane %v1042_v57, 3  ;;  %v2479_v55 = vpop.f32.mrb[67].mxu0  ;;  %v2447_v61 = vpop.f32.mrb[67].mxu1 }
 0x16e   : > { %v3306_v62 = vadd.f32 %v1082_v59, %v931_v45 }
 0x16f   : > { %v1084_v63 = vsel %vm1063_vm4, %v1081_v52, %v1083_v16 }
 0x170   : > { %v3309_v2 = vadd.f32 %v1084_v63, %v932_v44 }
 0x172   : > { %v1047_v3 = vpop.f32.mrb[68].mxu0  ;;  %v1172_v49 = vpop.f32.mrb[68].mxu1 }
 0x173   : > { %v2482_v13 = vpop.f32.mrb[69].mxu0  ;;  %v2494_v4 = vpop.f32.mrb[69].mxu1 }
 0x174   : > { %v1049_v7 = vpop.f32.mrb[70].mxu0  ;;  %v1174_v8 = vpop.f32.mrb[70].mxu1 }
 0x175   : > { %v2483_v10 = vpop.f32.mrb[71].mxu0  ;;  %v2495_v60 = vpop.f32.mrb[71].mxu1  ;;  %v1236_v17 = vrot.slane %v1174_v8, 4 }
 0x17a   : > { %v1179_v14 = vpop.f32.mrb[72].mxu1  ;;  %v1344_v15 = vpop.f32.mrb[72].mxu0 }
 0x17b   : > { %v1237_v18 = vrot.slane %v1179_v14, 4  ;;  %v2498_v19 = vpop.f32.mrb[73].mxu1  ;;  %v2530_v20 = vpop.f32.mrb[73].mxu0 }
 0x17c   : > { %v1182_v6 = vpop.f32.mrb[74].mxu1  ;;  %v1346_v21 = vpop.f32.mrb[74].mxu0 }
 0x17d   : > { %v1238_v22 = vsel %vm1235_vm5, %v1236_v17, %v1237_v18  ;;  %v1239_v23 = vrot.slane %v1182_v6, 4  ;;  %v2531_v24 = vpop.f32.mrb[75].mxu0  ;;  %v2499_v25 = vpop.f32.mrb[75].mxu1 }
 0x17e   : > { %v1267_v31 = vadd.f32 %v1238_v22, %v3268_v11 }
 0x17f   : > { %v1240_v26 = vsel %vm1235_vm5, %v1237_v18, %v1239_v23 }
 0x180   : > { %v1268_v27 = vadd.f32 %v1240_v26, %v3273_v47 }
 0x182   : > { %v1187_v28 = vpop.f32.mrb[76].mxu1  ;;  %v1350_v30 = vpop.f32.mrb[76].mxu0 }
 0x183   : > { %v1241_v5 = vrot.slane %v1187_v28, 4  ;;  %v2502_v12 = vpop.f32.mrb[77].mxu1  ;;  %v2534_v32 = vpop.f32.mrb[77].mxu0  ;;  %v1407_v37 = vrot.slane %v1350_v30, 4 }
 0x184   : > { %v1190_v1 = vpop.f32.mrb[78].mxu1  ;;  %v1353_v35 = vpop.f32.mrb[78].mxu0 }
 0x185   : > { %v1242_v36 = vsel %vm1235_vm5, %v1239_v23, %v1241_v5  ;;  %v1243_v33 = vrot.slane %v1190_v1, 4  ;;  %v1408_v38 = vrot.slane %v1353_v35, 4  ;;  %v2535_v39 = vpop.f32.mrb[79].mxu0  ;;  %v2503_v40 = vpop.f32.mrb[79].mxu1 }
 0x186   : > { %v1269_v11 = vadd.f32 %v1242_v36, %v3278_v56 }
 0x187   : > { %v1244_v34 = vsel %vm1235_vm5, %v1241_v5, %v1243_v33  ;;  %v1409_v47 = vsel %vm1235_vm5, %v1407_v37, %v1408_v38 }
 0x188   : > { %v1270_v41 = vadd.f32 %v1244_v34, %v3283_v9  ;;  %v3320_v45 = vadd.f32 %v1409_v47, %v1267_v31 }
 0x18a   : > { %v1195_v51 = vpop.f32.mrb[80].mxu1  ;;  %v1358_v43 = vpop.f32.mrb[80].mxu0 }
 0x18b   : > { %v1245_v44 = vrot.slane %v1195_v51, 4  ;;  %v1410_v48 = vrot.slane %v1358_v43, 4  ;;  %v2506_v50 = vpop.f32.mrb[81].mxu1  ;;  %v2538_v52 = vpop.f32.mrb[81].mxu0 }
 0x18c   : > { %v1198_v53 = vpop.f32.mrb[82].mxu1  ;;  %v1361_v54 = vpop.f32.mrb[82].mxu0 }
 0x18d   : > { %v1246_v57 = vsel %vm1235_vm5, %v1243_v33, %v1245_v44  ;;  %v1411_v56 = vsel %vm1235_vm5, %v1408_v38, %v1410_v48  ;;  %v1247_v58 = vrot.slane %v1198_v53, 4  ;;  %v1412_v59 = vrot.slane %v1361_v54, 4  ;;  %v2539_v16 = vpop.f32.mrb[83].mxu0  ;;  %v2507_v55 = vpop.f32.mrb[83].mxu1 }
 0x18e   : > { %v1271_v9 = vadd.f32 %v1246_v57, %v3288_v0  ;;  %v3325_v61 = vadd.f32 %v1411_v56, %v1268_v27 }
 0x18f   : > { %v1248_v63 = vsel %vm1235_vm5, %v1245_v44, %v1247_v58  ;;  %v1413_v3 = vsel %vm1235_vm5, %v1410_v48, %v1412_v59 }
 0x190   : > { %v1272_v49 = vadd.f32 %v1248_v63, %v3293_v29  ;;  %v3330_v13 = vadd.f32 %v1413_v3, %v1269_v11 }
 0x192   : > { %v1203_v4 = vpop.f32.mrb[84].mxu1  ;;  %v1366_v7 = vpop.f32.mrb[84].mxu0 }
 0x193   : > { %v1249_v8 = vrot.slane %v1203_v4, 4  ;;  %v1414_v10 = vrot.slane %v1366_v7, 4  ;;  %v2510_v60 = vpop.f32.mrb[85].mxu1  ;;  %v2542_v14 = vpop.f32.mrb[85].mxu0 }
 0x194   : > { %v1206_v15 = vpop.f32.mrb[86].mxu1  ;;  %v1369_v17 = vpop.f32.mrb[86].mxu0 }
 0x195   : > { %v1250_v0 = vsel %vm1235_vm5, %v1247_v58, %v1249_v8  ;;  %v1415_v18 = vsel %vm1235_vm5, %v1412_v59, %v1414_v10  ;;  %v1251_v19 = vrot.slane %v1206_v15, 4  ;;  %v1416_v20 = vrot.slane %v1369_v17, 4  ;;  %v2543_v6 = vpop.f32.mrb[87].mxu0  ;;  %v2511_v21 = vpop.f32.mrb[87].mxu1 }
 0x196   : > { %v1273_v29 = vadd.f32 %v1250_v0, %v3298_v42  ;;  %v3335_v22 = vadd.f32 %v1415_v18, %v1270_v41 }
 0x197   : > { %v1252_v23 = vsel %vm1235_vm5, %v1249_v8, %v1251_v19  ;;  %v1417_v24 = vsel %vm1235_vm5, %v1414_v10, %v1416_v20 }
 0x198   : > { %v1274_v25 = vadd.f32 %v1252_v23, %v3303_v46  ;;  %v3340_v31 = vadd.f32 %v1417_v24, %v1271_v9 }
 0x19a   : > { %v1211_v26 = vpop.f32.mrb[88].mxu1  ;;  %v1374_v27 = vpop.f32.mrb[88].mxu0 }
 0x19b   : > { %v1253_v28 = vrot.slane %v1211_v26, 4  ;;  %v1418_v30 = vrot.slane %v1374_v27, 4  ;;  %v2514_v5 = vpop.f32.mrb[89].mxu1  ;;  %v2546_v12 = vpop.f32.mrb[89].mxu0 }
 0x19c   : > { %v1214_v32 = vpop.f32.mrb[90].mxu1  ;;  %v1377_v1 = vpop.f32.mrb[90].mxu0 }
 0x19d   : > { %v1254_v42 = vsel %vm1235_vm5, %v1251_v19, %v1253_v28  ;;  %v1419_v35 = vsel %vm1235_vm5, %v1416_v20, %v1418_v30  ;;  %v1255_v36 = vrot.slane %v1214_v32, 4  ;;  %v1420_v37 = vrot.slane %v1377_v1, 4  ;;  %v2547_v33 = vpop.f32.mrb[91].mxu0  ;;  %v2515_v38 = vpop.f32.mrb[91].mxu1 }
 0x19e   : > { %v1275_v46 = vadd.f32 %v1254_v42, %v3306_v62  ;;  %v3345_v39 = vadd.f32 %v1419_v35, %v1272_v49 }
 0x19f   : > { %v1256_v40 = vsel %vm1235_vm5, %v1253_v28, %v1255_v36  ;;  %v1421_v11 = vsel %vm1235_vm5, %v1418_v30, %v1420_v37 }
 0x1a0   : > { %v1276_v34 = vadd.f32 %v1256_v40, %v3309_v2  ;;  %v3350_v47 = vadd.f32 %v1421_v11, %v1273_v29 }
 0x1a2   : > { %v1382_v41 = vpop.f32.mrb[92].mxu0  ;;  %v1219_v51 = vpop.f32.mrb[92].mxu1 }
 0x1a3   : > { %v1422_v43 = vrot.slane %v1382_v41, 4  ;;  %v2550_v44 = vpop.f32.mrb[93].mxu0  ;;  %v2518_v48 = vpop.f32.mrb[93].mxu1 }
 0x1a4   : > { %v1385_v50 = vpop.f32.mrb[94].mxu0  ;;  %v1221_v52 = vpop.f32.mrb[94].mxu1 }
 0x1a5   : > { %v1423_v53 = vsel %vm1235_vm5, %v1420_v37, %v1422_v43  ;;  %v1424_v62 = vrot.slane %v1385_v50, 4  ;;  %v2551_v54 = vpop.f32.mrb[95].mxu0  ;;  %v2519_v57 = vpop.f32.mrb[95].mxu1 }
 0x1a6   : > { %v3353_v56 = vadd.f32 %v1423_v53, %v1274_v25 }
 0x1a7   : > { %v1425_v58 = vsel %vm1235_vm5, %v1422_v43, %v1424_v62 }
 0x1a8   : > { %v3356_v59 = vadd.f32 %v1425_v58, %v1275_v46 }
 0x1aa   : > { %v1390_v2 = vpop.f32.mrb[96].mxu0  ;;  %v1515_v16 = vpop.f32.mrb[96].mxu1 }
 0x1ab   : > { %v1426_v55 = vrot.slane %v1390_v2, 4  ;;  %v2554_v9 = vpop.f32.mrb[97].mxu0  ;;  %v2566_v63 = vpop.f32.mrb[97].mxu1 }
 0x1ac   : > { %v1393_v3 = vpop.f32.mrb[98].mxu0  ;;  %v1517_v49 = vpop.f32.mrb[98].mxu1 }
 0x1ad   : > { %v1427_v4 = vsel %vm1235_vm5, %v1424_v62, %v1426_v55  ;;  %v2555_v7 = vpop.f32.mrb[99].mxu0  ;;  %v2567_v8 = vpop.f32.mrb[99].mxu1 }
 0x1ae   : > { %v3359_v10 = vadd.f32 %v1427_v4, %v1276_v34  ;;  %v3371_v34 = vld [vmem:[%s3428_s2] ss:$0 sm:$0xff] }
 0x1b2   : > { %v1521_v60 = vpop.f32.mrb[100].mxu1  ;;  %v1687_v14 = vpop.f32.mrb[100].mxu0 }
 0x1b3   : > { %v1579_v15 = vrot.slane %v1521_v60, 5  ;;  %v2570_v17 = vpop.f32.mrb[101].mxu1  ;;  %v2602_v0 = vpop.f32.mrb[101].mxu0 }
 0x1b4   : > { %v1524_v18 = vpop.f32.mrb[102].mxu1  ;;  %v1689_v19 = vpop.f32.mrb[102].mxu0 }
 0x1b5   : > { %v1580_v20 = vrot.slane %v1524_v18, 5  ;;  %v2603_v6 = vpop.f32.mrb[103].mxu0  ;;  %v2571_v21 = vpop.f32.mrb[103].mxu1 }
 0x1b7   : > { %v1581_v29 = vsel %vm1578_vm6, %v1579_v15, %v1580_v20 }
 0x1b8   : > { %v1610_v23 = vadd.f32 %v1581_v29, %v3320_v45 }
 0x1ba   : > { %v1529_v24 = vpop.f32.mrb[104].mxu1  ;;  %v1693_v25 = vpop.f32.mrb[104].mxu0 }
 0x1bb   : > { %v1582_v26 = vrot.slane %v1529_v24, 5  ;;  %v2574_v27 = vpop.f32.mrb[105].mxu1  ;;  %v2606_v28 = vpop.f32.mrb[105].mxu0  ;;  %v1751_v32 = vrot.slane %v1693_v25, 6 }
 0x1bc   : > { %v1532_v30 = vpop.f32.mrb[106].mxu1  ;;  %v1696_v5 = vpop.f32.mrb[106].mxu0 }
 0x1bd   : > { %v1583_v12 = vsel %vm1578_vm6, %v1580_v20, %v1582_v26  ;;  %v1584_v1 = vrot.slane %v1532_v30, 5  ;;  %v1752_v42 = vrot.slane %v1696_v5, 6  ;;  %v2607_v35 = vpop.f32.mrb[107].mxu0  ;;  %v2575_v36 = vpop.f32.mrb[107].mxu1 }
 0x1be   : > { %v1611_v37 = vadd.f32 %v1583_v12, %v3325_v61 }
 0x1bf   : > { %v1585_v33 = vsel %vm1578_vm6, %v1582_v26, %v1584_v1  ;;  %v1753_v45 = vsel %vm1750_vm7, %v1751_v32, %v1752_v42 }
 0x1c0   : > { %v1612_v38 = vadd.f32 %v1585_v33, %v3330_v13  ;;  %v1782_v46 = vadd.f32 %v1753_v45, %v1610_v23 }
 0x1c2   : > { %v1537_v40 = vpop.f32.mrb[108].mxu1  ;;  %v1701_v11 = vpop.f32.mrb[108].mxu0  ;;  %v1799_v57 = vadd.f32 %v3371_v34, %v1782_v46 }
 0x1c3   : > { %v1586_v41 = vrot.slane %v1537_v40, 5  ;;  %v1754_v51 = vrot.slane %v1701_v11, 6  ;;  %v2578_v43 = vpop.f32.mrb[109].mxu1  ;;  %v2610_v44 = vpop.f32.mrb[109].mxu0 }
 0x1c4   : > { %v1540_v61 = vpop.f32.mrb[110].mxu1  ;;  %v1704_v48 = vpop.f32.mrb[110].mxu0  ;;  %v1809_v49 = vmax.f32 %v1799_v57, 0.0 }
 0x1c5   : > { %v1587_v50 = vsel %vm1578_vm6, %v1584_v1, %v1586_v41  ;;  %v1755_v52 = vsel %vm1750_vm7, %v1752_v42, %v1754_v51  ;;  %v1588_v13 = vrot.slane %v1540_v61, 5  ;;  %v1756_v53 = vrot.slane %v1704_v48, 6  ;;  %v2611_v62 = vpop.f32.mrb[111].mxu0  ;;  %v2579_v54 = vpop.f32.mrb[111].mxu1 }
 0x1c6   : > { %v1613_v58 = vadd.f32 %v1587_v50, %v3335_v22  ;;  %v1783_v2 = vadd.f32 %v1755_v52, %v1611_v37 }
 0x1c7   : > { %v1589_v16 = vsel %vm1578_vm6, %v1586_v41, %v1588_v13  ;;  %v1757_v55 = vsel %vm1750_vm7, %v1754_v51, %v1756_v53 }
 0x1c8   : > { %v1800_v9 = vadd.f32 %v3371_v34, %v1783_v2  ;;  %v1614_v63 = vadd.f32 %v1589_v16, %v3340_v31  ;;  %v1784_v3 = vadd.f32 %v1757_v55, %v1612_v38 }
 0x1ca   : > { %v1810_v4 = vmax.f32 %v1800_v9, 0.0  ;;  %v1545_v7 = vpop.f32.mrb[112].mxu1  ;;  %v1709_v8 = vpop.f32.mrb[112].mxu0  ;;  %v1801_v23 = vadd.f32 %v3371_v34, %v1784_v3 }
 0x1cb   : > { %v1590_v22 = vrot.slane %v1545_v7, 5  ;;  %v1758_v60 = vrot.slane %v1709_v8, 6  ;;  %v2582_v14 = vpop.f32.mrb[113].mxu1  ;;  %v2614_v15 = vpop.f32.mrb[113].mxu0 }
 0x1cc   : > { %v2179_v17 = vpack.c.bf16 %v1810_v4, %v1809_v49  ;;  %v1548_v0 = vpop.f32.mrb[114].mxu1  ;;  %v1712_v18 = vpop.f32.mrb[114].mxu0  ;;  %v1811_v12 = vmax.f32 %v1801_v23, 0.0 }
 0x1cd   : > { %v1591_v31 = vsel %vm1578_vm6, %v1588_v13, %v1590_v22  ;;  %v1759_v19 = vsel %vm1750_vm7, %v1756_v53, %v1758_v60  ;;  %v1592_v20 = vrot.slane %v1548_v0, 5  ;;  %v1760_v6 = vrot.slane %v1712_v18, 6  ;;  %v2615_v21 = vpop.f32.mrb[115].mxu0  ;;  %v2583_v29 = vpop.f32.mrb[115].mxu1 }
 0x1ce   : > { %2180 = vst [vmem:[%s3385_s28] sm:$0xff] %v2179_v17   ;;  %v1615_v24 = vadd.f32 %v1591_v31, %v3345_v39  ;;  %v1785_v25 = vadd.f32 %v1759_v19, %v1613_v58 }
 0x1cf   : > { %v1593_v26 = vsel %vm1578_vm6, %v1590_v22, %v1592_v20  ;;  %v1761_v27 = vsel %vm1750_vm7, %v1758_v60, %v1760_v6 }
 0x1d0   : > { %v1802_v28 = vadd.f32 %v3371_v34, %v1785_v25  ;;  %v1616_v30 = vadd.f32 %v1593_v26, %v3350_v47  ;;  %v1786_v5 = vadd.f32 %v1761_v27, %v1614_v63 }
 0x1d2   : > { %v1812_v32 = vmax.f32 %v1802_v28, 0.0  ;;  %v1553_v1 = vpop.f32.mrb[116].mxu1  ;;  %v1717_v42 = vpop.f32.mrb[116].mxu0  ;;  %v1803_v43 = vadd.f32 %v3371_v34, %v1786_v5 }
 0x1d3   : > { %v1594_v35 = vrot.slane %v1553_v1, 5  ;;  %v1762_v36 = vrot.slane %v1717_v42, 6  ;;  %v2586_v37 = vpop.f32.mrb[117].mxu1  ;;  %v2618_v33 = vpop.f32.mrb[117].mxu0 }
 0x1d4   : > { %v2184_v39 = vpack.c.bf16 %v1812_v32, %v1811_v12  ;;  %v1556_v45 = vpop.f32.mrb[118].mxu1  ;;  %v1720_v38 = vpop.f32.mrb[118].mxu0  ;;  %v1813_v62 = vmax.f32 %v1803_v43, 0.0 }
 0x1d5   : > { %v1595_v46 = vsel %vm1578_vm6, %v1592_v20, %v1594_v35  ;;  %v1763_v40 = vsel %vm1750_vm7, %v1760_v6, %v1762_v36  ;;  %v1596_v11 = vrot.slane %v1556_v45, 5  ;;  %v1764_v41 = vrot.slane %v1720_v38, 6  ;;  %v2619_v47 = vpop.f32.mrb[119].mxu0  ;;  %v2587_v51 = vpop.f32.mrb[119].mxu1 }
 0x1d6   : > { %2201 = vst [vmem:[%s3385_s28 + $0x8] sm:$0xff] %v2184_v39   ;;  %v1617_v44 = vadd.f32 %v1595_v46, %v3353_v56  ;;  %v1787_v61 = vadd.f32 %v1763_v40, %v1615_v24 }
 0x1d7   : > { %v1597_v48 = vsel %vm1578_vm6, %v1594_v35, %v1596_v11  ;;  %v1765_v50 = vsel %vm1750_vm7, %v1762_v36, %v1764_v41 }
 0x1d8   : > { %v1804_v52 = vadd.f32 %v3371_v34, %v1787_v61  ;;  %v1618_v13 = vadd.f32 %v1597_v48, %v3356_v59  ;;  %v1788_v53 = vadd.f32 %v1765_v50, %v1616_v30 }
 0x1da   : > { %v1814_v54 = vmax.f32 %v1804_v52, 0.0  ;;  %v1561_v57 = vpop.f32.mrb[120].mxu1  ;;  %v1725_v58 = vpop.f32.mrb[120].mxu0  ;;  %v1805_v22 = vadd.f32 %v3371_v34, %v1788_v53 }
 0x1db   : > { %v1598_v2 = vrot.slane %v1561_v57, 5  ;;  %v1766_v16 = vrot.slane %v1725_v58, 6  ;;  %v2622_v55 = vpop.f32.mrb[121].mxu0  ;;  %v2590_v9 = vpop.f32.mrb[121].mxu1 }
 0x1dc   : > { %v2189_v56 = vpack.c.bf16 %v1814_v54, %v1813_v62  ;;  %v1728_v63 = vpop.f32.mrb[122].mxu0  ;;  %v1564_v3 = vpop.f32.mrb[122].mxu1  ;;  %v1815_v18 = vmax.f32 %v1805_v22, 0.0 }
 0x1dd   : > { %v1599_v49 = vsel %vm1578_vm6, %v1596_v11, %v1598_v2  ;;  %v1767_v4 = vsel %vm1750_vm7, %v1764_v41, %v1766_v16  ;;  %v1768_v7 = vrot.slane %v1728_v63, 6  ;;  %v2623_v8 = vpop.f32.mrb[123].mxu0  ;;  %v2591_v59 = vpop.f32.mrb[123].mxu1 }
 0x1de   : > { %2202 = vst [vmem:[%s3385_s28 + $0x10] sm:$0xff] %v2189_v56   ;;  %v1619_v60 = vadd.f32 %v1599_v49, %v3359_v10  ;;  %v1789_v14 = vadd.f32 %v1767_v4, %v1617_v44 }
 0x1df   : > { %v1769_v15 = vsel %vm1750_vm7, %v1766_v16, %v1768_v7 }
 0x1e0   : > { %v1806_v17 = vadd.f32 %v3371_v34, %v1789_v14  ;;  %v1790_v0 = vadd.f32 %v1769_v15, %v1618_v13 }
 0x1e2   : > { %v1816_v31 = vmax.f32 %v1806_v17, 0.0  ;;  %v1733_v19 = vpop.f32.mrb[124].mxu0  ;;  %v1807_v10 = vadd.f32 %v3371_v34, %v1790_v0 }
 0x1e3   : > { %v1770_v20 = vrot.slane %v1733_v19, 6  ;;  %v2626_v6 = vpop.f32.mrb[125].mxu0 }
 0x1e4   : > { %v2194_v21 = vpack.c.bf16 %v1816_v31, %v1815_v18  ;;  %v1736_v29 = vpop.f32.mrb[126].mxu0  ;;  %v1817_v27 = vmax.f32 %v1807_v10, 0.0 }
 0x1e5   : > { %v1771_v23 = vsel %vm1750_vm7, %v1768_v7, %v1770_v20  ;;  %v2627_v24 = vpop.f32.mrb[127].mxu0 }
 0x1e6   : > { %2203 = vst [vmem:[%s3385_s28 + $0x18] sm:$0xff] %v2194_v21   ;;  %v1791_v25 = vadd.f32 %v1771_v23, %v1619_v60 }
 0x1e8   : > { %v1808_v26 = vadd.f32 %v3371_v34, %v1791_v25 }
 0x1ea   : > { %v1818_v28 = vmax.f32 %v1808_v26, 0.0 }
 0x1ec   : > { %v2199_v30 = vpack.c.bf16 %v1818_v28, %v1817_v27 }
 0x1ee   : > { %2204 = vst [vmem:[%s3385_s28 + $0x20] sm:$0xff] %v2199_v30  }
 0x1ef PF: > { %s13_s14 = sadd.s32 1, %s2729_s14   ;;  %s3430_s12 = smov %s2725_s13 }
 0x1f0   : > { %p10_p5 = scmp.ge.s32.totalorder %s13_s14, 4   ;;  %s3431_s13 = smov %s3433_s15 }
 0x1f2   :  { %12 = sbr.rel (!%p10_p5) target bundleno = 2 (0x2), region = 76 }

// kernel: vgg_forward.7
= control target key start
LH: loop header
LB: loop body
LE: loop exit
PB: predicated region body
PF: predicated region fallthrough
CT: control target
= control target key end

     0   :  { %s2666_s12 = smov 0   ;;  %s2668_s13 = smov 0   ;;  %s3261_s0 = inlined_call_operand.vmem [shape: bf16[2,38,128], index: 0, kind: input, shape index: {}]   ;;  %s3262_s1 = inlined_call_operand.vmem [shape: bf16[9,128,256], index: 1, kind: input, shape index: {}]   ;;  %s3263_s2 = inlined_call_operand.vmem [shape: f32[1,256], index: 2, kind: input, shape index: {}]   ;;  %s3264_s3 = inlined_call_operand.vmem [shape: bf16[2,24,256], index: 3, kind: output, shape index: {}]  }
   0x1   :  { %s2670_s14 = smov 0  }
   0x2 LB: > { %s25_s15 = sadd.s32 1, %s2639_s13  ;;  %p2073_p0 = scmp.ge.s32.totalorder %s2643_s14, 1  ;;  %s2643_s14 = sphi %s2670_s14, %s13_s14   ;;  %s2639_s13 = sphi %s2668_s13, %s3266_s13   ;;  %s2635_s12 = sphi %s2666_s12, %s3265_s12  }
   0x3   : > { %p27_p1 = scmp.ge.s32.totalorder %s25_s15, 2  ;;  %p172_p2 = scmp.lt.s32.totalorder %s2643_s14, 3 }
   0x5   : > { %s3268_s15 = smov (%p27_p1, %s25_s15), 0  ;;  %p173_p3 = pnand %p2073_p0, %p172_p2 }
   0x6   : > { %v2402_v0 = vld [vmem:[%s3262_s1 + $0x4] ss:$8 sps:$4 sm:$0xff] (!%p173_p3)   ;;  %v2645_v2 = vmov (!%p173_p3), 0   ;;  %v2406_v3 = vld [vmem:[%s3262_s1] ss:$8 sps:$4 sm:$0xff] (!%p173_p3)   ;;  %p209_p4 = scmp.lt.s32.totalorder (!%p173_p3), %s2635_s12, 1 }
   0x7   : > { %176 = sbr.rel (%p173_p3) target bundleno = 401 (0x191), region = 32  ;;  %v2404_v1 = vld [vmem:[%s3262_s1 + $0x84] ss:$8 sps:$4 sm:$0xff] (!%p173_p3)   ;;  %545 = vmatprep.mubr.bf16.mxu1 (!%p173_p3), %v2645_v2  ;;  %385 = vmatprep.mubr.bf16.mxu0 (!%p173_p3), %v2645_v2  ;;  %v2407_v4 = vld [vmem:[%s3262_s1 + $0x80] ss:$8 sps:$4 sm:$0xff] (!%p173_p3)   ;;  %vm580_vm0 = vcmask (!%p173_p3), 1046528  }
   0x8   : > { %353 = vmatprep.subr.bf16.mxu0 (!%p173_p3), %v2402_v0  ;;  %513 = vmatprep.subr.bf16.mxu1 (!%p173_p3), %v2404_v1  ;;  %v2408_v5 = vld [vmem:[%s3262_s1 + $0x14] ss:$8 sps:$4 sm:$0xff] (!%p173_p3)   ;;  %v2412_v7 = vld [vmem:[%s3262_s1 + $0x10] ss:$8 sps:$4 sm:$0xff] (!%p173_p3)   ;;  %v2414_v9 = vld [vmem:[%s3262_s1 + $0x24] ss:$8 sps:$4 sm:$0xff] (!%p173_p3)  }
   0x9   : > { %354 = vmatpush1.bf16.msra.mxu0 (!%p173_p3), %v2406_v3  ;;  %514 = vmatpush1.bf16.msra.mxu1 (!%p173_p3), %v2407_v4  ;;  %v2410_v6 = vld [vmem:[%s3262_s1 + $0x94] ss:$8 sps:$4 sm:$0xff] (!%p173_p3)   ;;  %v2413_v8 = vld [vmem:[%s3262_s1 + $0x90] ss:$8 sps:$4 sm:$0xff] (!%p173_p3)   ;;  %v2416_v10 = vld [vmem:[%s3262_s1 + $0xa4] ss:$8 sps:$4 sm:$0xff] (!%p173_p3)  }
   0xa   : > { %355 = vmatprep.subr.bf16.mxu0 (!%p173_p3), %v2408_v5  ;;  %515 = vmatprep.subr.bf16.mxu1 (!%p173_p3), %v2410_v6  ;;  %v2418_v11 = vld [vmem:[%s3262_s1 + $0x20] ss:$8 sps:$4 sm:$0xff] (!%p173_p3)   ;;  %v2420_v13 = vld [vmem:[%s3262_s1 + $0x34] ss:$8 sps:$4 sm:$0xff] (!%p173_p3)   ;;  %v2424_v15 = vld [vmem:[%s3262_s1 + $0x30] ss:$8 sps:$4 sm:$0xff] (!%p173_p3)  }
   0xb   : > { %v2419_v12 = vld [vmem:[%s3262_s1 + $0xa0] ss:$8 sps:$4 sm:$0xff] (!%p173_p3)   ;;  %v2422_v14 = vld [vmem:[%s3262_s1 + $0xb4] ss:$8 sps:$4 sm:$0xff] (!%p173_p3)   ;;  %v2425_v16 = vld [vmem:[%s3262_s1 + $0xb0] ss:$8 sps:$4 sm:$0xff] (!%p173_p3)  }
   0xc   : > { %v2426_v17 = vld [vmem:[%s3262_s1 + $0x44] ss:$8 sps:$4 sm:$0xff] (!%p173_p3)   ;;  %v2430_v19 = vld [vmem:[%s3262_s1 + $0x40] ss:$8 sps:$4 sm:$0xff] (!%p173_p3)   ;;  %v2432_v21 = vld [vmem:[%s3262_s1 + $0x54] ss:$8 sps:$4 sm:$0xff] (!%p173_p3)  }
   0xd   : > { %356 = vmatpush1.bf16.msra.mxu0 (!%p173_p3), %v2412_v7  ;;  %516 = vmatpush1.bf16.msra.mxu1 (!%p173_p3), %v2413_v8  ;;  %v2428_v18 = vld [vmem:[%s3262_s1 + $0xc4] ss:$8 sps:$4 sm:$0xff] (!%p173_p3)   ;;  %v2431_v20 = vld [vmem:[%s3262_s1 + $0xc0] ss:$8 sps:$4 sm:$0xff] (!%p173_p3)   ;;  %v2434_v22 = vld [vmem:[%s3262_s1 + $0xd4] ss:$8 sps:$4 sm:$0xff] (!%p173_p3)  }
   0xe   : > { %357 = vmatprep.subr.bf16.mxu0 %v2414_v9  ;;  %517 = vmatprep.subr.bf16.mxu1 %v2416_v10  ;;  %s3270_s12 = smov (!%p209_p4, %s2635_s12), 1  ;;  %v2436_v23 = vld [vmem:[%s3262_s1 + $0x50] ss:$8 sps:$4 sm:$0xff]   ;;  %v2438_v25 = vld [vmem:[%s3262_s1 + $0x64] ss:$8 sps:$4 sm:$0xff]   ;;  %vm771_vm1 = vcmask 1045504  }
   0xf   : > { %s2375_s8 = smul.u32 20, %s3270_s12  ;;  %v2437_v24 = vld [vmem:[%s3262_s1 + $0xd0] ss:$8 sps:$4 sm:$0xff]   ;;  %v2440_v26 = vld [vmem:[%s3262_s1 + $0xe4] ss:$8 sps:$4 sm:$0xff]   ;;  %vm962_vm2 = vcmask 1041408  }
  0x10   : > { %v2442_v27 = vld [vmem:[%s3262_s1 + $0x60] ss:$8 sps:$4 sm:$0xff]   ;;  %v2444_v29 = vld [vmem:[%s3262_s1 + $0x74] ss:$8 sps:$4 sm:$0xff]   ;;  %v2448_v31 = vld [vmem:[%s3262_s1 + $0x70] ss:$8 sps:$4 sm:$0xff]  }
  0x11   : > { %358 = vmatpush1.bf16.msra.mxu0 %v2418_v11  ;;  %518 = vmatpush1.bf16.msra.mxu1 %v2419_v12  ;;  %s2771_s23 = scalar_lea.vmem %s3261_s0, %s2375_s8  ;;  %v2443_v28 = vld [vmem:[%s3262_s1 + $0xe0] ss:$8 sps:$4 sm:$0xff]   ;;  %v2446_v30 = vld [vmem:[%s3262_s1 + $0xf4] ss:$8 sps:$4 sm:$0xff]   ;;  %v2449_v32 = vld [vmem:[%s3262_s1 + $0xf0] ss:$8 sps:$4 sm:$0xff]  }
  0x12   : > { %359 = vmatprep.subr.bf16.mxu0 %v2420_v13  ;;  %519 = vmatprep.subr.bf16.mxu1 %v2422_v14  ;;  %v2453_v33 = vld [vmem:[%s3262_s1 + $0x104] ss:$8 sps:$4 sm:$0xff]   ;;  %v2451_v36 = vld [vmem:[%s3262_s1 + $0x100] ss:$8 sps:$4 sm:$0xff]   ;;  %v2459_v38 = vld [vmem:[%s3262_s1 + $0x114] ss:$8 sps:$4 sm:$0xff]  }
  0x13   : > { %v2456_v34 = vld [vmem:[%s3262_s1 + $0x184] ss:$8 sps:$4 sm:$0xff]   ;;  %v2454_v37 = vld [vmem:[%s3262_s1 + $0x180] ss:$8 sps:$4 sm:$0xff]   ;;  %v2462_v39 = vld [vmem:[%s3262_s1 + $0x194] ss:$8 sps:$4 sm:$0xff]  }
  0x14   : > { %v2801_v35 = vld [vmem:[%s2771_s23] sm:$0xff]   ;;  %v2457_v40 = vld [vmem:[%s3262_s1 + $0x110] ss:$8 sps:$4 sm:$0xff]   ;;  %v2831_v44 = vld [vmem:[%s2771_s23 + $0x8] sm:$0xff]   ;;  %vm1153_vm3 = vcmask 1040384   ;;  %vm1504_vm4 = vcmask 1043456  }
  0x15   : > { %360 = vmatpush1.bf16.msra.mxu0 %v2424_v15  ;;  %520 = vmatpush1.bf16.msra.mxu1 %v2425_v16  ;;  %v2460_v41 = vld [vmem:[%s3262_s1 + $0x190] ss:$8 sps:$4 sm:$0xff]   ;;  %v2466_v42 = vld [vmem:[%s3262_s1 + $0x124] ss:$8 sps:$4 sm:$0xff]   ;;  %v2464_v45 = vld [vmem:[%s3262_s1 + $0x120] ss:$8 sps:$4 sm:$0xff]  }
  0x16   : > { %361 = vmatprep.subr.bf16.mxu0 %v2426_v17  ;;  %521 = vmatprep.subr.bf16.mxu1 %v2428_v18  ;;  %v2469_v43 = vld [vmem:[%s3262_s1 + $0x1a4] ss:$8 sps:$4 sm:$0xff]   ;;  %v2467_v46 = vld [vmem:[%s3262_s1 + $0x1a0] ss:$8 sps:$4 sm:$0xff]   ;;  %v2472_v47 = vld [vmem:[%s3262_s1 + $0x134] ss:$8 sps:$4 sm:$0xff]  }
  0x17   : > { %v2475_v48 = vld [vmem:[%s3262_s1 + $0x1b4] ss:$8 sps:$4 sm:$0xff]   ;;  %v2470_v49 = vld [vmem:[%s3262_s1 + $0x130] ss:$8 sps:$4 sm:$0xff]   ;;  %v2478_v51 = vld [vmem:[%s3262_s1 + $0x144] ss:$8 sps:$4 sm:$0xff]  }
  0x18   : > { %v2473_v50 = vld [vmem:[%s3262_s1 + $0x1b0] ss:$8 sps:$4 sm:$0xff]   ;;  %v2481_v52 = vld [vmem:[%s3262_s1 + $0x1c4] ss:$8 sps:$4 sm:$0xff]   ;;  %v2476_v53 = vld [vmem:[%s3262_s1 + $0x140] ss:$8 sps:$4 sm:$0xff]  }
  0x19   : > { %362 = vmatpush1.bf16.msra.mxu0 %v2430_v19  ;;  %522 = vmatpush1.bf16.msra.mxu1 %v2431_v20  ;;  %v2479_v54 = vld [vmem:[%s3262_s1 + $0x1c0] ss:$8 sps:$4 sm:$0xff]   ;;  %v2869_v55 = vld [vmem:[%s2771_s23 + $0x10] ss:$0 sps:$4 sm:$0x77]   ;;  %vm1695_vm5 = vcmask 1042432  }
  0x1a   : > { %363 = vmatprep.subr.bf16.mxu0 %v2432_v21  ;;  %523 = vmatprep.subr.bf16.mxu1 %v2434_v22  ;;  %v2484_v56 = vld [vmem:[%s3262_s1 + $0x154] ss:$8 sps:$4 sm:$0xff]   ;;  %v2482_v58 = vld [vmem:[%s3262_s1 + $0x150] ss:$8 sps:$4 sm:$0xff]   ;;  %v2491_v60 = vld [vmem:[%s3262_s1 + $0x164] ss:$8 sps:$4 sm:$0xff]  }
  0x1b   : > { %v2487_v57 = vld [vmem:[%s3262_s1 + $0x1d4] ss:$8 sps:$4 sm:$0xff]   ;;  %v2485_v59 = vld [vmem:[%s3262_s1 + $0x1d0] ss:$8 sps:$4 sm:$0xff]   ;;  %v2494_v61 = vld [vmem:[%s3262_s1 + $0x1e4] ss:$8 sps:$4 sm:$0xff]  }
  0x1c   : > { %v2489_v62 = vld [vmem:[%s3262_s1 + $0x160] ss:$8 sps:$4 sm:$0xff]   ;;  %v2497_v0 = vld [vmem:[%s3262_s1 + $0x174] ss:$8 sps:$4 sm:$0xff]   ;;  %v2495_v3 = vld [vmem:[%s3262_s1 + $0x170] ss:$8 sps:$4 sm:$0xff]  }
  0x1d   : > { %364 = vmatpush1.bf16.msra.mxu0 %v2436_v23  ;;  %524 = vmatpush1.bf16.msra.mxu1 %v2437_v24  ;;  %v2492_v63 = vld [vmem:[%s3262_s1 + $0x1e0] ss:$8 sps:$4 sm:$0xff]   ;;  %v2500_v1 = vld [vmem:[%s3262_s1 + $0x1f4] ss:$8 sps:$4 sm:$0xff]   ;;  %v2498_v4 = vld [vmem:[%s3262_s1 + $0x1f0] ss:$8 sps:$4 sm:$0xff]  }
  0x1e   : > { %365 = vmatprep.subr.bf16.mxu0 %v2438_v25  ;;  %525 = vmatprep.subr.bf16.mxu1 %v2440_v26  ;;  %v2503_v5 = vld [vmem:[%s3262_s1 + $0x204] ss:$8 sps:$4 sm:$0xff]   ;;  %v2501_v7 = vld [vmem:[%s3262_s1 + $0x200] ss:$8 sps:$4 sm:$0xff]   ;;  %v2509_v9 = vld [vmem:[%s3262_s1 + $0x214] ss:$8 sps:$4 sm:$0xff]  }
  0x1f   : > { %v2506_v6 = vld [vmem:[%s3262_s1 + $0x284] ss:$8 sps:$4 sm:$0xff]   ;;  %v2504_v8 = vld [vmem:[%s3262_s1 + $0x280] ss:$8 sps:$4 sm:$0xff]   ;;  %v2512_v10 = vld [vmem:[%s3262_s1 + $0x294] ss:$8 sps:$4 sm:$0xff]  }
  0x20   : > { %v2507_v11 = vld [vmem:[%s3262_s1 + $0x210] ss:$8 sps:$4 sm:$0xff]   ;;  %v2515_v13 = vld [vmem:[%s3262_s1 + $0x224] ss:$8 sps:$4 sm:$0xff]   ;;  %v2513_v15 = vld [vmem:[%s3262_s1 + $0x220] ss:$8 sps:$4 sm:$0xff]  }
  0x21   : > { %366 = vmatpush1.bf16.msra.mxu0 %v2442_v27  ;;  %526 = vmatpush1.bf16.msra.mxu1 %v2443_v28  ;;  %v2510_v12 = vld [vmem:[%s3262_s1 + $0x290] ss:$8 sps:$4 sm:$0xff]   ;;  %v2518_v14 = vld [vmem:[%s3262_s1 + $0x2a4] ss:$8 sps:$4 sm:$0xff]   ;;  %v2516_v16 = vld [vmem:[%s3262_s1 + $0x2a0] ss:$8 sps:$4 sm:$0xff]  }
  0x22   : > { %367 = vmatprep.subr.bf16.mxu0 %v2444_v29  ;;  %527 = vmatprep.subr.bf16.mxu1 %v2446_v30  ;;  %v2521_v17 = vld [vmem:[%s3262_s1 + $0x234] ss:$8 sps:$4 sm:$0xff]   ;;  %v2519_v19 = vld [vmem:[%s3262_s1 + $0x230] ss:$8 sps:$4 sm:$0xff]   ;;  %v2527_v21 = vld [vmem:[%s3262_s1 + $0x244] ss:$8 sps:$4 sm:$0xff]  }
  0x23   : > { %v2524_v18 = vld [vmem:[%s3262_s1 + $0x2b4] ss:$8 sps:$4 sm:$0xff]   ;;  %v2522_v20 = vld [vmem:[%s3262_s1 + $0x2b0] ss:$8 sps:$4 sm:$0xff]   ;;  %v2530_v22 = vld [vmem:[%s3262_s1 + $0x2c4] ss:$8 sps:$4 sm:$0xff]  }
  0x24   : > { %v2525_v23 = vld [vmem:[%s3262_s1 + $0x240] ss:$8 sps:$4 sm:$0xff]   ;;  %v2533_v25 = vld [vmem:[%s3262_s1 + $0x254] ss:$8 sps:$4 sm:$0xff]   ;;  %v2531_v27 = vld [vmem:[%s3262_s1 + $0x250] ss:$8 sps:$4 sm:$0xff]  }
  0x25   : > { %368 = vmatpush1.bf16.msra.mxu0 %v2448_v31  ;;  %528 = vmatpush1.bf16.msra.mxu1 %v2449_v32  ;;  %v2528_v24 = vld [vmem:[%s3262_s1 + $0x2c0] ss:$8 sps:$4 sm:$0xff]   ;;  %v2536_v26 = vld [vmem:[%s3262_s1 + $0x2d4] ss:$8 sps:$4 sm:$0xff]   ;;  %v2534_v28 = vld [vmem:[%s3262_s1 + $0x2d0] ss:$8 sps:$4 sm:$0xff]  }
  0x26   : > { %704 = vmatprep.subr.bf16.mxu0 %v2453_v33  ;;  %895 = vmatprep.subr.bf16.mxu1 %v2456_v34  ;;  %v2539_v29 = vld [vmem:[%s3262_s1 + $0x264] ss:$8 sps:$4 sm:$0xff]   ;;  %v2537_v31 = vld [vmem:[%s3262_s1 + $0x260] ss:$8 sps:$4 sm:$0xff]   ;;  %v2545_v33 = vld [vmem:[%s3262_s1 + $0x274] ss:$8 sps:$4 sm:$0xff]  }
  0x27   : > { %v2542_v30 = vld [vmem:[%s3262_s1 + $0x2e4] ss:$8 sps:$4 sm:$0xff]   ;;  %v2540_v32 = vld [vmem:[%s3262_s1 + $0x2e0] ss:$8 sps:$4 sm:$0xff]   ;;  %v2548_v34 = vld [vmem:[%s3262_s1 + $0x2f4] ss:$8 sps:$4 sm:$0xff]  }
  0x28   : > { %546 = vmatmul.mubr.bf16.vlgmr.msra.gmra.mrb[0].mxu1 %v2801_v35  ;;  %386 = vmatmul.mubr.bf16.vlgmr.msra.gmra.mrb[0].mxu0 %v2801_v35  ;;  %s2376_s9 = smul.u32 24, %s3270_s12 }
  0x29   : > { %705 = vmatpush1.bf16.msra.mxu0 %v2451_v36  ;;  %896 = vmatpush1.bf16.msra.mxu1 %v2454_v37  ;;  %v2543_v36 = vld [vmem:[%s3262_s1 + $0x270] ss:$8 sps:$4 sm:$0xff]  }
  0x2a   : > { %706 = vmatprep.subr.bf16.mxu0 %v2459_v38  ;;  %897 = vmatprep.subr.bf16.mxu1 %v2462_v39  ;;  %v2546_v37 = vld [vmem:[%s3262_s1 + $0x2f0] ss:$8 sps:$4 sm:$0xff]   ;;  %v2551_v38 = vld [vmem:[%s3262_s1 + $0x304] ss:$8 sps:$4 sm:$0xff]   ;;  %s233_s16 = scalar_lea.vmem %s3264_s3, %s2376_s9 }
  0x2b   : > { %555 = vmatprep.mubr.bf16.mxu1 %v2645_v2  ;;  %395 = vmatprep.mubr.bf16.mxu0 %v2645_v2  ;;  %v2554_v39 = vld [vmem:[%s3262_s1 + $0x384] ss:$8 sps:$4 sm:$0xff]  }
  0x2d   : > { %707 = vmatpush1.bf16.msra.mxu0 %v2457_v40  ;;  %898 = vmatpush1.bf16.msra.mxu1 %v2460_v41  ;;  %v2549_v40 = vld [vmem:[%s3262_s1 + $0x300] ss:$8 sps:$4 sm:$0xff]  }
  0x2e   : > { %708 = vmatprep.subr.bf16.mxu0 %v2466_v42  ;;  %899 = vmatprep.subr.bf16.mxu1 %v2469_v43  ;;  %v2552_v41 = vld [vmem:[%s3262_s1 + $0x380] ss:$8 sps:$4 sm:$0xff]   ;;  %v2557_v42 = vld [vmem:[%s3262_s1 + $0x314] ss:$8 sps:$4 sm:$0xff]  }
  0x2f   : > { %v2560_v43 = vld [vmem:[%s3262_s1 + $0x394] ss:$8 sps:$4 sm:$0xff]  }
  0x30   : > { %556 = vmatmul.mubr.bf16.gmra.mrb[4].mxu1 %v2831_v44  ;;  %396 = vmatmul.mubr.bf16.gmra.mrb[4].mxu0 %v2831_v44 }
  0x31   : > { %709 = vmatpush1.bf16.msra.mxu0 %v2464_v45  ;;  %900 = vmatpush1.bf16.msra.mxu1 %v2467_v46  ;;  %v2555_v45 = vld [vmem:[%s3262_s1 + $0x310] ss:$8 sps:$4 sm:$0xff]  }
  0x32   : > { %710 = vmatprep.subr.bf16.mxu0 %v2472_v47  ;;  %901 = vmatprep.subr.bf16.mxu1 %v2475_v48  ;;  %v2558_v46 = vld [vmem:[%s3262_s1 + $0x390] ss:$8 sps:$4 sm:$0xff]   ;;  %v2563_v47 = vld [vmem:[%s3262_s1 + $0x324] ss:$8 sps:$4 sm:$0xff]  }
  0x33   : > { %565 = vmatprep.mubr.bf16.mxu1 %v2645_v2  ;;  %403 = vmatprep.mubr.bf16.mxu0 %v2645_v2  ;;  %v2566_v48 = vld [vmem:[%s3262_s1 + $0x3a4] ss:$8 sps:$4 sm:$0xff]  }
  0x35   : > { %711 = vmatpush1.bf16.msra.mxu0 %v2470_v49  ;;  %902 = vmatpush1.bf16.msra.mxu1 %v2473_v50  ;;  %v2561_v49 = vld [vmem:[%s3262_s1 + $0x320] ss:$8 sps:$4 sm:$0xff]  }
  0x36   : > { %712 = vmatprep.subr.bf16.mxu0 %v2478_v51  ;;  %903 = vmatprep.subr.bf16.mxu1 %v2481_v52  ;;  %v2564_v50 = vld [vmem:[%s3262_s1 + $0x3a0] ss:$8 sps:$4 sm:$0xff]   ;;  %v2569_v51 = vld [vmem:[%s3262_s1 + $0x334] ss:$8 sps:$4 sm:$0xff]  }
  0x37   : > { %v2572_v52 = vld [vmem:[%s3262_s1 + $0x3b4] ss:$8 sps:$4 sm:$0xff]  }
  0x38   : > { %566 = vmatmul.mubr.bf16.gmra.mrb[8].mxu1 %v2869_v55  ;;  %404 = vmatmul.mubr.bf16.gmra.mrb[8].mxu0 %v2869_v55 }
  0x39   : > { %713 = vmatpush1.bf16.msra.mxu0 %v2476_v53  ;;  %904 = vmatpush1.bf16.msra.mxu1 %v2479_v54  ;;  %v2567_v53 = vld [vmem:[%s3262_s1 + $0x330] ss:$8 sps:$4 sm:$0xff]  }
  0x3a   : > { %714 = vmatprep.subr.bf16.mxu0 %v2484_v56  ;;  %905 = vmatprep.subr.bf16.mxu1 %v2487_v57  ;;  %v2570_v54 = vld [vmem:[%s3262_s1 + $0x3b0] ss:$8 sps:$4 sm:$0xff]   ;;  %v2575_v56 = vld [vmem:[%s3262_s1 + $0x344] ss:$8 sps:$4 sm:$0xff]  }
  0x3b   : > { %736 = vmatprep.mubr.bf16.mxu0 %v2645_v2  ;;  %927 = vmatprep.mubr.bf16.mxu1 %v2645_v2  ;;  %v2578_v57 = vld [vmem:[%s3262_s1 + $0x3c4] ss:$8 sps:$4 sm:$0xff]  }
  0x3d   : > { %715 = vmatpush1.bf16.msra.mxu0 %v2482_v58  ;;  %906 = vmatpush1.bf16.msra.mxu1 %v2485_v59  ;;  %v2573_v58 = vld [vmem:[%s3262_s1 + $0x340] ss:$8 sps:$4 sm:$0xff]  }
  0x3e   : > { %716 = vmatprep.subr.bf16.mxu0 %v2491_v60  ;;  %907 = vmatprep.subr.bf16.mxu1 %v2494_v61  ;;  %v2576_v59 = vld [vmem:[%s3262_s1 + $0x3c0] ss:$8 sps:$4 sm:$0xff]   ;;  %v2581_v60 = vld [vmem:[%s3262_s1 + $0x354] ss:$8 sps:$4 sm:$0xff]  }
  0x3f   : > { %v2584_v61 = vld [vmem:[%s3262_s1 + $0x3d4] ss:$8 sps:$4 sm:$0xff]  }
  0x41   : > { %717 = vmatpush1.bf16.msra.mxu0 %v2489_v62  ;;  %908 = vmatpush1.bf16.msra.mxu1 %v2492_v63  ;;  %v2579_v62 = vld [vmem:[%s3262_s1 + $0x350] ss:$8 sps:$4 sm:$0xff]  }
  0x42   : > { %718 = vmatprep.subr.bf16.mxu0 %v2497_v0  ;;  %909 = vmatprep.subr.bf16.mxu1 %v2500_v1  ;;  %v2582_v63 = vld [vmem:[%s3262_s1 + $0x3d0] ss:$8 sps:$4 sm:$0xff]   ;;  %v2587_v0 = vld [vmem:[%s3262_s1 + $0x364] ss:$8 sps:$4 sm:$0xff]  }
  0x43   : > { %v2590_v1 = vld [vmem:[%s3262_s1 + $0x3e4] ss:$8 sps:$4 sm:$0xff]  }
  0x45   : > { %719 = vmatpush1.bf16.msra.mxu0 %v2495_v3  ;;  %910 = vmatpush1.bf16.msra.mxu1 %v2498_v4  ;;  %v2585_v3 = vld [vmem:[%s3262_s1 + $0x360] ss:$8 sps:$4 sm:$0xff]  }
  0x46   : > { %1086 = vmatprep.subr.bf16.mxu0 %v2503_v5  ;;  %1277 = vmatprep.subr.bf16.mxu1 %v2506_v6  ;;  %v2588_v4 = vld [vmem:[%s3262_s1 + $0x3e0] ss:$8 sps:$4 sm:$0xff]   ;;  %v2593_v5 = vld [vmem:[%s3262_s1 + $0x374] ss:$8 sps:$4 sm:$0xff]  }
  0x47   : > { %v2596_v6 = vld [vmem:[%s3262_s1 + $0x3f4] ss:$8 sps:$4 sm:$0xff]  }
  0x48   : > { %737 = vmatmul.mubr.bf16.vlgmr.msra.gmra.mrb[12].mxu0 %v2801_v35  ;;  %928 = vmatmul.mubr.bf16.vlgmr.msra.gmra.mrb[12].mxu1 %v2801_v35 }
  0x49   : > { %1087 = vmatpush1.bf16.msra.mxu0 %v2501_v7  ;;  %1278 = vmatpush1.bf16.msra.mxu1 %v2504_v8  ;;  %v2591_v7 = vld [vmem:[%s3262_s1 + $0x370] ss:$8 sps:$4 sm:$0xff]  }
  0x4a   : > { %1088 = vmatprep.subr.bf16.mxu0 %v2509_v9  ;;  %1279 = vmatprep.subr.bf16.mxu1 %v2512_v10  ;;  %v2594_v8 = vld [vmem:[%s3262_s1 + $0x3f0] ss:$8 sps:$4 sm:$0xff]   ;;  %v2599_v9 = vld [vmem:[%s3262_s1 + $0x404] ss:$8 sps:$4 sm:$0xff]   ;;  %v2597_v10 = vld [vmem:[%s3262_s1 + $0x400] ss:$8 sps:$4 sm:$0xff]  }
  0x4b   : > { %746 = vmatprep.mubr.bf16.mxu0 %v2645_v2  ;;  %937 = vmatprep.mubr.bf16.mxu1 %v2645_v2 }
  0x4d   : > { %1089 = vmatpush1.bf16.msra.mxu0 %v2507_v11  ;;  %1280 = vmatpush1.bf16.msra.mxu1 %v2510_v12  ;;  %v2602_v11 = vld [vmem:[%s3262_s1 + $0x414] ss:$8 sps:$4 sm:$0xff]   ;;  %v2600_v12 = vld [vmem:[%s3262_s1 + $0x410] ss:$8 sps:$4 sm:$0xff]  }
  0x4e   : > { %1090 = vmatprep.subr.bf16.mxu0 %v2515_v13  ;;  %1281 = vmatprep.subr.bf16.mxu1 %v2518_v14  ;;  %v2605_v13 = vld [vmem:[%s3262_s1 + $0x424] ss:$8 sps:$4 sm:$0xff]   ;;  %v2603_v14 = vld [vmem:[%s3262_s1 + $0x420] ss:$8 sps:$4 sm:$0xff]  }
  0x50   : > { %747 = vmatmul.mubr.bf16.gmra.mrb[16].mxu0 %v2831_v44  ;;  %938 = vmatmul.mubr.bf16.gmra.mrb[16].mxu1 %v2831_v44 }
  0x51   : > { %1091 = vmatpush1.bf16.msra.mxu0 %v2513_v15  ;;  %1282 = vmatpush1.bf16.msra.mxu1 %v2516_v16  ;;  %v2608_v15 = vld [vmem:[%s3262_s1 + $0x434] ss:$8 sps:$4 sm:$0xff]   ;;  %v2606_v16 = vld [vmem:[%s3262_s1 + $0x430] ss:$8 sps:$4 sm:$0xff]  }
  0x52   : > { %1092 = vmatprep.subr.bf16.mxu0 %v2521_v17  ;;  %1283 = vmatprep.subr.bf16.mxu1 %v2524_v18  ;;  %v2611_v17 = vld [vmem:[%s3262_s1 + $0x444] ss:$8 sps:$4 sm:$0xff]   ;;  %v2609_v18 = vld [vmem:[%s3262_s1 + $0x440] ss:$8 sps:$4 sm:$0xff]  }
  0x53   : > { %947 = vmatprep.mubr.bf16.mxu1 %v2645_v2  ;;  %756 = vmatprep.mubr.bf16.mxu0 %v2645_v2 }
  0x55   : > { %1093 = vmatpush1.bf16.msra.mxu0 %v2519_v19  ;;  %1284 = vmatpush1.bf16.msra.mxu1 %v2522_v20  ;;  %v2614_v19 = vld [vmem:[%s3262_s1 + $0x454] ss:$8 sps:$4 sm:$0xff]   ;;  %v2612_v20 = vld [vmem:[%s3262_s1 + $0x450] ss:$8 sps:$4 sm:$0xff]  }
  0x56   : > { %1094 = vmatprep.subr.bf16.mxu0 %v2527_v21  ;;  %1285 = vmatprep.subr.bf16.mxu1 %v2530_v22  ;;  %v2617_v21 = vld [vmem:[%s3262_s1 + $0x464] ss:$8 sps:$4 sm:$0xff]   ;;  %v2615_v22 = vld [vmem:[%s3262_s1 + $0x460] ss:$8 sps:$4 sm:$0xff]  }
  0x58   : > { %948 = vmatmul.mubr.bf16.gmra.mrb[20].mxu1 %v2869_v55  ;;  %757 = vmatmul.mubr.bf16.gmra.mrb[20].mxu0 %v2869_v55 }
  0x59   : > { %1095 = vmatpush1.bf16.msra.mxu0 %v2525_v23  ;;  %1286 = vmatpush1.bf16.msra.mxu1 %v2528_v24  ;;  %v2620_v23 = vld [vmem:[%s3262_s1 + $0x474] ss:$8 sps:$4 sm:$0xff]   ;;  %v2618_v24 = vld [vmem:[%s3262_s1 + $0x470] ss:$8 sps:$4 sm:$0xff]  }
  0x5a   : > { %1096 = vmatprep.subr.bf16.mxu0 %v2533_v25  ;;  %1287 = vmatprep.subr.bf16.mxu1 %v2536_v26 }
  0x5b   : > { %1118 = vmatprep.mubr.bf16.mxu0 %v2645_v2  ;;  %1309 = vmatprep.mubr.bf16.mxu1 %v2645_v2 }
  0x5d   : > { %1097 = vmatpush1.bf16.msra.mxu0 %v2531_v27  ;;  %1288 = vmatpush1.bf16.msra.mxu1 %v2534_v28 }
  0x5e   : > { %1098 = vmatprep.subr.bf16.mxu0 %v2539_v29  ;;  %1289 = vmatprep.subr.bf16.mxu1 %v2542_v30 }
  0x61   : > { %1099 = vmatpush1.bf16.msra.mxu0 %v2537_v31  ;;  %1290 = vmatpush1.bf16.msra.mxu1 %v2540_v32 }
  0x62   : > { %1100 = vmatprep.subr.bf16.mxu0 %v2545_v33  ;;  %1291 = vmatprep.subr.bf16.mxu1 %v2548_v34 }
  0x65   : > { %1101 = vmatpush1.bf16.msra.mxu0 %v2543_v36  ;;  %1292 = vmatpush1.bf16.msra.mxu1 %v2546_v37 }
  0x66   : > { %1437 = vmatprep.subr.bf16.mxu0 %v2551_v38  ;;  %1628 = vmatprep.subr.bf16.mxu1 %v2554_v39 }
  0x68   : > { %1119 = vmatmul.mubr.bf16.vlgmr.msra.gmra.mrb[24].mxu0 %v2801_v35  ;;  %1310 = vmatmul.mubr.bf16.vlgmr.msra.gmra.mrb[24].mxu1 %v2801_v35 }
  0x69   : > { %1438 = vmatpush1.bf16.msra.mxu0 %v2549_v40  ;;  %1629 = vmatpush1.bf16.msra.mxu1 %v2552_v41 }
  0x6a   : > { %1439 = vmatprep.subr.bf16.mxu0 %v2557_v42  ;;  %1630 = vmatprep.subr.bf16.mxu1 %v2560_v43 }
  0x6b   : > { %1128 = vmatprep.mubr.bf16.mxu0 %v2645_v2  ;;  %1317 = vmatprep.mubr.bf16.mxu1 %v2645_v2 }
  0x6d   : > { %1440 = vmatpush1.bf16.msra.mxu0 %v2555_v45  ;;  %1631 = vmatpush1.bf16.msra.mxu1 %v2558_v46 }
  0x6e   : > { %1441 = vmatprep.subr.bf16.mxu0 %v2563_v47  ;;  %1632 = vmatprep.subr.bf16.mxu1 %v2566_v48 }
  0x70   : > { %1129 = vmatmul.mubr.bf16.gmra.mrb[28].mxu0 %v2831_v44  ;;  %1318 = vmatmul.mubr.bf16.gmra.mrb[28].mxu1 %v2831_v44 }
  0x71   : > { %1442 = vmatpush1.bf16.msra.mxu0 %v2561_v49  ;;  %1633 = vmatpush1.bf16.msra.mxu1 %v2564_v50 }
  0x72   : > { %1443 = vmatprep.subr.bf16.mxu0 %v2569_v51  ;;  %1634 = vmatprep.subr.bf16.mxu1 %v2572_v52 }
  0x73   : > { %1327 = vmatprep.mubr.bf16.mxu1 %v2645_v2  ;;  %1138 = vmatprep.mubr.bf16.mxu0 %v2645_v2 }
  0x75   : > { %1444 = vmatpush1.bf16.msra.mxu0 %v2567_v53  ;;  %1635 = vmatpush1.bf16.msra.mxu1 %v2570_v54 }
  0x76   : > { %1445 = vmatprep.subr.bf16.mxu0 %v2575_v56  ;;  %1636 = vmatprep.subr.bf16.mxu1 %v2578_v57 }
  0x78   : > { %1328 = vmatmul.mubr.bf16.gmra.mrb[32].mxu1 %v2869_v55  ;;  %1139 = vmatmul.mubr.bf16.gmra.mrb[32].mxu0 %v2869_v55 }
  0x79   : > { %1446 = vmatpush1.bf16.msra.mxu0 %v2573_v58  ;;  %1637 = vmatpush1.bf16.msra.mxu1 %v2576_v59 }
  0x7a   : > { %1447 = vmatprep.subr.bf16.mxu0 %v2581_v60  ;;  %1638 = vmatprep.subr.bf16.mxu1 %v2584_v61 }
  0x7b   : > { %1469 = vmatprep.mubr.bf16.mxu0 %v2645_v2  ;;  %1660 = vmatprep.mubr.bf16.mxu1 %v2645_v2 }
  0x7d   : > { %1448 = vmatpush1.bf16.msra.mxu0 %v2579_v62  ;;  %1639 = vmatpush1.bf16.msra.mxu1 %v2582_v63 }
  0x7e   : > { %1449 = vmatprep.subr.bf16.mxu0 %v2587_v0  ;;  %1640 = vmatprep.subr.bf16.mxu1 %v2590_v1 }
  0x81   : > { %1450 = vmatpush1.bf16.msra.mxu0 %v2585_v3  ;;  %1641 = vmatpush1.bf16.msra.mxu1 %v2588_v4 }
  0x82   : > { %1451 = vmatprep.subr.bf16.mxu0 %v2593_v5  ;;  %1642 = vmatprep.subr.bf16.mxu1 %v2596_v6 }
  0x85   : > { %1452 = vmatpush1.bf16.msra.mxu0 %v2591_v7  ;;  %1643 = vmatpush1.bf16.msra.mxu1 %v2594_v8 }
  0x86   : > { %1819 = vmatprep.subr.bf16.mxu0 %v2599_v9  ;;  %2359 = vmatprep.subr.bf16.mxu1 %v2599_v9 }
  0x88   : > { %1470 = vmatmul.mubr.bf16.vlgmr.msra.gmra.mrb[36].mxu0 %v2801_v35  ;;  %1661 = vmatmul.mubr.bf16.vlgmr.msra.gmra.mrb[36].mxu1 %v2801_v35 }
  0x89   : > { %1820 = vmatpush1.bf16.msra.mxu0 %v2597_v10  ;;  %2367 = vmatpush1.bf16.msra.mxu1 %v2597_v10 }
  0x8a   : > { %1821 = vmatprep.subr.bf16.mxu0 %v2602_v11  ;;  %2360 = vmatprep.subr.bf16.mxu1 %v2602_v11 }
  0x8b   : > { %1477 = vmatprep.mubr.bf16.mxu0 %v2645_v2  ;;  %1668 = vmatprep.mubr.bf16.mxu1 %v2645_v2 }
  0x8d   : > { %1822 = vmatpush1.bf16.msra.mxu0 %v2600_v12  ;;  %2368 = vmatpush1.bf16.msra.mxu1 %v2600_v12 }
  0x8e   : > { %1823 = vmatprep.subr.bf16.mxu0 %v2605_v13  ;;  %2361 = vmatprep.subr.bf16.mxu1 %v2605_v13 }
  0x90   : > { %1478 = vmatmul.mubr.bf16.gmra.mrb[40].mxu0 %v2831_v44  ;;  %1669 = vmatmul.mubr.bf16.gmra.mrb[40].mxu1 %v2831_v44 }
  0x91   : > { %1824 = vmatpush1.bf16.msra.mxu0 %v2603_v14  ;;  %2369 = vmatpush1.bf16.msra.mxu1 %v2603_v14 }
  0x92   : > { %1825 = vmatprep.subr.bf16.mxu0 %v2608_v15  ;;  %2362 = vmatprep.subr.bf16.mxu1 %v2608_v15 }
  0x93   : > { %1487 = vmatprep.mubr.bf16.mxu0 %v2645_v2  ;;  %1678 = vmatprep.mubr.bf16.mxu1 %v2645_v2 }
  0x95   : > { %1826 = vmatpush1.bf16.msra.mxu0 %v2606_v16  ;;  %2370 = vmatpush1.bf16.msra.mxu1 %v2606_v16 }
  0x96   : > { %1827 = vmatprep.subr.bf16.mxu0 %v2611_v17  ;;  %2363 = vmatprep.subr.bf16.mxu1 %v2611_v17 }
  0x98   : > { %1488 = vmatmul.mubr.bf16.gmra.mrb[44].mxu0 %v2869_v55  ;;  %1679 = vmatmul.mubr.bf16.gmra.mrb[44].mxu1 %v2869_v55 }
  0x99   : > { %1828 = vmatpush1.bf16.msra.mxu0 %v2609_v18  ;;  %2371 = vmatpush1.bf16.msra.mxu1 %v2609_v18 }
  0x9a   : > { %1829 = vmatprep.subr.bf16.mxu0 %v2614_v19  ;;  %2364 = vmatprep.subr.bf16.mxu1 %v2614_v19 }
  0x9b   : > { %1851 = vmatprep.mubr.bf16.mxu0 %v2645_v2  ;;  %1859 = vmatprep.mubr.bf16.mxu1 %v2645_v2 }
  0x9d   : > { %1830 = vmatpush1.bf16.msra.mxu0 %v2612_v20  ;;  %2372 = vmatpush1.bf16.msra.mxu1 %v2612_v20 }
  0x9e   : > { %1831 = vmatprep.subr.bf16.mxu0 %v2617_v21  ;;  %2365 = vmatprep.subr.bf16.mxu1 %v2617_v21 }
  0xa1   : > { %1832 = vmatpush1.bf16.msra.mxu0 %v2615_v22  ;;  %2373 = vmatpush1.bf16.msra.mxu1 %v2615_v22 }
  0xa2   : > { %1833 = vmatprep.subr.bf16.mxu0 %v2620_v23  ;;  %2366 = vmatprep.subr.bf16.mxu1 %v2620_v23 }
  0xa5   : > { %1834 = vmatpush1.bf16.msra.mxu0 %v2618_v24  ;;  %2374 = vmatpush1.bf16.msra.mxu1 %v2618_v24 }
  0xa8   : > { %1852 = vmatmul.mubr.bf16.vlgmr.msra.gmra.mrb[48].mxu0 %v2801_v35  ;;  %1860 = vmatmul.mubr.bf16.vlgmr.msra.gmra.mrb[48].mxu1 %v2831_v44 }
  0xa9   : > { %1869 = vmatprep.mubr.bf16.mxu1 %v2645_v2 }
  0xb0   : > { %1870 = vmatmul.mubr.bf16.gmra.mrb[52].mxu1 %v2869_v55 }
  0xfb   : > { %v547_v25 = vpop.f32.mrb[0].mxu1  ;;  %v387_v26 = vpop.f32.mrb[0].mxu0 }
  0xfc   : > { %v581_v27 = vrot.slane %v547_v25, 1  ;;  %v549_v28 = vpop.f32.mrb[1].mxu1  ;;  %v389_v29 = vpop.f32.mrb[1].mxu0 }
  0xfd   : > { %v551_v30 = vpop.f32.mrb[2].mxu1  ;;  %v391_v31 = vpop.f32.mrb[2].mxu0  ;;  %v584_v36 = vrot.slane %v549_v28, 1 }
  0xfe   : > { %v582_v32 = vrot.slane %v551_v30, 1  ;;  %v553_v33 = vpop.f32.mrb[3].mxu1  ;;  %v393_v34 = vpop.f32.mrb[3].mxu0 }
  0xff   : > { %v585_v37 = vrot.slane %v553_v33, 1 }
 0x100   : > { %v583_v35 = vsel %vm580_vm0, %v581_v27, %v582_v32 }
 0x101   : > { %v601_v44 = vadd.f32 %v583_v35, %v387_v26  ;;  %v586_v2 = vsel %vm580_vm0, %v584_v36, %v585_v37 }
 0x102   : > { %v602_v38 = vadd.f32 %v586_v2, %v389_v29 }
 0x103   : > { %v557_v55 = vpop.f32.mrb[4].mxu1  ;;  %v397_v39 = vpop.f32.mrb[4].mxu0 }
 0x104   : > { %v587_v40 = vrot.slane %v557_v55, 1  ;;  %v559_v41 = vpop.f32.mrb[5].mxu1  ;;  %v399_v42 = vpop.f32.mrb[5].mxu0 }
 0x105   : > { %v589_v43 = vrot.slane %v559_v41, 1  ;;  %v561_v45 = vpop.f32.mrb[6].mxu1  ;;  %v401_v46 = vpop.f32.mrb[6].mxu0 }
 0x106   : > { %v588_v47 = vsel %vm580_vm0, %v582_v32, %v587_v40  ;;  %v591_v48 = vrot.slane %v561_v45, 1  ;;  %v563_v49 = vpop.f32.mrb[7].mxu1  ;;  %v402_v50 = vpop.f32.mrb[7].mxu0 }
 0x107   : > { %v603_v51 = vadd.f32 %v588_v47, %v391_v31  ;;  %v590_v52 = vsel %vm580_vm0, %v585_v37, %v589_v43  ;;  %v593_v53 = vrot.slane %v563_v49, 1 }
 0x108   : > { %v604_v54 = vadd.f32 %v590_v52, %v393_v34  ;;  %v592_v56 = vsel %vm580_vm0, %v587_v40, %v591_v48 }
 0x109   : > { %v605_v57 = vadd.f32 %v592_v56, %v397_v39  ;;  %v594_v58 = vsel %vm580_vm0, %v589_v43, %v593_v53 }
 0x10a   : > { %v606_v59 = vadd.f32 %v594_v58, %v399_v42 }
 0x10b   : > { %v567_v60 = vpop.f32.mrb[8].mxu1  ;;  %v405_v61 = vpop.f32.mrb[8].mxu0 }
 0x10c   : > { %v568_v62 = vpop.f32.mrb[9].mxu1  ;;  %v406_v63 = vpop.f32.mrb[9].mxu0 }
 0x10d   : > { %v569_v0 = vpop.f32.mrb[10].mxu1  ;;  %v407_v1 = vpop.f32.mrb[10].mxu0 }
 0x10e   : > { %v570_v3 = vpop.f32.mrb[11].mxu1  ;;  %v408_v4 = vpop.f32.mrb[11].mxu0 }
 0x11b   : > { %v738_v5 = vpop.f32.mrb[12].mxu0  ;;  %v929_v6 = vpop.f32.mrb[12].mxu1 }
 0x11c   : > { %v772_v7 = vrot.slane %v738_v5, 2  ;;  %v963_v8 = vrot.slane %v929_v6, 6  ;;  %v740_v9 = vpop.f32.mrb[13].mxu0  ;;  %v931_v10 = vpop.f32.mrb[13].mxu1 }
 0x11d   : > { %v775_v11 = vrot.slane %v740_v9, 2  ;;  %v742_v12 = vpop.f32.mrb[14].mxu0  ;;  %v933_v13 = vpop.f32.mrb[14].mxu1  ;;  %v966_v18 = vrot.slane %v931_v10, 6 }
 0x11e   : > { %v773_v14 = vrot.slane %v742_v12, 2  ;;  %v964_v15 = vrot.slane %v933_v13, 6  ;;  %v744_v16 = vpop.f32.mrb[15].mxu0  ;;  %v935_v17 = vpop.f32.mrb[15].mxu1 }
 0x11f   : > { %v776_v19 = vrot.slane %v744_v16, 2  ;;  %v967_v20 = vrot.slane %v935_v17, 6 }
 0x120   : > { %v774_v21 = vsel %vm771_vm1, %v772_v7, %v773_v14  ;;  %v965_v22 = vsel %vm962_vm2, %v963_v8, %v964_v15 }
 0x121   : > { %v792_v23 = vadd.f32 %v774_v21, %v601_v44  ;;  %v777_v24 = vsel %vm771_vm1, %v775_v11, %v776_v19  ;;  %v968_v25 = vsel %vm962_vm2, %v966_v18, %v967_v20 }
 0x122   : > { %v793_v26 = vadd.f32 %v777_v24, %v602_v38 }
 0x123   : > { %v748_v27 = vpop.f32.mrb[16].mxu0  ;;  %v939_v28 = vpop.f32.mrb[16].mxu1  ;;  %v983_v29 = vadd.f32 %v965_v22, %v792_v23 }
 0x124   : > { %v778_v30 = vrot.slane %v748_v27, 2  ;;  %v969_v31 = vrot.slane %v939_v28, 6  ;;  %v750_v32 = vpop.f32.mrb[17].mxu0  ;;  %v941_v33 = vpop.f32.mrb[17].mxu1  ;;  %v984_v34 = vadd.f32 %v968_v25, %v793_v26 }
 0x125   : > { %v780_v36 = vrot.slane %v750_v32, 2  ;;  %v971_v37 = vrot.slane %v941_v33, 6  ;;  %v752_v35 = vpop.f32.mrb[18].mxu0  ;;  %v943_v2 = vpop.f32.mrb[18].mxu1 }
 0x126   : > { %v779_v55 = vsel %vm771_vm1, %v773_v14, %v778_v30  ;;  %v970_v44 = vsel %vm962_vm2, %v964_v15, %v969_v31  ;;  %v782_v39 = vrot.slane %v752_v35, 2  ;;  %v754_v40 = vpop.f32.mrb[19].mxu0  ;;  %v973_v41 = vrot.slane %v943_v2, 6  ;;  %v945_v38 = vpop.f32.mrb[19].mxu1 }
 0x127   : > { %v794_v42 = vadd.f32 %v779_v55, %v603_v51  ;;  %v781_v43 = vsel %vm771_vm1, %v776_v19, %v780_v36  ;;  %v972_v45 = vsel %vm962_vm2, %v967_v20, %v971_v37  ;;  %v784_v46 = vrot.slane %v754_v40, 2 }
 0x128   : > { %v795_v47 = vadd.f32 %v781_v43, %v604_v54  ;;  %v783_v48 = vsel %vm771_vm1, %v778_v30, %v782_v39  ;;  %v974_v49 = vsel %vm962_vm2, %v969_v31, %v973_v41  ;;  %v975_v50 = vrot.slane %v945_v38, 6 }
 0x129   : > { %v796_v52 = vadd.f32 %v783_v48, %v605_v57  ;;  %v785_v53 = vsel %vm771_vm1, %v780_v36, %v784_v46  ;;  %v985_v56 = vadd.f32 %v970_v44, %v794_v42 }
 0x12a   : > { %v797_v58 = vadd.f32 %v785_v53, %v606_v59  ;;  %v976_v60 = vsel %vm962_vm2, %v971_v37, %v975_v50  ;;  %v986_v61 = vadd.f32 %v972_v45, %v795_v47 }
 0x12b   : > { %v949_v51 = vpop.f32.mrb[20].mxu1  ;;  %v758_v62 = vpop.f32.mrb[20].mxu0  ;;  %v987_v63 = vadd.f32 %v974_v49, %v796_v52 }
 0x12c   : > { %v950_v0 = vpop.f32.mrb[21].mxu1  ;;  %v759_v1 = vpop.f32.mrb[21].mxu0  ;;  %v988_v3 = vadd.f32 %v976_v60, %v797_v58 }
 0x12d   : > { %v951_v54 = vpop.f32.mrb[22].mxu1  ;;  %v760_v4 = vpop.f32.mrb[22].mxu0 }
 0x12e   : > { %v952_v5 = vpop.f32.mrb[23].mxu1  ;;  %v761_v6 = vpop.f32.mrb[23].mxu0 }
 0x13b   : > { %v1120_v7 = vpop.f32.mrb[24].mxu0  ;;  %v1311_v8 = vpop.f32.mrb[24].mxu1 }
 0x13c   : > { %v1154_v57 = vrot.slane %v1120_v7, 7  ;;  %v1122_v9 = vpop.f32.mrb[25].mxu0  ;;  %v1312_v10 = vpop.f32.mrb[25].mxu1 }
 0x13d   : > { %v1157_v11 = vrot.slane %v1122_v9, 7  ;;  %v1124_v59 = vpop.f32.mrb[26].mxu0  ;;  %v1313_v12 = vpop.f32.mrb[26].mxu1 }
 0x13e   : > { %v1155_v13 = vrot.slane %v1124_v59, 7  ;;  %v1126_v14 = vpop.f32.mrb[27].mxu0  ;;  %v1315_v15 = vpop.f32.mrb[27].mxu1 }
 0x13f   : > { %v1158_v16 = vrot.slane %v1126_v14, 7 }
 0x140   : > { %v1156_v17 = vsel %vm1153_vm3, %v1154_v57, %v1155_v13 }
 0x141   : > { %v1174_v18 = vadd.f32 %v1156_v17, %v983_v29  ;;  %v1159_v19 = vsel %vm1153_vm3, %v1157_v11, %v1158_v16 }
 0x142   : > { %v1175_v20 = vadd.f32 %v1159_v19, %v984_v34 }
 0x143   : > { %v3211_v21 = vadd.f32 %v1313_v12, %v1174_v18  ;;  %v1130_v22 = vpop.f32.mrb[28].mxu0  ;;  %v1319_v23 = vpop.f32.mrb[28].mxu1 }
 0x144   : > { %v3213_v24 = vadd.f32 %v1315_v15, %v1175_v20  ;;  %v1160_v25 = vrot.slane %v1130_v22, 7  ;;  %v1132_v26 = vpop.f32.mrb[29].mxu0  ;;  %v1321_v27 = vpop.f32.mrb[29].mxu1 }
 0x145   : > { %v1162_v28 = vrot.slane %v1132_v26, 7  ;;  %v1134_v30 = vpop.f32.mrb[30].mxu0  ;;  %v1323_v31 = vpop.f32.mrb[30].mxu1 }
 0x146   : > { %v1164_v32 = vrot.slane %v1134_v30, 7  ;;  %v1136_v33 = vpop.f32.mrb[31].mxu0  ;;  %v1161_v36 = vsel %vm1153_vm3, %v1155_v13, %v1160_v25  ;;  %v1325_v29 = vpop.f32.mrb[31].mxu1 }
 0x147   : > { %v1166_v37 = vrot.slane %v1136_v33, 7  ;;  %v1176_v35 = vadd.f32 %v1161_v36, %v985_v56  ;;  %v1163_v34 = vsel %vm1153_vm3, %v1158_v16, %v1162_v28 }
 0x148   : > { %v1177_v2 = vadd.f32 %v1163_v34, %v986_v61  ;;  %v1165_v55 = vsel %vm1153_vm3, %v1160_v25, %v1164_v32 }
 0x149   : > { %v1336_v44 = vadd.f32 %v1319_v23, %v1176_v35  ;;  %v1178_v39 = vadd.f32 %v1165_v55, %v987_v63  ;;  %v1167_v40 = vsel %vm1153_vm3, %v1162_v28, %v1166_v37 }
 0x14a   : > { %v1337_v41 = vadd.f32 %v1321_v27, %v1177_v2  ;;  %v1179_v38 = vadd.f32 %v1167_v40, %v988_v3 }
 0x14b   : > { %v3219_v42 = vadd.f32 %v1323_v31, %v1178_v39  ;;  %v1329_v43 = vpop.f32.mrb[32].mxu1  ;;  %v1140_v45 = vpop.f32.mrb[32].mxu0 }
 0x14c   : > { %v3221_v46 = vadd.f32 %v1325_v29, %v1179_v38  ;;  %v1330_v47 = vpop.f32.mrb[33].mxu1  ;;  %v1141_v48 = vpop.f32.mrb[33].mxu0 }
 0x14d   : > { %v1331_v49 = vpop.f32.mrb[34].mxu1  ;;  %v1142_v50 = vpop.f32.mrb[34].mxu0 }
 0x14e   : > { %v1332_v52 = vpop.f32.mrb[35].mxu1  ;;  %v1143_v53 = vpop.f32.mrb[35].mxu0 }
 0x15b   : > { %v1662_v56 = vpop.f32.mrb[36].mxu1  ;;  %v1471_v58 = vpop.f32.mrb[36].mxu0 }
 0x15c   : > { %v1663_v60 = vpop.f32.mrb[37].mxu1  ;;  %v1472_v61 = vpop.f32.mrb[37].mxu0 }
 0x15d   : > { %v1664_v51 = vpop.f32.mrb[38].mxu1  ;;  %v1473_v62 = vpop.f32.mrb[38].mxu0  ;;  %v1914_v60 = vlaneseq }
 0x15e   : > { %v1666_v63 = vpop.f32.mrb[39].mxu1  ;;  %v1475_v0 = vpop.f32.mrb[39].mxu0  ;;  %v1505_v1 = vrot.slane %v1473_v62, 4  ;;  %v1696_v4 = vrot.slane %v1664_v51, 5 }
 0x15f   : > { %v1699_v57 = vrot.slane %v1666_v63, 5  ;;  %v1508_v9 = vrot.slane %v1475_v0, 4  ;;  %v1915_v61 = vshrl.u32 %v1914_v60, 7 }
 0x161   : > { %v1916_v63 = vsub.s32 0, %v1915_v61 }
 0x163   : > { %v1479_v3 = vpop.f32.mrb[40].mxu0  ;;  %v1670_v54 = vpop.f32.mrb[40].mxu1 }
 0x164   : > { %v1506_v5 = vrot.slane %v1479_v3, 4  ;;  %v1697_v6 = vrot.slane %v1670_v54, 5  ;;  %v1481_v7 = vpop.f32.mrb[41].mxu0  ;;  %v1672_v8 = vpop.f32.mrb[41].mxu1  ;;  %v1912_v3 = vld [vmem:[%s3263_s2] sm:$0x3] }
 0x165   : > { %v1509_v10 = vrot.slane %v1481_v7, 4  ;;  %v1700_v11 = vrot.slane %v1672_v8, 5  ;;  %v1483_v59 = vpop.f32.mrb[42].mxu0  ;;  %v1674_v12 = vpop.f32.mrb[42].mxu1 }
 0x166   : > { %v1507_v13 = vsel %vm1504_vm4, %v1505_v1, %v1506_v5  ;;  %v1698_v14 = vsel %vm1695_vm5, %v1696_v4, %v1697_v6  ;;  %v1511_v15 = vrot.slane %v1483_v59, 4  ;;  %v1485_v16 = vpop.f32.mrb[43].mxu0  ;;  %v1702_v17 = vrot.slane %v1674_v12, 5  ;;  %v1676_v18 = vpop.f32.mrb[43].mxu1 }
 0x167   : > { %v1525_v19 = vadd.f32 %v1507_v13, %v3211_v21  ;;  %v1510_v20 = vsel %vm1504_vm4, %v1508_v9, %v1509_v10  ;;  %v1701_v22 = vsel %vm1695_vm5, %v1699_v57, %v1700_v11  ;;  %v1513_v23 = vrot.slane %v1485_v16, 4 }
 0x168   : > { %v1526_v25 = vadd.f32 %v1510_v20, %v3213_v24  ;;  %v1512_v26 = vsel %vm1504_vm4, %v1506_v5, %v1511_v15  ;;  %v1703_v27 = vsel %vm1695_vm5, %v1697_v6, %v1702_v17  ;;  %v1704_v28 = vrot.slane %v1676_v18, 5 }
 0x169   : > { %v1716_v30 = vadd.f32 %v1698_v14, %v1525_v19  ;;  %v1527_v31 = vadd.f32 %v1512_v26, %v1336_v44  ;;  %v1514_v32 = vsel %vm1504_vm4, %v1509_v10, %v1513_v23  ;;  %v1917_v9 = vrot.slane %v1912_v3, %v1916_v63 }
 0x16a   : > { %v1717_v33 = vadd.f32 %v1701_v22, %v1526_v25  ;;  %v1528_v36 = vadd.f32 %v1514_v32, %v1337_v41  ;;  %v1705_v21 = vsel %vm1695_vm5, %v1700_v11, %v1704_v28 }
 0x16b   : > { %v1718_v29 = vadd.f32 %v1703_v27, %v1527_v31  ;;  %v1489_v37 = vpop.f32.mrb[44].mxu0  ;;  %v1680_v35 = vpop.f32.mrb[44].mxu1 }
 0x16c   : > { %v1719_v34 = vadd.f32 %v1705_v21, %v1528_v36  ;;  %v1515_v2 = vrot.slane %v1489_v37, 4  ;;  %v1706_v55 = vrot.slane %v1680_v35, 5  ;;  %v1491_v24 = vpop.f32.mrb[45].mxu0  ;;  %v1682_v39 = vpop.f32.mrb[45].mxu1 }
 0x16d   : > { %v1517_v40 = vrot.slane %v1491_v24, 4  ;;  %v1708_v38 = vrot.slane %v1682_v39, 5  ;;  %v1684_v43 = vpop.f32.mrb[46].mxu1  ;;  %v1493_v45 = vpop.f32.mrb[46].mxu0 }
 0x16e   : > { %v1516_v44 = vsel %vm1504_vm4, %v1511_v15, %v1515_v2  ;;  %v1707_v47 = vsel %vm1695_vm5, %v1702_v17, %v1706_v55  ;;  %v1685_v48 = vpop.f32.mrb[47].mxu1  ;;  %v1494_v41 = vpop.f32.mrb[47].mxu0 }
 0x16f   : > { %v1529_v49 = vadd.f32 %v1516_v44, %v3219_v42  ;;  %v1518_v50 = vsel %vm1504_vm4, %v1513_v23, %v1517_v40  ;;  %v1709_v52 = vsel %vm1695_vm5, %v1704_v28, %v1708_v38  ;;  %v1920_v42 = vsub.s32 1, %v1915_v61 }
 0x170   : > { %v1530_v53 = vadd.f32 %v1518_v50, %v3221_v46 }
 0x171   : > { %v1720_v56 = vadd.f32 %v1707_v47, %v1529_v49  ;;  %v1921_v13 = vrot.slane %v1912_v3, %v1920_v42 }
 0x172   : > { %v1721_v58 = vadd.f32 %v1709_v52, %v1530_v53 }
 0x17b   : > { %v1853_v51 = vpop.f32.mrb[48].mxu0  ;;  %v1861_v62 = vpop.f32.mrb[48].mxu1 }
 0x17c   : > { %v1854_v0 = vpop.f32.mrb[49].mxu0  ;;  %v1863_v1 = vpop.f32.mrb[49].mxu1  ;;  %v1887_v5 = vrot.slane %v1861_v62, 6 }
 0x17d   : > { %v1855_v54 = vpop.f32.mrb[50].mxu0  ;;  %v1865_v4 = vpop.f32.mrb[50].mxu1  ;;  %v1890_v57 = vrot.slane %v1863_v1, 6 }
 0x17e   : > { %v1886_v6 = vrot.slane %v1855_v54, 6  ;;  %v1892_v7 = vrot.slane %v1865_v4, 6  ;;  %v1857_v46 = vpop.f32.mrb[51].mxu0  ;;  %v1867_v8 = vpop.f32.mrb[51].mxu1 }
 0x17f   : > { %v1889_v10 = vrot.slane %v1857_v46, 6  ;;  %v1894_v11 = vrot.slane %v1867_v8, 6 }
 0x180   : > { %v1888_v59 = vsel %vm962_vm2, %v1886_v6, %v1887_v5  ;;  %v1893_v12 = vsel %vm962_vm2, %v1887_v5, %v1892_v7 }
 0x181   : > { %v1906_v14 = vadd.f32 %v1888_v59, %v1716_v30  ;;  %v1908_v15 = vadd.f32 %v1893_v12, %v1718_v29  ;;  %v1891_v16 = vsel %vm962_vm2, %v1889_v10, %v1890_v57  ;;  %v1895_v17 = vsel %vm962_vm2, %v1890_v57, %v1894_v11 }
 0x182   : > { %v1907_v18 = vadd.f32 %v1891_v16, %v1717_v33  ;;  %v1909_v19 = vadd.f32 %v1895_v17, %v1719_v34 }
 0x183   : > { %v1924_v20 = vadd.f32 %v1917_v9, %v1906_v14  ;;  %v1926_v22 = vadd.f32 %v1917_v9, %v1908_v15  ;;  %v1871_v23 = vpop.f32.mrb[52].mxu1 }
 0x184   : > { %v1925_v25 = vadd.f32 %v1921_v13, %v1907_v18  ;;  %v1927_v26 = vadd.f32 %v1921_v13, %v1909_v19  ;;  %v1896_v27 = vrot.slane %v1871_v23, 6  ;;  %v1873_v28 = vpop.f32.mrb[53].mxu1 }
 0x185   : > { %v1930_v31 = vmax.f32 %v1924_v20, 0.0  ;;  %v1932_v32 = vmax.f32 %v1926_v22, 0.0  ;;  %v1898_v36 = vrot.slane %v1873_v28, 6  ;;  %v1875_v21 = vpop.f32.mrb[54].mxu1 }
 0x186   : > { %v1931_v30 = vmax.f32 %v1925_v25, 0.0  ;;  %v1933_v29 = vmax.f32 %v1927_v26, 0.0  ;;  %v1897_v37 = vsel %vm962_vm2, %v1892_v7, %v1896_v27  ;;  %v1876_v35 = vpop.f32.mrb[55].mxu1 }
 0x187   : > { %v1910_v33 = vadd.f32 %v1897_v37, %v1720_v56  ;;  %v1899_v34 = vsel %vm962_vm2, %v1894_v11, %v1898_v36 }
 0x188   : > { %v2356_v2 = vpack.c.bf16 %v1931_v30, %v1930_v31  ;;  %v2357_v55 = vpack.c.bf16 %v1933_v29, %v1932_v32  ;;  %v1911_v24 = vadd.f32 %v1899_v34, %v1721_v58 }
 0x189   : > { %v1928_v39 = vadd.f32 %v1917_v9, %v1910_v33 }
 0x18a   : > { %1956 = vst [vmem:[%s233_s16] sm:$0xff] %v2356_v2  ;;  %1957 = vst [vmem:[%s233_s16 + $0x8] sm:$0xff] %v2357_v55  ;;  %v1929_v40 = vadd.f32 %v1921_v13, %v1911_v24 }
 0x18b   : > { %v1934_v38 = vmax.f32 %v1928_v39, 0.0 }
 0x18c   : > { %v1935_v43 = vmax.f32 %v1929_v40, 0.0 }
 0x18e   : > { %v2358_v45 = vpack.c.bf16 %v1935_v43, %v1934_v38 }
 0x190   : > { %1958 = vst [vmem:[%s233_s16 + $0x10] sm:$0xff] %v2358_v45 }
 0x191 PF: > { %s13_s14 = sadd.s32 1, %s2643_s14   ;;  %s3265_s12 = smov %s2639_s13 }
 0x192   : > { %p10_p5 = scmp.ge.s32.totalorder %s13_s14, 4   ;;  %s3266_s13 = smov %s3268_s15 }
 0x194   :  { %12 = sbr.rel (!%p10_p5) target bundleno = 2 (0x2), region = 76 }

// kernel: vgg_forward.9
= control target key start
LH: loop header
LB: loop body
LE: loop exit
PB: predicated region body
PF: predicated region fallthrough
CT: control target
= control target key end

     0   :  { %s446_s0 = inlined_call_operand.vmem [shape: bf16[2,16,256], index: 0, kind: input, shape index: {}]   ;;  %s447_s1 = inlined_call_operand.vmem [shape: bf16[256,128], index: 1, kind: input, shape index: {}]   ;;  %s448_s2 = inlined_call_operand.vmem [shape: f32[1,128], index: 2, kind: input, shape index: {}]   ;;  %s449_s3 = inlined_call_operand.hbm [shape: f32[2,128], index: 3, kind: output, shape index: {}]  }
   0x1   :  { %v310_v0 = vld [vmem:[%s447_s1 + $0x40] sm:$0xff]   ;;  %v312_v2 = vld [vmem:[%s447_s1 + $0x48] sm:$0xff]   ;;  %v314_v4 = vld [vmem:[%s447_s1 + $0x50] sm:$0xff]  }
   0x2   :  { %v311_v1 = vld [vmem:[%s447_s1] sm:$0xff]   ;;  %287 = vmatprep.subr.bf16.mxu0 %v310_v0  ;;  %v313_v3 = vld [vmem:[%s447_s1 + $0x8] sm:$0xff]   ;;  %v315_v5 = vld [vmem:[%s447_s1 + $0x10] sm:$0xff]  }
   0x3   :  { %288 = vmatpush3.bf16.msra.mxu0 %v311_v1  ;;  %v316_v6 = vld [vmem:[%s447_s1 + $0x58] sm:$0xff]   ;;  %v318_v8 = vld [vmem:[%s447_s1 + $0x60] sm:$0xff]   ;;  %v320_v10 = vld [vmem:[%s447_s1 + $0x68] sm:$0xff]  }
   0x4   :  { %289 = vmatprep.subr.bf16.mxu0 %v312_v2  ;;  %v317_v7 = vld [vmem:[%s447_s1 + $0x18] sm:$0xff]   ;;  %v319_v9 = vld [vmem:[%s447_s1 + $0x20] sm:$0xff]   ;;  %v17_v12 = vld [vmem:[%s446_s0 + $0x8] sm:$0xff] }
   0x5   :  { %v16_v11 = vld [vmem:[%s446_s0] sm:$0xff]  ;;  %v18_v13 = vld [vmem:[%s446_s0 + $0x10] sm:$0xff]  ;;  %v19_v14 = vld [vmem:[%s446_s0 + $0x18] sm:$0xff]  ;;  %v22_v17 = vunpack.c.l.bf16 %v17_v12  ;;  %v23_v18 = vunpack.c.h.bf16 %v17_v12 }
   0x6   :  { %v20_v15 = vunpack.c.l.bf16 %v16_v11  ;;  %v21_v16 = vunpack.c.h.bf16 %v16_v11 }
   0x7   :  { %290 = vmatpush3.bf16.msra.mxu0 %v313_v3 }
   0x8   :  { %291 = vmatprep.subr.bf16.mxu0 %v314_v4 }
   0xb   :  { %292 = vmatpush3.bf16.msra.mxu0 %v315_v5 }
   0xc   :  { %293 = vmatprep.subr.bf16.mxu0 %v316_v6 }
   0xf   :  { %294 = vmatpush3.bf16.msra.mxu0 %v317_v7 }
  0x10   :  { %295 = vmatprep.subr.bf16.mxu0 %v318_v8 }
  0x11   :  { %8 = vsyncpa [#allocation3], 0  ;;  %v24_v19 = vunpack.c.l.bf16 %v18_v13  ;;  %v25_v20 = vunpack.c.h.bf16 %v18_v13  ;;  %v26_v21 = vunpack.c.l.bf16 %v19_v14  ;;  %v27_v22 = vunpack.c.h.bf16 %v19_v14  ;;  %v321_v23 = vld [vmem:[%s447_s1 + $0x28] sm:$0xff]   ;;  %v322_v26 = vld [vmem:[%s447_s1 + $0x70] sm:$0xff]   ;;  %s350_s25 = smov [#allocation2]  }
  0x12   :  { %v35_v24 = vadd.f32 %v23_v18, %v21_v16  ;;  %v28_v25 = vadd.f32 %v22_v17, %v20_v15  ;;  %v323_v33 = vld [vmem:[%s447_s1 + $0x30] sm:$0xff]   ;;  %v324_v36 = vld [vmem:[%s447_s1 + $0x78] sm:$0xff]   ;;  %vm112_vm0 = vcmask 1041409   ;;  %s262_s26 = sshll.u32 %s350_s25, 4  ;;  %s263_s26 = int_to_ptr.vmem [resolvable:$true] %s262_s26 }
  0x13   :  { %296 = vmatpush3.bf16.msra.mxu0 %v319_v9  ;;  %v49_v27 = vadd.f32 %v27_v22, %v25_v20  ;;  %v42_v28 = vadd.f32 %v26_v21, %v24_v19  ;;  %v325_v43 = vld [vmem:[%s447_s1 + $0x38] sm:$0xff]   ;;  %s326_s27 = scalar_lea.vmem %s263_s26, 32  ;;  %p331_p1 = scmp.lt.s32.totalorder %s263_s26, %s263_s26 }
  0x14   :  { %297 = vmatprep.subr.bf16.mxu0 %v320_v10  ;;  %v36_v29 = vrot.slane %v35_v24, 4  ;;  %v29_v30 = vrot.slane %v28_v25, 4  ;;  %v270_v10 = vld [vmem:[%s448_s2] ss:$0 sm:$0xff]  ;;  %p327_p0 = scmp.ne.s32.totalorder %s263_s26, %s326_s27  ;;  %p332_p2 = scmp.lt.s32.totalorder %s326_s27, %s326_s27 }
  0x15   :  { %v50_v31 = vrot.slane %v49_v27, 4  ;;  %v43_v32 = vrot.slane %v42_v28, 4 }
  0x16   :  { %v37_v34 = vadd.f32 %v36_v29, %v35_v24  ;;  %v30_v35 = vadd.f32 %v29_v30, %v28_v25  ;;  %p333_p3 = por %p332_p2, %p331_p1 }
  0x17   :  { %298 = vmatpush3.bf16.msra.mxu0 %v321_v23  ;;  %v51_v37 = vadd.f32 %v50_v31, %v49_v27  ;;  %v44_v38 = vadd.f32 %v43_v32, %v42_v28 }
  0x18   :  { %299 = vmatprep.subr.bf16.mxu0 %v322_v26  ;;  %v38_v39 = vrot.slane %v37_v34, 2  ;;  %v31_v40 = vrot.slane %v30_v35, 2  ;;  %p334_p4 = pnand %p333_p3, %p327_p0 }
  0x19   :  { %v52_v41 = vrot.slane %v51_v37, 2  ;;  %v45_v42 = vrot.slane %v44_v38, 2 }
  0x1a   :  { %v39_v44 = vadd.f32 %v38_v39, %v37_v34  ;;  %v32_v45 = vadd.f32 %v31_v40, %v30_v35 }
  0x1b   :  { %300 = vmatpush3.bf16.msra.mxu0 %v323_v33  ;;  %v53_v46 = vadd.f32 %v52_v41, %v51_v37  ;;  %v46_v47 = vadd.f32 %v45_v42, %v44_v38 }
  0x1c   :  { %301 = vmatprep.subr.bf16.mxu0 %v324_v36  ;;  %v40_v48 = vrot.slane %v39_v44, 1  ;;  %v33_v49 = vrot.slane %v32_v45, 1 }
  0x1d   :  { %v54_v50 = vrot.slane %v53_v46, 1  ;;  %v47_v51 = vrot.slane %v46_v47, 1 }
  0x1e   :  { %v41_v52 = vadd.f32 %v40_v48, %v39_v44  ;;  %v34_v53 = vadd.f32 %v33_v49, %v32_v45 }
  0x1f   :  { %302 = vmatpush3.bf16.msra.mxu0 %v325_v43  ;;  %v55_v54 = vadd.f32 %v54_v50, %v53_v46  ;;  %v48_v55 = vadd.f32 %v47_v51, %v46_v47 }
  0x20   :  { %v58_v56 = vmul.f32 0.0625, %v41_v52  ;;  %v57_v57 = vmul.f32 0.0625, %v34_v53 }
  0x21   :  { %v60_v58 = vmul.f32 0.0625, %v55_v54  ;;  %v59_v59 = vmul.f32 0.0625, %v48_v55 }
  0x22   :  { %v62_v60 = vpack.c.bf16 %v58_v56, %v58_v56  ;;  %v61_v61 = vpack.c.bf16 %v57_v57, %v57_v57 }
  0x23   :  { %v64_v62 = vpack.c.bf16 %v60_v58, %v60_v58  ;;  %v63_v63 = vpack.c.bf16 %v59_v59, %v59_v59 }
  0x24   :  { %v109_v0 = vunpack.c.l.b16 %v62_v60  ;;  %v108_v1 = vunpack.c.l.b16 %v61_v61 }
  0x25   :  { %v111_v2 = vunpack.c.l.b16 %v64_v62  ;;  %v110_v3 = vunpack.c.l.b16 %v63_v63 }
  0x27   :  { %v114_v4 = vsel %vm112_vm0, %v111_v2, %v109_v0  ;;  %v113_v5 = vsel %vm112_vm0, %v110_v3, %v108_v1 }
  0x28   :  { %v116_v6 = vpack.c.b16 %v114_v4, %v114_v4  ;;  %v115_v7 = vpack.c.b16 %v113_v5, %v113_v5 }
  0x2a   :  { %247 = vmatprep.mubr.bf16.mxu0 %v116_v6 }
  0x2b   :  { %248 = vmatmul.mubr.bf16.vlgmr.msra.gmra.mrb[0].mxu0 %v115_v7 }
  0xfe   :  { %v303_v8 = vpop.f32.mrb[0].mxu0 }
  0xff   :  { %v304_v9 = vpop.f32.mrb[1].mxu0 }
 0x100   :  { %v305_v11 = vadd.f32 %v304_v9, %v303_v8  ;;  %v306_v12 = vpop.f32.mrb[2].mxu0 }
 0x101   :  { %v307_v13 = vpop.f32.mrb[3].mxu0 }
 0x102   :  { %v250_v14 = vadd.f32 %v305_v11, %v270_v10 }
 0x104   :  { %255 = vst [vmem:[#allocation2] sm:$0x3] %v250_v14 }
 0x105   :  { %337 = shalt.err (!%p334_p4)
}
 0x106   :  { %s338_s30 = scalar_lea.hbm %s449_s3, 32 }
 0x107   :  { %p339_p5 = scmp.ne.s32.totalorder %s449_s3, %s338_s30  ;;  %p342_p6 = scmp.lt.u32.totalorder %s338_s30, %s449_s3 }
 0x109   :  { %p344_p7 = pnand %p342_p6, %p339_p5 }
 0x10b   :  { %347 = shalt.err (!%p344_p7)
}
 0x10c   :  { %265 = dma.vmem_to_hbm [thread:$0]  %s263_s26, 32, %s449_s3, [#allocation3]  }
 0x10d   :  { %348 = dma.done.wait [#allocation3], 32  }
 0x10e   :  { %349 = vsyncadd [#allocation3], 4294967264 }
 0x10f   :  { %269 = vsyncpa [#allocation3], 1 }

// kernel: vgg_forward.8
= control target key start
LH: loop header
LB: loop body
LE: loop exit
PB: predicated region body
PF: predicated region fallthrough
CT: control target
= control target key end

     0   :  { %s4054_s12 = smov 0   ;;  %s4056_s13 = smov 0   ;;  %s5114_s0 = inlined_call_operand.vmem [shape: bf16[2,38,256], index: 0, kind: input, shape index: {}]   ;;  %s5115_s1 = inlined_call_operand.vmem [shape: bf16[9,256,256], index: 1, kind: input, shape index: {}]   ;;  %s5116_s2 = inlined_call_operand.vmem [shape: f32[1,256], index: 2, kind: input, shape index: {}]   ;;  %s5117_s3 = inlined_call_operand.vmem [shape: bf16[2,24,256], index: 3, kind: output, shape index: {}]  }
   0x1   :  { %s4058_s14 = smov 0  }
   0x2 LB: > { %s25_s15 = sadd.s32 1, %s4028_s13  ;;  %p2947_p0 = scmp.ge.s32.totalorder %s4032_s14, 1  ;;  %s4032_s14 = sphi %s4058_s14, %s13_s14   ;;  %s4028_s13 = sphi %s4056_s13, %s5119_s13   ;;  %s4024_s12 = sphi %s4054_s12, %s5118_s12  }
   0x3   : > { %p27_p1 = scmp.ge.s32.totalorder %s25_s15, 2  ;;  %p172_p2 = scmp.lt.s32.totalorder %s4032_s14, 3 }
   0x5   : > { %s5121_s15 = smov (%p27_p1, %s25_s15), 0  ;;  %p173_p3 = pnand %p2947_p0, %p172_p2 }
   0x6   : > { %v3566_v0 = vld [vmem:[%s5115_s1 + $0x4] ss:$8 sps:$4 sm:$0xff] (!%p173_p3)   ;;  %v3570_v2 = vld [vmem:[%s5115_s1] ss:$8 sps:$4 sm:$0xff] (!%p173_p3)   ;;  %v3572_v4 = vld [vmem:[%s5115_s1 + $0x14] ss:$8 sps:$4 sm:$0xff] (!%p173_p3)  }
   0x7   : > { %176 = sbr.rel (%p173_p3) target bundleno = 561 (0x231), region = 32  ;;  %v3568_v1 = vld [vmem:[%s5115_s1 + $0x104] ss:$8 sps:$4 sm:$0xff] (!%p173_p3)   ;;  %459 = vmatprep.subr.bf16.mxu0 (!%p173_p3), %v3566_v0  ;;  %v3571_v3 = vld [vmem:[%s5115_s1 + $0x100] ss:$8 sps:$4 sm:$0xff] (!%p173_p3)   ;;  %p209_p4 = scmp.lt.s32.totalorder (!%p173_p3), %s4024_s12, 1 }
   0x8   : > { %715 = vmatprep.subr.bf16.mxu1 (!%p173_p3), %v3568_v1  ;;  %460 = vmatpush1.bf16.msra.mxu0 (!%p173_p3), %v3570_v2  ;;  %v3574_v5 = vld [vmem:[%s5115_s1 + $0x114] ss:$8 sps:$4 sm:$0xff] (!%p173_p3)   ;;  %v3576_v6 = vld [vmem:[%s5115_s1 + $0x10] ss:$8 sps:$4 sm:$0xff] (!%p173_p3)   ;;  %v3578_v8 = vld [vmem:[%s5115_s1 + $0x24] ss:$8 sps:$4 sm:$0xff] (!%p173_p3)  }
   0x9   : > { %716 = vmatpush1.bf16.msra.mxu1 (!%p173_p3), %v3571_v3  ;;  %461 = vmatprep.subr.bf16.mxu0 (!%p173_p3), %v3572_v4  ;;  %v3577_v7 = vld [vmem:[%s5115_s1 + $0x110] ss:$8 sps:$4 sm:$0xff] (!%p173_p3)   ;;  %v3580_v9 = vld [vmem:[%s5115_s1 + $0x124] ss:$8 sps:$4 sm:$0xff] (!%p173_p3)   ;;  %v3582_v10 = vld [vmem:[%s5115_s1 + $0x20] ss:$8 sps:$4 sm:$0xff] (!%p173_p3)  }
   0xa   : > { %717 = vmatprep.subr.bf16.mxu1 (!%p173_p3), %v3574_v5  ;;  %v3583_v11 = vld [vmem:[%s5115_s1 + $0x120] ss:$8 sps:$4 sm:$0xff] (!%p173_p3)   ;;  %v3584_v12 = vld [vmem:[%s5115_s1 + $0x34] ss:$8 sps:$4 sm:$0xff] (!%p173_p3)   ;;  %v3588_v14 = vld [vmem:[%s5115_s1 + $0x30] ss:$8 sps:$4 sm:$0xff] (!%p173_p3)  }
   0xb   : > { %v3586_v13 = vld [vmem:[%s5115_s1 + $0x134] ss:$8 sps:$4 sm:$0xff] (!%p173_p3)   ;;  %v3589_v15 = vld [vmem:[%s5115_s1 + $0x130] ss:$8 sps:$4 sm:$0xff] (!%p173_p3)   ;;  %v3590_v16 = vld [vmem:[%s5115_s1 + $0x44] ss:$8 sps:$4 sm:$0xff] (!%p173_p3)  }
   0xc   : > { %462 = vmatpush1.bf16.msra.mxu0 (!%p173_p3), %v3576_v6  ;;  %v3592_v17 = vld [vmem:[%s5115_s1 + $0x144] ss:$8 sps:$4 sm:$0xff] (!%p173_p3)   ;;  %v3594_v18 = vld [vmem:[%s5115_s1 + $0x40] ss:$8 sps:$4 sm:$0xff] (!%p173_p3)   ;;  %v3596_v20 = vld [vmem:[%s5115_s1 + $0x54] ss:$8 sps:$4 sm:$0xff] (!%p173_p3)  }
   0xd   : > { %718 = vmatpush1.bf16.msra.mxu1 (!%p173_p3), %v3577_v7  ;;  %463 = vmatprep.subr.bf16.mxu0 (!%p173_p3), %v3578_v8  ;;  %v3595_v19 = vld [vmem:[%s5115_s1 + $0x140] ss:$8 sps:$4 sm:$0xff] (!%p173_p3)   ;;  %v3598_v21 = vld [vmem:[%s5115_s1 + $0x154] ss:$8 sps:$4 sm:$0xff] (!%p173_p3)   ;;  %v3600_v22 = vld [vmem:[%s5115_s1 + $0x50] ss:$8 sps:$4 sm:$0xff] (!%p173_p3)  }
   0xe   : > { %719 = vmatprep.subr.bf16.mxu1 %v3580_v9  ;;  %v3601_v23 = vld [vmem:[%s5115_s1 + $0x150] ss:$8 sps:$4 sm:$0xff]   ;;  %v3602_v24 = vld [vmem:[%s5115_s1 + $0x64] ss:$8 sps:$4 sm:$0xff]   ;;  %v3606_v26 = vld [vmem:[%s5115_s1 + $0x60] ss:$8 sps:$4 sm:$0xff]  }
   0xf   : > { %v3604_v25 = vld [vmem:[%s5115_s1 + $0x164] ss:$8 sps:$4 sm:$0xff]   ;;  %v3607_v27 = vld [vmem:[%s5115_s1 + $0x160] ss:$8 sps:$4 sm:$0xff]   ;;  %v3608_v28 = vld [vmem:[%s5115_s1 + $0x74] ss:$8 sps:$4 sm:$0xff]  }
  0x10   : > { %464 = vmatpush1.bf16.msra.mxu0 %v3582_v10  ;;  %v3610_v29 = vld [vmem:[%s5115_s1 + $0x174] ss:$8 sps:$4 sm:$0xff]   ;;  %v3612_v30 = vld [vmem:[%s5115_s1 + $0x70] ss:$8 sps:$4 sm:$0xff]   ;;  %v3614_v32 = vld [vmem:[%s5115_s1 + $0x84] ss:$8 sps:$4 sm:$0xff]  }
  0x11   : > { %720 = vmatpush1.bf16.msra.mxu1 %v3583_v11  ;;  %465 = vmatprep.subr.bf16.mxu0 %v3584_v12  ;;  %v3613_v31 = vld [vmem:[%s5115_s1 + $0x170] ss:$8 sps:$4 sm:$0xff]   ;;  %v3616_v33 = vld [vmem:[%s5115_s1 + $0x184] ss:$8 sps:$4 sm:$0xff]   ;;  %v3618_v34 = vld [vmem:[%s5115_s1 + $0x80] ss:$8 sps:$4 sm:$0xff]  }
  0x12   : > { %721 = vmatprep.subr.bf16.mxu1 %v3586_v13  ;;  %v3619_v35 = vld [vmem:[%s5115_s1 + $0x180] ss:$8 sps:$4 sm:$0xff]   ;;  %v3620_v36 = vld [vmem:[%s5115_s1 + $0x94] ss:$8 sps:$4 sm:$0xff]   ;;  %s5123_s12 = smov (!%p209_p4, %s4024_s12), 1  ;;  %vm782_vm0 = vcmask 1046528  }
  0x13   : > { %v3622_v37 = vld [vmem:[%s5115_s1 + $0x194] ss:$8 sps:$4 sm:$0xff]   ;;  %v3624_v38 = vld [vmem:[%s5115_s1 + $0x90] ss:$8 sps:$4 sm:$0xff]   ;;  %v3626_v40 = vld [vmem:[%s5115_s1 + $0xa4] ss:$8 sps:$4 sm:$0xff]  }
  0x14   : > { %466 = vmatpush1.bf16.msra.mxu0 %v3588_v14  ;;  %v3625_v39 = vld [vmem:[%s5115_s1 + $0x190] ss:$8 sps:$4 sm:$0xff]   ;;  %s3540_s29 = smul.u32 40, %s5123_s12  ;;  %v3628_v41 = vld [vmem:[%s5115_s1 + $0x1a4] ss:$8 sps:$4 sm:$0xff]   ;;  %vm1069_vm1 = vcmask 1045504  }
  0x15   : > { %722 = vmatpush1.bf16.msra.mxu1 %v3589_v15  ;;  %467 = vmatprep.subr.bf16.mxu0 %v3590_v16  ;;  %v3630_v42 = vld [vmem:[%s5115_s1 + $0xa0] ss:$8 sps:$4 sm:$0xff]   ;;  %v3632_v44 = vld [vmem:[%s5115_s1 + $0xb4] ss:$8 sps:$4 sm:$0xff]   ;;  %v3636_v46 = vld [vmem:[%s5115_s1 + $0xb0] ss:$8 sps:$4 sm:$0xff]  }
  0x16   : > { %723 = vmatprep.subr.bf16.mxu1 %v3592_v17  ;;  %v3631_v43 = vld [vmem:[%s5115_s1 + $0x1a0] ss:$8 sps:$4 sm:$0xff]   ;;  %s4217_s17 = scalar_lea.vmem %s5114_s0, %s3540_s29  ;;  %v3634_v45 = vld [vmem:[%s5115_s1 + $0x1b4] ss:$8 sps:$4 sm:$0xff]   ;;  %v3637_v47 = vld [vmem:[%s5115_s1 + $0x1b0] ss:$8 sps:$4 sm:$0xff]  }
  0x17   : > { %v4229_v48 = vld [vmem:[%s4217_s17 + $0x4] ss:$8 sps:$4 sm:$0xff]   ;;  %v3642_v51 = vld [vmem:[%s5115_s1 + $0xc0] ss:$8 sps:$4 sm:$0xff]   ;;  %v3644_v53 = vld [vmem:[%s5115_s1 + $0xd4] ss:$8 sps:$4 sm:$0xff]  }
  0x18   : > { %468 = vmatpush1.bf16.msra.mxu0 %v3594_v18  ;;  %v3638_v49 = vld [vmem:[%s5115_s1 + $0xc4] ss:$8 sps:$4 sm:$0xff]   ;;  %747 = vmatprep.mubr.bf16.mxu1 %v4229_v48  ;;  %v3643_v52 = vld [vmem:[%s5115_s1 + $0x1c0] ss:$8 sps:$4 sm:$0xff]   ;;  %v3646_v54 = vld [vmem:[%s5115_s1 + $0x1d4] ss:$8 sps:$4 sm:$0xff]  }
  0x19   : > { %724 = vmatpush1.bf16.msra.mxu1 %v3595_v19  ;;  %469 = vmatprep.subr.bf16.mxu0 %v3596_v20  ;;  %v3640_v50 = vld [vmem:[%s5115_s1 + $0x1c4] ss:$8 sps:$4 sm:$0xff]   ;;  %v3648_v55 = vld [vmem:[%s5115_s1 + $0xd0] ss:$8 sps:$4 sm:$0xff]   ;;  %v3654_v59 = vld [vmem:[%s5115_s1 + $0xe0] ss:$8 sps:$4 sm:$0xff]  }
  0x1a   : > { %725 = vmatprep.subr.bf16.mxu1 %v3598_v21  ;;  %491 = vmatprep.mubr.bf16.mxu0 %v4229_v48  ;;  %v3649_v56 = vld [vmem:[%s5115_s1 + $0x1d0] ss:$8 sps:$4 sm:$0xff]   ;;  %v3650_v57 = vld [vmem:[%s5115_s1 + $0xe4] ss:$8 sps:$4 sm:$0xff]   ;;  %v3655_v60 = vld [vmem:[%s5115_s1 + $0x1e0] ss:$8 sps:$4 sm:$0xff]  }
  0x1b   : > { %v3652_v58 = vld [vmem:[%s5115_s1 + $0x1e4] ss:$8 sps:$4 sm:$0xff]   ;;  %v3656_v61 = vld [vmem:[%s5115_s1 + $0xf4] ss:$8 sps:$4 sm:$0xff]   ;;  %v3660_v63 = vld [vmem:[%s5115_s1 + $0xf0] ss:$8 sps:$4 sm:$0xff]  }
  0x1c   : > { %470 = vmatpush1.bf16.msra.mxu0 %v3600_v22  ;;  %v3658_v62 = vld [vmem:[%s5115_s1 + $0x1f4] ss:$8 sps:$4 sm:$0xff]   ;;  %v3661_v0 = vld [vmem:[%s5115_s1 + $0x1f0] ss:$8 sps:$4 sm:$0xff]   ;;  %v3667_v1 = vld [vmem:[%s5115_s1 + $0x204] ss:$8 sps:$4 sm:$0xff]  }
  0x1d   : > { %726 = vmatpush1.bf16.msra.mxu1 %v3601_v23  ;;  %471 = vmatprep.subr.bf16.mxu0 %v3602_v24  ;;  %v3670_v2 = vld [vmem:[%s5115_s1 + $0x304] ss:$8 sps:$4 sm:$0xff]   ;;  %v4288_v3 = vld [vmem:[%s4217_s17] ss:$8 sps:$4 sm:$0xff]   ;;  %v3673_v6 = vld [vmem:[%s5115_s1 + $0x214] ss:$8 sps:$4 sm:$0xff]  }
  0x1e   : > { %727 = vmatprep.subr.bf16.mxu1 %v3604_v25  ;;  %v3665_v4 = vld [vmem:[%s5115_s1 + $0x200] ss:$8 sps:$4 sm:$0xff]   ;;  %v3676_v7 = vld [vmem:[%s5115_s1 + $0x314] ss:$8 sps:$4 sm:$0xff]   ;;  %v3671_v9 = vld [vmem:[%s5115_s1 + $0x210] ss:$8 sps:$4 sm:$0xff]  }
  0x1f   : > { %v3668_v5 = vld [vmem:[%s5115_s1 + $0x300] ss:$8 sps:$4 sm:$0xff]   ;;  %v4303_v8 = vld [vmem:[%s4217_s17 + $0x14] ss:$8 sps:$4 sm:$0xff]   ;;  %v3674_v10 = vld [vmem:[%s5115_s1 + $0x310] ss:$8 sps:$4 sm:$0xff]  }
  0x20   : > { %472 = vmatpush1.bf16.msra.mxu0 %v3606_v26  ;;  %v3682_v11 = vld [vmem:[%s5115_s1 + $0x224] ss:$8 sps:$4 sm:$0xff]   ;;  %v4321_v13 = vld [vmem:[%s4217_s17 + $0x10] ss:$8 sps:$4 sm:$0xff]   ;;  %v3680_v14 = vld [vmem:[%s5115_s1 + $0x220] ss:$8 sps:$4 sm:$0xff]  }
  0x21   : > { %728 = vmatpush1.bf16.msra.mxu1 %v3607_v27  ;;  %473 = vmatprep.subr.bf16.mxu0 %v3608_v28  ;;  %v3685_v12 = vld [vmem:[%s5115_s1 + $0x324] ss:$8 sps:$4 sm:$0xff]   ;;  %v3683_v15 = vld [vmem:[%s5115_s1 + $0x320] ss:$8 sps:$4 sm:$0xff]   ;;  %v3688_v16 = vld [vmem:[%s5115_s1 + $0x234] ss:$8 sps:$4 sm:$0xff]  }
  0x22   : > { %729 = vmatprep.subr.bf16.mxu1 %v3610_v29  ;;  %v3691_v17 = vld [vmem:[%s5115_s1 + $0x334] ss:$8 sps:$4 sm:$0xff]   ;;  %v3686_v18 = vld [vmem:[%s5115_s1 + $0x230] ss:$8 sps:$4 sm:$0xff]   ;;  %v3694_v20 = vld [vmem:[%s5115_s1 + $0x244] ss:$8 sps:$4 sm:$0xff]  }
  0x23   : > { %v3689_v19 = vld [vmem:[%s5115_s1 + $0x330] ss:$8 sps:$4 sm:$0xff]   ;;  %v3697_v21 = vld [vmem:[%s5115_s1 + $0x344] ss:$8 sps:$4 sm:$0xff]   ;;  %v3692_v22 = vld [vmem:[%s5115_s1 + $0x240] ss:$8 sps:$4 sm:$0xff]  }
  0x24   : > { %474 = vmatpush1.bf16.msra.mxu0 %v3612_v30  ;;  %v3695_v23 = vld [vmem:[%s5115_s1 + $0x340] ss:$8 sps:$4 sm:$0xff]   ;;  %v3700_v24 = vld [vmem:[%s5115_s1 + $0x254] ss:$8 sps:$4 sm:$0xff]   ;;  %v3698_v27 = vld [vmem:[%s5115_s1 + $0x250] ss:$8 sps:$4 sm:$0xff]  }
  0x25   : > { %730 = vmatpush1.bf16.msra.mxu1 %v3613_v31  ;;  %475 = vmatprep.subr.bf16.mxu0 %v3614_v32  ;;  %v3703_v25 = vld [vmem:[%s5115_s1 + $0x354] ss:$8 sps:$4 sm:$0xff]   ;;  %v239_v26 = vld [vmem:[%s4217_s17 + $0x20] sm:$0x77]  ;;  %v3701_v30 = vld [vmem:[%s5115_s1 + $0x350] ss:$8 sps:$4 sm:$0xff]  }
  0x26   : > { %731 = vmatprep.subr.bf16.mxu1 %v3616_v33  ;;  %v4366_v28 = vcombine.high %v239_v26, %v239_v26  ;;  %v4368_v29 = vcombine.low %v239_v26, %v239_v26  ;;  %v3706_v31 = vld [vmem:[%s5115_s1 + $0x264] ss:$8 sps:$4 sm:$0xff]   ;;  %v3704_v33 = vld [vmem:[%s5115_s1 + $0x260] ss:$8 sps:$4 sm:$0xff]   ;;  %v3787_v26 = vld [vmem:[%s5115_s1 + $0x530] ss:$8 sps:$4 sm:$0xff]  }
  0x27   : > { %v3709_v32 = vld [vmem:[%s5115_s1 + $0x364] ss:$8 sps:$4 sm:$0xff]   ;;  %vm1356_vm2 = vcmask 1041408   ;;  %vm1643_vm3 = vcmask 1040384   ;;  %vm2186_vm4 = vcmask 1043456   ;;  %vm2473_vm5 = vcmask 1042432  }
  0x28   : > { %476 = vmatpush1.bf16.msra.mxu0 %v3618_v34  ;;  %v3707_v34 = vld [vmem:[%s5115_s1 + $0x360] ss:$8 sps:$4 sm:$0xff]   ;;  %s3541_s19 = smul.u32 24, %s5123_s12 }
  0x29   : > { %732 = vmatpush1.bf16.msra.mxu1 %v3619_v35  ;;  %477 = vmatprep.subr.bf16.mxu0 %v3620_v36  ;;  %v3712_v35 = vld [vmem:[%s5115_s1 + $0x274] ss:$8 sps:$4 sm:$0xff]  }
  0x2a   : > { %733 = vmatprep.subr.bf16.mxu1 %v3622_v37  ;;  %v3715_v36 = vld [vmem:[%s5115_s1 + $0x374] ss:$8 sps:$4 sm:$0xff]   ;;  %v3710_v37 = vld [vmem:[%s5115_s1 + $0x270] ss:$8 sps:$4 sm:$0xff]   ;;  %s233_s22 = scalar_lea.vmem %s5117_s3, %s3541_s19 }
  0x2c   : > { %478 = vmatpush1.bf16.msra.mxu0 %v3624_v38  ;;  %v3713_v38 = vld [vmem:[%s5115_s1 + $0x370] ss:$8 sps:$4 sm:$0xff]  }
  0x2d   : > { %734 = vmatpush1.bf16.msra.mxu1 %v3625_v39  ;;  %479 = vmatprep.subr.bf16.mxu0 %v3626_v40  ;;  %v3718_v39 = vld [vmem:[%s5115_s1 + $0x284] ss:$8 sps:$4 sm:$0xff]  }
  0x2e   : > { %735 = vmatprep.subr.bf16.mxu1 %v3628_v41  ;;  %v3721_v40 = vld [vmem:[%s5115_s1 + $0x384] ss:$8 sps:$4 sm:$0xff]   ;;  %v3716_v41 = vld [vmem:[%s5115_s1 + $0x280] ss:$8 sps:$4 sm:$0xff]  }
  0x30   : > { %480 = vmatpush1.bf16.msra.mxu0 %v3630_v42  ;;  %v3719_v42 = vld [vmem:[%s5115_s1 + $0x380] ss:$8 sps:$4 sm:$0xff]  }
  0x31   : > { %736 = vmatpush1.bf16.msra.mxu1 %v3631_v43  ;;  %481 = vmatprep.subr.bf16.mxu0 %v3632_v44  ;;  %v3724_v43 = vld [vmem:[%s5115_s1 + $0x294] ss:$8 sps:$4 sm:$0xff]  }
  0x32   : > { %737 = vmatprep.subr.bf16.mxu1 %v3634_v45  ;;  %v3727_v44 = vld [vmem:[%s5115_s1 + $0x394] ss:$8 sps:$4 sm:$0xff]   ;;  %v3722_v45 = vld [vmem:[%s5115_s1 + $0x290] ss:$8 sps:$4 sm:$0xff]  }
  0x34   : > { %482 = vmatpush1.bf16.msra.mxu0 %v3636_v46  ;;  %v3725_v46 = vld [vmem:[%s5115_s1 + $0x390] ss:$8 sps:$4 sm:$0xff]  }
  0x35   : > { %738 = vmatpush1.bf16.msra.mxu1 %v3637_v47  ;;  %483 = vmatprep.subr.bf16.mxu0 %v3638_v49  ;;  %v3730_v47 = vld [vmem:[%s5115_s1 + $0x2a4] ss:$8 sps:$4 sm:$0xff]  }
  0x36   : > { %739 = vmatprep.subr.bf16.mxu1 %v3640_v50  ;;  %v3733_v49 = vld [vmem:[%s5115_s1 + $0x3a4] ss:$8 sps:$4 sm:$0xff]   ;;  %v3728_v50 = vld [vmem:[%s5115_s1 + $0x2a0] ss:$8 sps:$4 sm:$0xff]  }
  0x38   : > { %484 = vmatpush1.bf16.msra.mxu0 %v3642_v51  ;;  %v3731_v51 = vld [vmem:[%s5115_s1 + $0x3a0] ss:$8 sps:$4 sm:$0xff]  }
  0x39   : > { %740 = vmatpush1.bf16.msra.mxu1 %v3643_v52  ;;  %485 = vmatprep.subr.bf16.mxu0 %v3644_v53  ;;  %v3736_v52 = vld [vmem:[%s5115_s1 + $0x2b4] ss:$8 sps:$4 sm:$0xff]  }
  0x3a   : > { %741 = vmatprep.subr.bf16.mxu1 %v3646_v54  ;;  %v3739_v53 = vld [vmem:[%s5115_s1 + $0x3b4] ss:$8 sps:$4 sm:$0xff]   ;;  %v3734_v54 = vld [vmem:[%s5115_s1 + $0x2b0] ss:$8 sps:$4 sm:$0xff]  }
  0x3c   : > { %486 = vmatpush1.bf16.msra.mxu0 %v3648_v55  ;;  %v3737_v55 = vld [vmem:[%s5115_s1 + $0x3b0] ss:$8 sps:$4 sm:$0xff]  }
  0x3d   : > { %742 = vmatpush1.bf16.msra.mxu1 %v3649_v56  ;;  %487 = vmatprep.subr.bf16.mxu0 %v3650_v57  ;;  %v3742_v56 = vld [vmem:[%s5115_s1 + $0x2c4] ss:$8 sps:$4 sm:$0xff]  }
  0x3e   : > { %743 = vmatprep.subr.bf16.mxu1 %v3652_v58  ;;  %v3745_v57 = vld [vmem:[%s5115_s1 + $0x3c4] ss:$8 sps:$4 sm:$0xff]   ;;  %v3740_v58 = vld [vmem:[%s5115_s1 + $0x2c0] ss:$8 sps:$4 sm:$0xff]  }
  0x40   : > { %488 = vmatpush1.bf16.msra.mxu0 %v3654_v59  ;;  %v3743_v59 = vld [vmem:[%s5115_s1 + $0x3c0] ss:$8 sps:$4 sm:$0xff]  }
  0x41   : > { %744 = vmatpush1.bf16.msra.mxu1 %v3655_v60  ;;  %489 = vmatprep.subr.bf16.mxu0 %v3656_v61  ;;  %v3748_v60 = vld [vmem:[%s5115_s1 + $0x2d4] ss:$8 sps:$4 sm:$0xff]  }
  0x42   : > { %745 = vmatprep.subr.bf16.mxu1 %v3658_v62  ;;  %v3751_v61 = vld [vmem:[%s5115_s1 + $0x3d4] ss:$8 sps:$4 sm:$0xff]   ;;  %v3746_v62 = vld [vmem:[%s5115_s1 + $0x2d0] ss:$8 sps:$4 sm:$0xff]  }
  0x44   : > { %490 = vmatpush1.bf16.msra.mxu0 %v3660_v63  ;;  %v3749_v63 = vld [vmem:[%s5115_s1 + $0x3d0] ss:$8 sps:$4 sm:$0xff]  }
  0x45   : > { %746 = vmatpush1.bf16.msra.mxu1 %v3661_v0  ;;  %1002 = vmatprep.subr.bf16.mxu0 %v3667_v1  ;;  %v3756_v0 = vld [vmem:[%s5115_s1 + $0x2e4] ss:$8 sps:$4 sm:$0xff]  }
  0x46   : > { %1289 = vmatprep.subr.bf16.mxu1 %v3670_v2  ;;  %v3759_v1 = vld [vmem:[%s5115_s1 + $0x3e4] ss:$8 sps:$4 sm:$0xff]   ;;  %v3754_v2 = vld [vmem:[%s5115_s1 + $0x2e0] ss:$8 sps:$4 sm:$0xff]  }
  0x47   : > { %492 = vmatmul.mubr.bf16.vlgmr.msra.gmra.mrb[0].mxu0 %v4288_v3 }
  0x48   : > { %748 = vmatmul.mubr.bf16.vlgmr.msra.gmra.mrb[0].mxu1 %v4288_v3  ;;  %1003 = vmatpush1.bf16.msra.mxu0 %v3665_v4  ;;  %v3757_v4 = vld [vmem:[%s5115_s1 + $0x3e0] ss:$8 sps:$4 sm:$0xff]  }
  0x49   : > { %1290 = vmatpush1.bf16.msra.mxu1 %v3668_v5  ;;  %1004 = vmatprep.subr.bf16.mxu0 %v3673_v6  ;;  %v3762_v5 = vld [vmem:[%s5115_s1 + $0x2f4] ss:$8 sps:$4 sm:$0xff]  }
  0x4a   : > { %1291 = vmatprep.subr.bf16.mxu1 %v3676_v7  ;;  %757 = vmatprep.mubr.bf16.mxu1 %v4303_v8  ;;  %v3765_v6 = vld [vmem:[%s5115_s1 + $0x3f4] ss:$8 sps:$4 sm:$0xff]   ;;  %v3760_v7 = vld [vmem:[%s5115_s1 + $0x2f0] ss:$8 sps:$4 sm:$0xff]  }
  0x4b   : > { %501 = vmatprep.mubr.bf16.mxu0 %v4303_v8 }
  0x4c   : > { %1005 = vmatpush1.bf16.msra.mxu0 %v3671_v9  ;;  %v3763_v9 = vld [vmem:[%s5115_s1 + $0x3f0] ss:$8 sps:$4 sm:$0xff]  }
  0x4d   : > { %1292 = vmatpush1.bf16.msra.mxu1 %v3674_v10  ;;  %1006 = vmatprep.subr.bf16.mxu0 %v3682_v11  ;;  %v3768_v10 = vld [vmem:[%s5115_s1 + $0x404] ss:$8 sps:$4 sm:$0xff]  }
  0x4e   : > { %1293 = vmatprep.subr.bf16.mxu1 %v3685_v12  ;;  %v3771_v11 = vld [vmem:[%s5115_s1 + $0x504] ss:$8 sps:$4 sm:$0xff]   ;;  %v3766_v12 = vld [vmem:[%s5115_s1 + $0x400] ss:$8 sps:$4 sm:$0xff]  }
  0x4f   : > { %502 = vmatmul.mubr.bf16.gmra.mrb[4].mxu0 %v4321_v13 }
  0x50   : > { %758 = vmatmul.mubr.bf16.gmra.mrb[4].mxu1 %v4321_v13  ;;  %1007 = vmatpush1.bf16.msra.mxu0 %v3680_v14  ;;  %v3769_v14 = vld [vmem:[%s5115_s1 + $0x500] ss:$8 sps:$4 sm:$0xff]  }
  0x51   : > { %1294 = vmatpush1.bf16.msra.mxu1 %v3683_v15  ;;  %1008 = vmatprep.subr.bf16.mxu0 %v3688_v16  ;;  %v3774_v15 = vld [vmem:[%s5115_s1 + $0x414] ss:$8 sps:$4 sm:$0xff]  }
  0x52   : > { %1295 = vmatprep.subr.bf16.mxu1 %v3691_v17  ;;  %767 = vmatprep.mubr.bf16.mxu1 %v4366_v28  ;;  %v3777_v16 = vld [vmem:[%s5115_s1 + $0x514] ss:$8 sps:$4 sm:$0xff]   ;;  %v3772_v17 = vld [vmem:[%s5115_s1 + $0x410] ss:$8 sps:$4 sm:$0xff]  }
  0x53   : > { %509 = vmatprep.mubr.bf16.mxu0 %v4366_v28 }
  0x54   : > { %1009 = vmatpush1.bf16.msra.mxu0 %v3686_v18  ;;  %v3775_v18 = vld [vmem:[%s5115_s1 + $0x510] ss:$8 sps:$4 sm:$0xff]  }
  0x55   : > { %1296 = vmatpush1.bf16.msra.mxu1 %v3689_v19  ;;  %1010 = vmatprep.subr.bf16.mxu0 %v3694_v20  ;;  %v3780_v19 = vld [vmem:[%s5115_s1 + $0x424] ss:$8 sps:$4 sm:$0xff]  }
  0x56   : > { %1297 = vmatprep.subr.bf16.mxu1 %v3697_v21  ;;  %v3783_v20 = vld [vmem:[%s5115_s1 + $0x524] ss:$8 sps:$4 sm:$0xff]   ;;  %v3778_v21 = vld [vmem:[%s5115_s1 + $0x420] ss:$8 sps:$4 sm:$0xff]  }
  0x57   : > { %510 = vmatmul.mubr.bf16.gmra.mrb[8].mxu0 %v4368_v29 }
  0x58   : > { %1011 = vmatpush1.bf16.msra.mxu0 %v3692_v22  ;;  %768 = vmatmul.mubr.bf16.gmra.mrb[8].mxu1 %v4368_v29  ;;  %v3781_v22 = vld [vmem:[%s5115_s1 + $0x520] ss:$8 sps:$4 sm:$0xff]  }
  0x59   : > { %1298 = vmatpush1.bf16.msra.mxu1 %v3695_v23  ;;  %1012 = vmatprep.subr.bf16.mxu0 %v3700_v24  ;;  %v3786_v23 = vld [vmem:[%s5115_s1 + $0x434] ss:$8 sps:$4 sm:$0xff]  }
  0x5a   : > { %1299 = vmatprep.subr.bf16.mxu1 %v3703_v25  ;;  %1034 = vmatprep.mubr.bf16.mxu0 %v4229_v48  ;;  %v3789_v24 = vld [vmem:[%s5115_s1 + $0x534] ss:$8 sps:$4 sm:$0xff]   ;;  %v3784_v25 = vld [vmem:[%s5115_s1 + $0x430] ss:$8 sps:$4 sm:$0xff]  }
  0x5b   : > { %1321 = vmatprep.mubr.bf16.mxu1 %v4229_v48 }
  0x5c   : > { %1013 = vmatpush1.bf16.msra.mxu0 %v3698_v27  ;;  %v3792_v27 = vld [vmem:[%s5115_s1 + $0x444] ss:$8 sps:$4 sm:$0xff]  }
  0x5d   : > { %1300 = vmatpush1.bf16.msra.mxu1 %v3701_v30  ;;  %1014 = vmatprep.subr.bf16.mxu0 %v3706_v31  ;;  %v3795_v30 = vld [vmem:[%s5115_s1 + $0x544] ss:$8 sps:$4 sm:$0xff]   ;;  %v3790_v31 = vld [vmem:[%s5115_s1 + $0x440] ss:$8 sps:$4 sm:$0xff]  }
  0x5e   : > { %1301 = vmatprep.subr.bf16.mxu1 %v3709_v32  ;;  %v3793_v32 = vld [vmem:[%s5115_s1 + $0x540] ss:$8 sps:$4 sm:$0xff]  }
  0x60   : > { %1015 = vmatpush1.bf16.msra.mxu0 %v3704_v33  ;;  %v3798_v33 = vld [vmem:[%s5115_s1 + $0x454] ss:$8 sps:$4 sm:$0xff]  }
  0x61   : > { %1302 = vmatpush1.bf16.msra.mxu1 %v3707_v34  ;;  %1016 = vmatprep.subr.bf16.mxu0 %v3712_v35  ;;  %v3801_v34 = vld [vmem:[%s5115_s1 + $0x554] ss:$8 sps:$4 sm:$0xff]   ;;  %v3796_v35 = vld [vmem:[%s5115_s1 + $0x450] ss:$8 sps:$4 sm:$0xff]  }
  0x62   : > { %1303 = vmatprep.subr.bf16.mxu1 %v3715_v36  ;;  %v3799_v36 = vld [vmem:[%s5115_s1 + $0x550] ss:$8 sps:$4 sm:$0xff]  }
  0x64   : > { %1017 = vmatpush1.bf16.msra.mxu0 %v3710_v37  ;;  %v3804_v37 = vld [vmem:[%s5115_s1 + $0x464] ss:$8 sps:$4 sm:$0xff]  }
  0x65   : > { %1304 = vmatpush1.bf16.msra.mxu1 %v3713_v38  ;;  %1018 = vmatprep.subr.bf16.mxu0 %v3718_v39  ;;  %v3807_v38 = vld [vmem:[%s5115_s1 + $0x564] ss:$8 sps:$4 sm:$0xff]   ;;  %v3802_v39 = vld [vmem:[%s5115_s1 + $0x460] ss:$8 sps:$4 sm:$0xff]  }
  0x66   : > { %1305 = vmatprep.subr.bf16.mxu1 %v3721_v40  ;;  %v3805_v40 = vld [vmem:[%s5115_s1 + $0x560] ss:$8 sps:$4 sm:$0xff]  }
  0x68   : > { %1019 = vmatpush1.bf16.msra.mxu0 %v3716_v41  ;;  %v3810_v41 = vld [vmem:[%s5115_s1 + $0x474] ss:$8 sps:$4 sm:$0xff]  }
  0x69   : > { %1306 = vmatpush1.bf16.msra.mxu1 %v3719_v42  ;;  %1020 = vmatprep.subr.bf16.mxu0 %v3724_v43  ;;  %v3808_v42 = vld [vmem:[%s5115_s1 + $0x470] ss:$8 sps:$4 sm:$0xff]  }
  0x6a   : > { %1307 = vmatprep.subr.bf16.mxu1 %v3727_v44  ;;  %v3811_v43 = vld [vmem:[%s5115_s1 + $0x570] ss:$8 sps:$4 sm:$0xff]   ;;  %v3816_v44 = vld [vmem:[%s5115_s1 + $0x484] ss:$8 sps:$4 sm:$0xff]  }
  0x6c   : > { %1021 = vmatpush1.bf16.msra.mxu0 %v3722_v45  ;;  %v3819_v45 = vld [vmem:[%s5115_s1 + $0x584] ss:$8 sps:$4 sm:$0xff]  }
  0x6d   : > { %1308 = vmatpush1.bf16.msra.mxu1 %v3725_v46  ;;  %1022 = vmatprep.subr.bf16.mxu0 %v3730_v47  ;;  %v3814_v46 = vld [vmem:[%s5115_s1 + $0x480] ss:$8 sps:$4 sm:$0xff]  }
  0x6e   : > { %1309 = vmatprep.subr.bf16.mxu1 %v3733_v49  ;;  %v3817_v47 = vld [vmem:[%s5115_s1 + $0x580] ss:$8 sps:$4 sm:$0xff]   ;;  %v3822_v49 = vld [vmem:[%s5115_s1 + $0x494] ss:$8 sps:$4 sm:$0xff]  }
  0x70   : > { %1023 = vmatpush1.bf16.msra.mxu0 %v3728_v50  ;;  %v3825_v50 = vld [vmem:[%s5115_s1 + $0x594] ss:$8 sps:$4 sm:$0xff]  }
  0x71   : > { %1310 = vmatpush1.bf16.msra.mxu1 %v3731_v51  ;;  %1024 = vmatprep.subr.bf16.mxu0 %v3736_v52  ;;  %v3820_v51 = vld [vmem:[%s5115_s1 + $0x490] ss:$8 sps:$4 sm:$0xff]  }
  0x72   : > { %1311 = vmatprep.subr.bf16.mxu1 %v3739_v53  ;;  %v3823_v52 = vld [vmem:[%s5115_s1 + $0x590] ss:$8 sps:$4 sm:$0xff]   ;;  %v3828_v53 = vld [vmem:[%s5115_s1 + $0x4a4] ss:$8 sps:$4 sm:$0xff]  }
  0x74   : > { %1025 = vmatpush1.bf16.msra.mxu0 %v3734_v54  ;;  %v3831_v54 = vld [vmem:[%s5115_s1 + $0x5a4] ss:$8 sps:$4 sm:$0xff]  }
  0x75   : > { %1312 = vmatpush1.bf16.msra.mxu1 %v3737_v55  ;;  %1026 = vmatprep.subr.bf16.mxu0 %v3742_v56  ;;  %v3826_v55 = vld [vmem:[%s5115_s1 + $0x4a0] ss:$8 sps:$4 sm:$0xff]  }
  0x76   : > { %1313 = vmatprep.subr.bf16.mxu1 %v3745_v57  ;;  %v3829_v56 = vld [vmem:[%s5115_s1 + $0x5a0] ss:$8 sps:$4 sm:$0xff]   ;;  %v3834_v57 = vld [vmem:[%s5115_s1 + $0x4b4] ss:$8 sps:$4 sm:$0xff]  }
  0x78   : > { %1027 = vmatpush1.bf16.msra.mxu0 %v3740_v58  ;;  %v3837_v58 = vld [vmem:[%s5115_s1 + $0x5b4] ss:$8 sps:$4 sm:$0xff]  }
  0x79   : > { %1314 = vmatpush1.bf16.msra.mxu1 %v3743_v59  ;;  %1028 = vmatprep.subr.bf16.mxu0 %v3748_v60  ;;  %v3832_v59 = vld [vmem:[%s5115_s1 + $0x4b0] ss:$8 sps:$4 sm:$0xff]  }
  0x7a   : > { %1315 = vmatprep.subr.bf16.mxu1 %v3751_v61  ;;  %v3835_v60 = vld [vmem:[%s5115_s1 + $0x5b0] ss:$8 sps:$4 sm:$0xff]   ;;  %v3840_v61 = vld [vmem:[%s5115_s1 + $0x4c4] ss:$8 sps:$4 sm:$0xff]  }
  0x7c   : > { %1029 = vmatpush1.bf16.msra.mxu0 %v3746_v62  ;;  %v3843_v62 = vld [vmem:[%s5115_s1 + $0x5c4] ss:$8 sps:$4 sm:$0xff]  }
  0x7d   : > { %1316 = vmatpush1.bf16.msra.mxu1 %v3749_v63  ;;  %1030 = vmatprep.subr.bf16.mxu0 %v3756_v0  ;;  %v3838_v63 = vld [vmem:[%s5115_s1 + $0x4c0] ss:$8 sps:$4 sm:$0xff]  }
  0x7e   : > { %1317 = vmatprep.subr.bf16.mxu1 %v3759_v1  ;;  %v3841_v0 = vld [vmem:[%s5115_s1 + $0x5c0] ss:$8 sps:$4 sm:$0xff]   ;;  %v3846_v1 = vld [vmem:[%s5115_s1 + $0x4d4] ss:$8 sps:$4 sm:$0xff]  }
  0x80   : > { %1031 = vmatpush1.bf16.msra.mxu0 %v3754_v2  ;;  %v3849_v2 = vld [vmem:[%s5115_s1 + $0x5d4] ss:$8 sps:$4 sm:$0xff]  }
  0x81   : > { %1318 = vmatpush1.bf16.msra.mxu1 %v3757_v4  ;;  %1032 = vmatprep.subr.bf16.mxu0 %v3762_v5  ;;  %v3844_v4 = vld [vmem:[%s5115_s1 + $0x4d0] ss:$8 sps:$4 sm:$0xff]  }
  0x82   : > { %1319 = vmatprep.subr.bf16.mxu1 %v3765_v6  ;;  %v3847_v5 = vld [vmem:[%s5115_s1 + $0x5d0] ss:$8 sps:$4 sm:$0xff]   ;;  %v3852_v6 = vld [vmem:[%s5115_s1 + $0x4e4] ss:$8 sps:$4 sm:$0xff]  }
  0x84   : > { %1033 = vmatpush1.bf16.msra.mxu0 %v3760_v7  ;;  %v3855_v7 = vld [vmem:[%s5115_s1 + $0x5e4] ss:$8 sps:$4 sm:$0xff]  }
  0x85   : > { %1320 = vmatpush1.bf16.msra.mxu1 %v3763_v9  ;;  %1576 = vmatprep.subr.bf16.mxu0 %v3768_v10  ;;  %v3850_v9 = vld [vmem:[%s5115_s1 + $0x4e0] ss:$8 sps:$4 sm:$0xff]  }
  0x86   : > { %1863 = vmatprep.subr.bf16.mxu1 %v3771_v11  ;;  %v3853_v10 = vld [vmem:[%s5115_s1 + $0x5e0] ss:$8 sps:$4 sm:$0xff]   ;;  %v3858_v11 = vld [vmem:[%s5115_s1 + $0x4f4] ss:$8 sps:$4 sm:$0xff]  }
  0x87   : > { %1035 = vmatmul.mubr.bf16.vlgmr.msra.gmra.mrb[12].mxu0 %v4288_v3 }
  0x88   : > { %1322 = vmatmul.mubr.bf16.vlgmr.msra.gmra.mrb[12].mxu1 %v4288_v3  ;;  %1577 = vmatpush1.bf16.msra.mxu0 %v3766_v12  ;;  %v3861_v12 = vld [vmem:[%s5115_s1 + $0x5f4] ss:$8 sps:$4 sm:$0xff]  }
  0x89   : > { %1864 = vmatpush1.bf16.msra.mxu1 %v3769_v14  ;;  %1578 = vmatprep.subr.bf16.mxu0 %v3774_v15  ;;  %v3856_v14 = vld [vmem:[%s5115_s1 + $0x4f0] ss:$8 sps:$4 sm:$0xff]  }
  0x8a   : > { %1865 = vmatprep.subr.bf16.mxu1 %v3777_v16  ;;  %1044 = vmatprep.mubr.bf16.mxu0 %v4303_v8  ;;  %v3859_v15 = vld [vmem:[%s5115_s1 + $0x5f0] ss:$8 sps:$4 sm:$0xff]   ;;  %v3864_v16 = vld [vmem:[%s5115_s1 + $0x604] ss:$8 sps:$4 sm:$0xff]  }
  0x8b   : > { %1331 = vmatprep.mubr.bf16.mxu1 %v4303_v8 }
  0x8c   : > { %1579 = vmatpush1.bf16.msra.mxu0 %v3772_v17  ;;  %v3867_v17 = vld [vmem:[%s5115_s1 + $0x704] ss:$8 sps:$4 sm:$0xff]  }
  0x8d   : > { %1866 = vmatpush1.bf16.msra.mxu1 %v3775_v18  ;;  %1580 = vmatprep.subr.bf16.mxu0 %v3780_v19  ;;  %v3862_v18 = vld [vmem:[%s5115_s1 + $0x600] ss:$8 sps:$4 sm:$0xff]  }
  0x8e   : > { %1867 = vmatprep.subr.bf16.mxu1 %v3783_v20  ;;  %v3865_v19 = vld [vmem:[%s5115_s1 + $0x700] ss:$8 sps:$4 sm:$0xff]   ;;  %v3870_v20 = vld [vmem:[%s5115_s1 + $0x614] ss:$8 sps:$4 sm:$0xff]  }
  0x8f   : > { %1045 = vmatmul.mubr.bf16.gmra.mrb[16].mxu0 %v4321_v13 }
  0x90   : > { %1332 = vmatmul.mubr.bf16.gmra.mrb[16].mxu1 %v4321_v13  ;;  %1581 = vmatpush1.bf16.msra.mxu0 %v3778_v21  ;;  %v3873_v21 = vld [vmem:[%s5115_s1 + $0x714] ss:$8 sps:$4 sm:$0xff]  }
  0x91   : > { %1868 = vmatpush1.bf16.msra.mxu1 %v3781_v22  ;;  %1582 = vmatprep.subr.bf16.mxu0 %v3786_v23  ;;  %v3868_v22 = vld [vmem:[%s5115_s1 + $0x610] ss:$8 sps:$4 sm:$0xff]  }
  0x92   : > { %1869 = vmatprep.subr.bf16.mxu1 %v3789_v24  ;;  %1341 = vmatprep.mubr.bf16.mxu1 %v4366_v28  ;;  %v3871_v23 = vld [vmem:[%s5115_s1 + $0x710] ss:$8 sps:$4 sm:$0xff]   ;;  %v3876_v24 = vld [vmem:[%s5115_s1 + $0x624] ss:$8 sps:$4 sm:$0xff]  }
  0x93   : > { %1054 = vmatprep.mubr.bf16.mxu0 %v4366_v28 }
  0x94   : > { %1583 = vmatpush1.bf16.msra.mxu0 %v3784_v25  ;;  %v3874_v25 = vld [vmem:[%s5115_s1 + $0x620] ss:$8 sps:$4 sm:$0xff]  }
  0x95   : > { %1870 = vmatpush1.bf16.msra.mxu1 %v3787_v26  ;;  %1584 = vmatprep.subr.bf16.mxu0 %v3792_v27  ;;  %v3877_v26 = vld [vmem:[%s5115_s1 + $0x720] ss:$8 sps:$4 sm:$0xff]   ;;  %v3882_v27 = vld [vmem:[%s5115_s1 + $0x634] ss:$8 sps:$4 sm:$0xff]  }
  0x96   : > { %1871 = vmatprep.subr.bf16.mxu1 %v3795_v30  ;;  %v3880_v30 = vld [vmem:[%s5115_s1 + $0x630] ss:$8 sps:$4 sm:$0xff]  }
  0x97   : > { %1055 = vmatmul.mubr.bf16.gmra.mrb[20].mxu0 %v4368_v29 }
  0x98   : > { %1342 = vmatmul.mubr.bf16.gmra.mrb[20].mxu1 %v4368_v29  ;;  %1585 = vmatpush1.bf16.msra.mxu0 %v3790_v31  ;;  %v3883_v31 = vld [vmem:[%s5115_s1 + $0x730] ss:$8 sps:$4 sm:$0xff]  }
  0x99   : > { %1872 = vmatpush1.bf16.msra.mxu1 %v3793_v32  ;;  %1586 = vmatprep.subr.bf16.mxu0 %v3798_v33  ;;  %v3888_v32 = vld [vmem:[%s5115_s1 + $0x644] ss:$8 sps:$4 sm:$0xff]   ;;  %v3886_v33 = vld [vmem:[%s5115_s1 + $0x640] ss:$8 sps:$4 sm:$0xff]  }
  0x9a   : > { %1873 = vmatprep.subr.bf16.mxu1 %v3801_v34  ;;  %1608 = vmatprep.mubr.bf16.mxu0 %v4229_v48  ;;  %v3889_v34 = vld [vmem:[%s5115_s1 + $0x740] ss:$8 sps:$4 sm:$0xff]  }
  0x9b   : > { %1895 = vmatprep.mubr.bf16.mxu1 %v4229_v48  ;;  %v3813_v48 = vld [vmem:[%s5115_s1 + $0x574] ss:$8 sps:$4 sm:$0xff]  }
  0x9c   : > { %1587 = vmatpush1.bf16.msra.mxu0 %v3796_v35  ;;  %v3894_v35 = vld [vmem:[%s5115_s1 + $0x654] ss:$8 sps:$4 sm:$0xff]  }
  0x9d   : > { %1874 = vmatpush1.bf16.msra.mxu1 %v3799_v36  ;;  %1588 = vmatprep.subr.bf16.mxu0 %v3804_v37  ;;  %v3897_v36 = vld [vmem:[%s5115_s1 + $0x754] ss:$8 sps:$4 sm:$0xff]   ;;  %v3892_v37 = vld [vmem:[%s5115_s1 + $0x650] ss:$8 sps:$4 sm:$0xff]  }
  0x9e   : > { %1875 = vmatprep.subr.bf16.mxu1 %v3807_v38  ;;  %v3895_v38 = vld [vmem:[%s5115_s1 + $0x750] ss:$8 sps:$4 sm:$0xff]  }
  0xa0   : > { %1589 = vmatpush1.bf16.msra.mxu0 %v3802_v39  ;;  %v3900_v39 = vld [vmem:[%s5115_s1 + $0x664] ss:$8 sps:$4 sm:$0xff]  }
  0xa1   : > { %1876 = vmatpush1.bf16.msra.mxu1 %v3805_v40  ;;  %1590 = vmatprep.subr.bf16.mxu0 %v3810_v41  ;;  %v3903_v40 = vld [vmem:[%s5115_s1 + $0x764] ss:$8 sps:$4 sm:$0xff]  }
  0xa2   : > { %1877 = vmatprep.subr.bf16.mxu1 %v3813_v48  ;;  %v4792_v41 = vld [vmem:[%s4217_s17 + $0x4] ss:$8 sps:$4 sm:$0xff]   ;;  %v3898_v48 = vld [vmem:[%s5115_s1 + $0x660] ss:$8 sps:$4 sm:$0xff]  }
  0xa4   : > { %1591 = vmatpush1.bf16.msra.mxu0 %v3808_v42  ;;  %v3901_v42 = vld [vmem:[%s5115_s1 + $0x760] ss:$8 sps:$4 sm:$0xff]  }
  0xa5   : > { %1878 = vmatpush1.bf16.msra.mxu1 %v3811_v43  ;;  %1592 = vmatprep.subr.bf16.mxu0 %v3816_v44  ;;  %v3906_v43 = vld [vmem:[%s5115_s1 + $0x674] ss:$8 sps:$4 sm:$0xff]  }
  0xa6   : > { %1879 = vmatprep.subr.bf16.mxu1 %v3819_v45  ;;  %v3909_v44 = vld [vmem:[%s5115_s1 + $0x774] ss:$8 sps:$4 sm:$0xff]   ;;  %v3904_v45 = vld [vmem:[%s5115_s1 + $0x670] ss:$8 sps:$4 sm:$0xff]  }
  0xa8   : > { %1593 = vmatpush1.bf16.msra.mxu0 %v3814_v46  ;;  %v3907_v46 = vld [vmem:[%s5115_s1 + $0x770] ss:$8 sps:$4 sm:$0xff]  }
  0xa9   : > { %1880 = vmatpush1.bf16.msra.mxu1 %v3817_v47  ;;  %1594 = vmatprep.subr.bf16.mxu0 %v3822_v49  ;;  %v3912_v47 = vld [vmem:[%s5115_s1 + $0x684] ss:$8 sps:$4 sm:$0xff]  }
  0xaa   : > { %1881 = vmatprep.subr.bf16.mxu1 %v3825_v50  ;;  %v3915_v49 = vld [vmem:[%s5115_s1 + $0x784] ss:$8 sps:$4 sm:$0xff]   ;;  %v3910_v50 = vld [vmem:[%s5115_s1 + $0x680] ss:$8 sps:$4 sm:$0xff]  }
  0xac   : > { %1595 = vmatpush1.bf16.msra.mxu0 %v3820_v51  ;;  %v3913_v51 = vld [vmem:[%s5115_s1 + $0x780] ss:$8 sps:$4 sm:$0xff]  }
  0xad   : > { %1882 = vmatpush1.bf16.msra.mxu1 %v3823_v52  ;;  %1596 = vmatprep.subr.bf16.mxu0 %v3828_v53  ;;  %v3918_v52 = vld [vmem:[%s5115_s1 + $0x694] ss:$8 sps:$4 sm:$0xff]  }
  0xae   : > { %1883 = vmatprep.subr.bf16.mxu1 %v3831_v54  ;;  %v3921_v53 = vld [vmem:[%s5115_s1 + $0x794] ss:$8 sps:$4 sm:$0xff]   ;;  %v3916_v54 = vld [vmem:[%s5115_s1 + $0x690] ss:$8 sps:$4 sm:$0xff]  }
  0xb0   : > { %1597 = vmatpush1.bf16.msra.mxu0 %v3826_v55  ;;  %v3919_v55 = vld [vmem:[%s5115_s1 + $0x790] ss:$8 sps:$4 sm:$0xff]  }
  0xb1   : > { %1884 = vmatpush1.bf16.msra.mxu1 %v3829_v56  ;;  %1598 = vmatprep.subr.bf16.mxu0 %v3834_v57  ;;  %v3924_v56 = vld [vmem:[%s5115_s1 + $0x6a4] ss:$8 sps:$4 sm:$0xff]  }
  0xb2   : > { %1885 = vmatprep.subr.bf16.mxu1 %v3837_v58  ;;  %v3927_v57 = vld [vmem:[%s5115_s1 + $0x7a4] ss:$8 sps:$4 sm:$0xff]   ;;  %v3922_v58 = vld [vmem:[%s5115_s1 + $0x6a0] ss:$8 sps:$4 sm:$0xff]  }
  0xb4   : > { %1599 = vmatpush1.bf16.msra.mxu0 %v3832_v59  ;;  %v3925_v59 = vld [vmem:[%s5115_s1 + $0x7a0] ss:$8 sps:$4 sm:$0xff]  }
  0xb5   : > { %1886 = vmatpush1.bf16.msra.mxu1 %v3835_v60  ;;  %1600 = vmatprep.subr.bf16.mxu0 %v3840_v61  ;;  %v3930_v60 = vld [vmem:[%s5115_s1 + $0x6b4] ss:$8 sps:$4 sm:$0xff]  }
  0xb6   : > { %1887 = vmatprep.subr.bf16.mxu1 %v3843_v62  ;;  %v3933_v61 = vld [vmem:[%s5115_s1 + $0x7b4] ss:$8 sps:$4 sm:$0xff]   ;;  %v3928_v62 = vld [vmem:[%s5115_s1 + $0x6b0] ss:$8 sps:$4 sm:$0xff]  }
  0xb8   : > { %1601 = vmatpush1.bf16.msra.mxu0 %v3838_v63  ;;  %v3931_v63 = vld [vmem:[%s5115_s1 + $0x7b0] ss:$8 sps:$4 sm:$0xff]  }
  0xb9   : > { %1888 = vmatpush1.bf16.msra.mxu1 %v3841_v0  ;;  %1602 = vmatprep.subr.bf16.mxu0 %v3846_v1  ;;  %v3936_v0 = vld [vmem:[%s5115_s1 + $0x6c4] ss:$8 sps:$4 sm:$0xff]  }
  0xba   : > { %1889 = vmatprep.subr.bf16.mxu1 %v3849_v2  ;;  %v3939_v1 = vld [vmem:[%s5115_s1 + $0x7c4] ss:$8 sps:$4 sm:$0xff]   ;;  %v3934_v2 = vld [vmem:[%s5115_s1 + $0x6c0] ss:$8 sps:$4 sm:$0xff]  }
  0xbc   : > { %1603 = vmatpush1.bf16.msra.mxu0 %v3844_v4  ;;  %v3937_v4 = vld [vmem:[%s5115_s1 + $0x7c0] ss:$8 sps:$4 sm:$0xff]  }
  0xbd   : > { %1890 = vmatpush1.bf16.msra.mxu1 %v3847_v5  ;;  %1604 = vmatprep.subr.bf16.mxu0 %v3852_v6  ;;  %v3942_v5 = vld [vmem:[%s5115_s1 + $0x6d4] ss:$8 sps:$4 sm:$0xff]  }
  0xbe   : > { %1891 = vmatprep.subr.bf16.mxu1 %v3855_v7  ;;  %v3945_v6 = vld [vmem:[%s5115_s1 + $0x7d4] ss:$8 sps:$4 sm:$0xff]   ;;  %v3940_v7 = vld [vmem:[%s5115_s1 + $0x6d0] ss:$8 sps:$4 sm:$0xff]  }
  0xc0   : > { %1605 = vmatpush1.bf16.msra.mxu0 %v3850_v9  ;;  %v3943_v9 = vld [vmem:[%s5115_s1 + $0x7d0] ss:$8 sps:$4 sm:$0xff]  }
  0xc1   : > { %1892 = vmatpush1.bf16.msra.mxu1 %v3853_v10  ;;  %1606 = vmatprep.subr.bf16.mxu0 %v3858_v11  ;;  %v3948_v10 = vld [vmem:[%s5115_s1 + $0x6e4] ss:$8 sps:$4 sm:$0xff]  }
  0xc2   : > { %1893 = vmatprep.subr.bf16.mxu1 %v3861_v12  ;;  %v3951_v11 = vld [vmem:[%s5115_s1 + $0x7e4] ss:$8 sps:$4 sm:$0xff]   ;;  %v3946_v12 = vld [vmem:[%s5115_s1 + $0x6e0] ss:$8 sps:$4 sm:$0xff]  }
  0xc4   : > { %1607 = vmatpush1.bf16.msra.mxu0 %v3856_v14  ;;  %v3949_v14 = vld [vmem:[%s5115_s1 + $0x7e0] ss:$8 sps:$4 sm:$0xff]  }
  0xc5   : > { %1894 = vmatpush1.bf16.msra.mxu1 %v3859_v15  ;;  %2119 = vmatprep.subr.bf16.mxu0 %v3864_v16  ;;  %v3954_v15 = vld [vmem:[%s5115_s1 + $0x6f4] ss:$8 sps:$4 sm:$0xff]  }
  0xc6   : > { %2406 = vmatprep.subr.bf16.mxu1 %v3867_v17  ;;  %v3957_v16 = vld [vmem:[%s5115_s1 + $0x7f4] ss:$8 sps:$4 sm:$0xff]   ;;  %v3952_v17 = vld [vmem:[%s5115_s1 + $0x6f0] ss:$8 sps:$4 sm:$0xff]  }
  0xc7   : > { %1609 = vmatmul.mubr.bf16.vlgmr.msra.gmra.mrb[24].mxu0 %v4288_v3 }
  0xc8   : > { %1896 = vmatmul.mubr.bf16.vlgmr.msra.gmra.mrb[24].mxu1 %v4288_v3  ;;  %2120 = vmatpush1.bf16.msra.mxu0 %v3862_v18  ;;  %v3879_v3 = vld [vmem:[%s5115_s1 + $0x724] ss:$8 sps:$4 sm:$0xff]   ;;  %v3955_v18 = vld [vmem:[%s5115_s1 + $0x7f0] ss:$8 sps:$4 sm:$0xff]  }
  0xc9   : > { %2407 = vmatpush1.bf16.msra.mxu1 %v3865_v19  ;;  %2121 = vmatprep.subr.bf16.mxu0 %v3870_v20  ;;  %v3960_v19 = vld [vmem:[%s5115_s1 + $0x804] ss:$8 sps:$4 sm:$0xff]   ;;  %v3958_v20 = vld [vmem:[%s5115_s1 + $0x800] ss:$8 sps:$4 sm:$0xff]  }
  0xca   : > { %2408 = vmatprep.subr.bf16.mxu1 %v3873_v21  ;;  %1618 = vmatprep.mubr.bf16.mxu0 %v4303_v8  ;;  %v3963_v21 = vld [vmem:[%s5115_s1 + $0x814] ss:$8 sps:$4 sm:$0xff]  }
  0xcb   : > { %1903 = vmatprep.mubr.bf16.mxu1 %v4303_v8  ;;  %v3885_v8 = vld [vmem:[%s5115_s1 + $0x734] ss:$8 sps:$4 sm:$0xff]  }
  0xcc   : > { %2122 = vmatpush1.bf16.msra.mxu0 %v3868_v22  ;;  %v4920_v22 = vld [vmem:[%s4217_s17] ss:$8 sps:$4 sm:$0xff]  }
  0xcd   : > { %2409 = vmatpush1.bf16.msra.mxu1 %v3871_v23  ;;  %2123 = vmatprep.subr.bf16.mxu0 %v3876_v24  ;;  %v3961_v23 = vld [vmem:[%s5115_s1 + $0x810] ss:$8 sps:$4 sm:$0xff]   ;;  %v3966_v24 = vld [vmem:[%s5115_s1 + $0x824] ss:$8 sps:$4 sm:$0xff]  }
  0xce   : > { %2410 = vmatprep.subr.bf16.mxu1 %v3879_v3  ;;  %v4008_v3 = vld [vmem:[%s4217_s17 + $0x14] ss:$8 sps:$4 sm:$0xff]  }
  0xcf   : > { %1619 = vmatmul.mubr.bf16.gmra.mrb[28].mxu0 %v4321_v13 }
  0xd0   : > { %1904 = vmatmul.mubr.bf16.gmra.mrb[28].mxu1 %v4321_v13  ;;  %2124 = vmatpush1.bf16.msra.mxu0 %v3874_v25  ;;  %v3891_v13 = vld [vmem:[%s5115_s1 + $0x744] ss:$8 sps:$4 sm:$0xff]   ;;  %v3964_v25 = vld [vmem:[%s5115_s1 + $0x820] ss:$8 sps:$4 sm:$0xff]  }
  0xd1   : > { %2411 = vmatpush1.bf16.msra.mxu1 %v3877_v26  ;;  %2125 = vmatprep.subr.bf16.mxu0 %v3882_v27  ;;  %v3969_v26 = vld [vmem:[%s5115_s1 + $0x834] ss:$8 sps:$4 sm:$0xff]   ;;  %v4938_v27 = vld [vmem:[%s4217_s17 + $0x10] ss:$8 sps:$4 sm:$0xff]  }
  0xd2   : > { %2412 = vmatprep.subr.bf16.mxu1 %v3885_v8  ;;  %1913 = vmatprep.mubr.bf16.mxu1 %v4366_v28  ;;  %v3967_v8 = vld [vmem:[%s5115_s1 + $0x830] ss:$8 sps:$4 sm:$0xff]  }
  0xd3   : > { %1628 = vmatprep.mubr.bf16.mxu0 %v4366_v28 }
  0xd4   : > { %2126 = vmatpush1.bf16.msra.mxu0 %v3880_v30  ;;  %v3972_v30 = vld [vmem:[%s5115_s1 + $0x844] ss:$8 sps:$4 sm:$0xff]  }
  0xd5   : > { %2413 = vmatpush1.bf16.msra.mxu1 %v3883_v31  ;;  %2127 = vmatprep.subr.bf16.mxu0 %v3888_v32  ;;  %v3970_v31 = vld [vmem:[%s5115_s1 + $0x840] ss:$8 sps:$4 sm:$0xff]   ;;  %v3975_v32 = vld [vmem:[%s5115_s1 + $0x854] ss:$8 sps:$4 sm:$0xff]  }
  0xd6   : > { %2414 = vmatprep.subr.bf16.mxu1 %v3891_v13  ;;  %v3973_v13 = vld [vmem:[%s5115_s1 + $0x850] ss:$8 sps:$4 sm:$0xff]  }
  0xd7   : > { %1629 = vmatmul.mubr.bf16.gmra.mrb[32].mxu0 %v4368_v29 }
  0xd8   : > { %1914 = vmatmul.mubr.bf16.gmra.mrb[32].mxu1 %v4368_v29  ;;  %2128 = vmatpush1.bf16.msra.mxu0 %v3886_v33  ;;  %v3978_v33 = vld [vmem:[%s5115_s1 + $0x864] ss:$8 sps:$4 sm:$0xff]  }
  0xd9   : > { %2415 = vmatpush1.bf16.msra.mxu1 %v3889_v34  ;;  %2129 = vmatprep.subr.bf16.mxu0 %v3894_v35 }
  0xda   : > { %2416 = vmatprep.subr.bf16.mxu1 %v3897_v36  ;;  %2151 = vmatprep.mubr.bf16.mxu0 %v4792_v41 }
  0xdb   : > { %2438 = vmatprep.mubr.bf16.mxu1 %v4792_v41 }
  0xdc   : > { %2130 = vmatpush1.bf16.msra.mxu0 %v3892_v37 }
  0xdd   : > { %2417 = vmatpush1.bf16.msra.mxu1 %v3895_v38  ;;  %2131 = vmatprep.subr.bf16.mxu0 %v3900_v39 }
  0xde   : > { %2418 = vmatprep.subr.bf16.mxu1 %v3903_v40  ;;  %v3976_v40 = vld [vmem:[%s5115_s1 + $0x860] ss:$8 sps:$4 sm:$0xff]  }
  0xe0   : > { %2132 = vmatpush1.bf16.msra.mxu0 %v3898_v48 }
  0xe1   : > { %2419 = vmatpush1.bf16.msra.mxu1 %v3901_v42  ;;  %2133 = vmatprep.subr.bf16.mxu0 %v3906_v43 }
  0xe2   : > { %2420 = vmatprep.subr.bf16.mxu1 %v3909_v44 }
  0xe4   : > { %2134 = vmatpush1.bf16.msra.mxu0 %v3904_v45 }
  0xe5   : > { %2421 = vmatpush1.bf16.msra.mxu1 %v3907_v46  ;;  %2135 = vmatprep.subr.bf16.mxu0 %v3912_v47 }
  0xe6   : > { %2422 = vmatprep.subr.bf16.mxu1 %v3915_v49 }
  0xe8   : > { %2136 = vmatpush1.bf16.msra.mxu0 %v3910_v50 }
  0xe9   : > { %2423 = vmatpush1.bf16.msra.mxu1 %v3913_v51  ;;  %2137 = vmatprep.subr.bf16.mxu0 %v3918_v52  ;;  %v3979_v51 = vld [vmem:[%s5115_s1 + $0x870] ss:$8 sps:$4 sm:$0xff]  }
  0xea   : > { %2424 = vmatprep.subr.bf16.mxu1 %v3921_v53  ;;  %v3984_v53 = vld [vmem:[%s5115_s1 + $0x884] ss:$8 sps:$4 sm:$0xff]  }
  0xec   : > { %2138 = vmatpush1.bf16.msra.mxu0 %v3916_v54 }
  0xed   : > { %2425 = vmatpush1.bf16.msra.mxu1 %v3919_v55  ;;  %2139 = vmatprep.subr.bf16.mxu0 %v3924_v56 }
  0xee   : > { %2426 = vmatprep.subr.bf16.mxu1 %v3927_v57 }
  0xf0   : > { %2140 = vmatpush1.bf16.msra.mxu0 %v3922_v58 }
  0xf1   : > { %2427 = vmatpush1.bf16.msra.mxu1 %v3925_v59  ;;  %2141 = vmatprep.subr.bf16.mxu0 %v3930_v60  ;;  %v3982_v60 = vld [vmem:[%s5115_s1 + $0x880] ss:$8 sps:$4 sm:$0xff]  }
  0xf2   : > { %2428 = vmatprep.subr.bf16.mxu1 %v3933_v61 }
  0xf4   : > { %2142 = vmatpush1.bf16.msra.mxu0 %v3928_v62 }
  0xf5   : > { %2429 = vmatpush1.bf16.msra.mxu1 %v3931_v63  ;;  %2143 = vmatprep.subr.bf16.mxu0 %v3936_v0  ;;  %v3987_v0 = vld [vmem:[%s5115_s1 + $0x894] ss:$8 sps:$4 sm:$0xff]  }
  0xf6   : > { %2430 = vmatprep.subr.bf16.mxu1 %v3939_v1 }
  0xf8   : > { %2144 = vmatpush1.bf16.msra.mxu0 %v3934_v2 }
  0xf9   : > { %2431 = vmatpush1.bf16.msra.mxu1 %v3937_v4  ;;  %2145 = vmatprep.subr.bf16.mxu0 %v3942_v5 }
  0xfa   : > { %2432 = vmatprep.subr.bf16.mxu1 %v3945_v6 }
  0xfc   : > { %2146 = vmatpush1.bf16.msra.mxu0 %v3940_v7 }
  0xfd   : > { %2433 = vmatpush1.bf16.msra.mxu1 %v3943_v9  ;;  %2147 = vmatprep.subr.bf16.mxu0 %v3948_v10 }
  0xfe   : > { %2434 = vmatprep.subr.bf16.mxu1 %v3951_v11  ;;  %v3985_v11 = vld [vmem:[%s5115_s1 + $0x890] ss:$8 sps:$4 sm:$0xff]  }
 0x100   : > { %2148 = vmatpush1.bf16.msra.mxu0 %v3946_v12 }
 0x101   : > { %2435 = vmatpush1.bf16.msra.mxu1 %v3949_v14  ;;  %2149 = vmatprep.subr.bf16.mxu0 %v3954_v15  ;;  %v3990_v15 = vld [vmem:[%s5115_s1 + $0x8a4] ss:$8 sps:$4 sm:$0xff]  }
 0x102   : > { %2436 = vmatprep.subr.bf16.mxu1 %v3957_v16 }
 0x104   : > { %2150 = vmatpush1.bf16.msra.mxu0 %v3952_v17  ;;  %v3988_v17 = vld [vmem:[%s5115_s1 + $0x8a0] ss:$8 sps:$4 sm:$0xff]  }
 0x105   : > { %2437 = vmatpush1.bf16.msra.mxu1 %v3955_v18  ;;  %2693 = vmatprep.subr.bf16.mxu0 %v3960_v19  ;;  %v3993_v18 = vld [vmem:[%s5115_s1 + $0x8b4] ss:$8 sps:$4 sm:$0xff]  }
 0x106   : > { %3508 = vmatprep.subr.bf16.mxu1 %v3960_v19 }
 0x107   : > { %2152 = vmatmul.mubr.bf16.vlgmr.msra.gmra.mrb[36].mxu0 %v4920_v22 }
 0x108   : > { %2439 = vmatmul.mubr.bf16.vlgmr.msra.gmra.mrb[36].mxu1 %v4920_v22  ;;  %2694 = vmatpush1.bf16.msra.mxu0 %v3958_v20 }
 0x109   : > { %3524 = vmatpush1.bf16.msra.mxu1 %v3958_v20  ;;  %2695 = vmatprep.subr.bf16.mxu0 %v3963_v21 }
 0x10a   : > { %3509 = vmatprep.subr.bf16.mxu1 %v3963_v21  ;;  %2159 = vmatprep.mubr.bf16.mxu0 %v4008_v3 }
 0x10b   : > { %2446 = vmatprep.mubr.bf16.mxu1 %v4008_v3 }
 0x10c   : > { %2696 = vmatpush1.bf16.msra.mxu0 %v3961_v23 }
 0x10d   : > { %3525 = vmatpush1.bf16.msra.mxu1 %v3961_v23  ;;  %2697 = vmatprep.subr.bf16.mxu0 %v3966_v24 }
 0x10e   : > { %3510 = vmatprep.subr.bf16.mxu1 %v3966_v24  ;;  %v3991_v24 = vld [vmem:[%s5115_s1 + $0x8b0] ss:$8 sps:$4 sm:$0xff]  }
 0x10f   : > { %2160 = vmatmul.mubr.bf16.gmra.mrb[40].mxu0 %v4938_v27 }
 0x110   : > { %2447 = vmatmul.mubr.bf16.gmra.mrb[40].mxu1 %v4938_v27  ;;  %2698 = vmatpush1.bf16.msra.mxu0 %v3964_v25 }
 0x111   : > { %3526 = vmatpush1.bf16.msra.mxu1 %v3964_v25  ;;  %2699 = vmatprep.subr.bf16.mxu0 %v3969_v26 }
 0x112   : > { %3511 = vmatprep.subr.bf16.mxu1 %v3969_v26  ;;  %2169 = vmatprep.mubr.bf16.mxu0 %v4366_v28  ;;  %v3996_v26 = vld [vmem:[%s5115_s1 + $0x8c4] ss:$8 sps:$4 sm:$0xff]  }
 0x113   : > { %2456 = vmatprep.mubr.bf16.mxu1 %v4366_v28 }
 0x114   : > { %2700 = vmatpush1.bf16.msra.mxu0 %v3967_v8 }
 0x115   : > { %3527 = vmatpush1.bf16.msra.mxu1 %v3967_v8  ;;  %2701 = vmatprep.subr.bf16.mxu0 %v3972_v30 }
 0x116   : > { %3512 = vmatprep.subr.bf16.mxu1 %v3972_v30 }
 0x117   : > { %2170 = vmatmul.mubr.bf16.gmra.mrb[44].mxu0 %v4368_v29 }
 0x118   : > { %2457 = vmatmul.mubr.bf16.gmra.mrb[44].mxu1 %v4368_v29  ;;  %2702 = vmatpush1.bf16.msra.mxu0 %v3970_v31 }
 0x119   : > { %3528 = vmatpush1.bf16.msra.mxu1 %v3970_v31  ;;  %2703 = vmatprep.subr.bf16.mxu0 %v3975_v32  ;;  %v3994_v31 = vld [vmem:[%s5115_s1 + $0x8c0] ss:$8 sps:$4 sm:$0xff]  }
 0x11a   : > { %3513 = vmatprep.subr.bf16.mxu1 %v3975_v32  ;;  %v493_v35 = vpop.f32.mrb[0].mxu0  ;;  %2725 = vmatprep.mubr.bf16.mxu0 %v4792_v41  ;;  %v3981_v41 = vld [vmem:[%s5115_s1 + $0x874] ss:$8 sps:$4 sm:$0xff]  }
 0x11b   : > { %v749_v34 = vpop.f32.mrb[0].mxu1  ;;  %2733 = vmatprep.mubr.bf16.mxu1 %v4008_v3  ;;  %v495_v38 = vpop.f32.mrb[1].mxu0  ;;  %v3999_v32 = vld [vmem:[%s5115_s1 + $0x8d4] ss:$8 sps:$4 sm:$0xff]  }
 0x11c   : > { %v783_v36 = vrot.slane %v749_v34, 1  ;;  %v751_v37 = vpop.f32.mrb[1].mxu1  ;;  %2704 = vmatpush1.bf16.msra.mxu0 %v3973_v13  ;;  %v497_v48 = vpop.f32.mrb[2].mxu0  ;;  %v4000_v34 = vld [vmem:[%s5115_s1 + $0x8e0] ss:$8 sps:$4 sm:$0xff]  }
 0x11d   : > { %v753_v39 = vpop.f32.mrb[2].mxu1  ;;  %3529 = vmatpush1.bf16.msra.mxu1 %v3973_v13  ;;  %2705 = vmatprep.subr.bf16.mxu0 %v3978_v33  ;;  %v499_v44 = vpop.f32.mrb[3].mxu0  ;;  %v786_v45 = vrot.slane %v751_v37, 1  ;;  %v3997_v13 = vld [vmem:[%s5115_s1 + $0x8d0] ss:$8 sps:$4 sm:$0xff]  }
 0x11e   : > { %v784_v42 = vrot.slane %v753_v39, 1  ;;  %v755_v43 = vpop.f32.mrb[3].mxu1  ;;  %3514 = vmatprep.subr.bf16.mxu1 %v3978_v33  ;;  %v4002_v33 = vld [vmem:[%s5115_s1 + $0x8e4] ss:$8 sps:$4 sm:$0xff]  }
 0x11f   : > { %v787_v46 = vrot.slane %v755_v43, 1 }
 0x120   : > { %v785_v47 = vsel %vm782_vm0, %v783_v36, %v784_v42  ;;  %2706 = vmatpush1.bf16.msra.mxu0 %v3976_v40  ;;  %v4003_v36 = vld [vmem:[%s5115_s1 + $0x8f0] ss:$8 sps:$4 sm:$0xff]  }
 0x121   : > { %v4972_v49 = vadd.f32 %v785_v47, %v493_v35  ;;  %v788_v50 = vsel %vm782_vm0, %v786_v45, %v787_v46  ;;  %3530 = vmatpush1.bf16.msra.mxu1 %v3976_v40  ;;  %2707 = vmatprep.subr.bf16.mxu0 %v3981_v41  ;;  %v4005_v35 = vld [vmem:[%s5115_s1 + $0x8f4] ss:$8 sps:$4 sm:$0xff]  }
 0x122   : > { %v4978_v52 = vadd.f32 %v788_v50, %v495_v38  ;;  %3515 = vmatprep.subr.bf16.mxu1 %v3981_v41  ;;  %v503_v55 = vpop.f32.mrb[4].mxu0 }
 0x123   : > { %v759_v54 = vpop.f32.mrb[4].mxu1  ;;  %v505_v58 = vpop.f32.mrb[5].mxu0 }
 0x124   : > { %v789_v56 = vrot.slane %v759_v54, 1  ;;  %v761_v57 = vpop.f32.mrb[5].mxu1  ;;  %2708 = vmatpush1.bf16.msra.mxu0 %v3979_v51  ;;  %v507_v62 = vpop.f32.mrb[6].mxu0 }
 0x125   : > { %v791_v59 = vrot.slane %v761_v57, 1  ;;  %3531 = vmatpush1.bf16.msra.mxu1 %v3979_v51  ;;  %v763_v61 = vpop.f32.mrb[6].mxu1  ;;  %2709 = vmatprep.subr.bf16.mxu0 %v3984_v53  ;;  %v508_v4 = vpop.f32.mrb[7].mxu0 }
 0x126   : > { %v790_v63 = vsel %vm782_vm0, %v784_v42, %v789_v56  ;;  %3516 = vmatprep.subr.bf16.mxu1 %v3984_v53  ;;  %v793_v1 = vrot.slane %v763_v61, 1  ;;  %v765_v2 = vpop.f32.mrb[7].mxu1 }
 0x127   : > { %v4990_v5 = vadd.f32 %v790_v63, %v497_v48  ;;  %v792_v6 = vsel %vm782_vm0, %v787_v46, %v791_v59  ;;  %v795_v7 = vrot.slane %v765_v2, 1 }
 0x128   : > { %v4993_v9 = vadd.f32 %v792_v6, %v499_v44  ;;  %v794_v10 = vsel %vm782_vm0, %v789_v56, %v793_v1  ;;  %2710 = vmatpush1.bf16.msra.mxu0 %v3982_v60 }
 0x129   : > { %3532 = vmatpush1.bf16.msra.mxu1 %v3982_v60  ;;  %v4999_v12 = vadd.f32 %v794_v10, %v503_v55  ;;  %v796_v14 = vsel %vm782_vm0, %v791_v59, %v795_v7  ;;  %2711 = vmatprep.subr.bf16.mxu0 %v3987_v0 }
 0x12a   : > { %3517 = vmatprep.subr.bf16.mxu1 %v3987_v0  ;;  %v5005_v16 = vadd.f32 %v796_v14, %v505_v58  ;;  %v511_v20 = vpop.f32.mrb[8].mxu0 }
 0x12b   : > { %v769_v19 = vpop.f32.mrb[8].mxu1  ;;  %v512_v23 = vpop.f32.mrb[9].mxu0 }
 0x12c   : > { %2712 = vmatpush1.bf16.msra.mxu0 %v3985_v11  ;;  %v770_v21 = vpop.f32.mrb[9].mxu1  ;;  %v513_v25 = vpop.f32.mrb[10].mxu0 }
 0x12d   : > { %3533 = vmatpush1.bf16.msra.mxu1 %v3985_v11  ;;  %2713 = vmatprep.subr.bf16.mxu0 %v3990_v15  ;;  %v771_v3 = vpop.f32.mrb[10].mxu1  ;;  %v514_v30 = vpop.f32.mrb[11].mxu0 }
 0x12e   : > { %3518 = vmatprep.subr.bf16.mxu1 %v3990_v15  ;;  %v772_v8 = vpop.f32.mrb[11].mxu1 }
 0x130   : > { %2714 = vmatpush1.bf16.msra.mxu0 %v3988_v17 }
 0x131   : > { %3534 = vmatpush1.bf16.msra.mxu1 %v3988_v17  ;;  %2715 = vmatprep.subr.bf16.mxu0 %v3993_v18 }
 0x132   : > { %3519 = vmatprep.subr.bf16.mxu1 %v3993_v18 }
 0x134   : > { %2716 = vmatpush1.bf16.msra.mxu0 %v3991_v24 }
 0x135   : > { %3535 = vmatpush1.bf16.msra.mxu1 %v3991_v24  ;;  %2717 = vmatprep.subr.bf16.mxu0 %v3996_v26 }
 0x136   : > { %3520 = vmatprep.subr.bf16.mxu1 %v3996_v26 }
 0x138   : > { %2718 = vmatpush1.bf16.msra.mxu0 %v3994_v31 }
 0x139   : > { %3536 = vmatpush1.bf16.msra.mxu1 %v3994_v31  ;;  %2719 = vmatprep.subr.bf16.mxu0 %v3999_v32 }
 0x13a   : > { %3521 = vmatprep.subr.bf16.mxu1 %v3999_v32 }
 0x13c   : > { %2720 = vmatpush1.bf16.msra.mxu0 %v3997_v13 }
 0x13d   : > { %3537 = vmatpush1.bf16.msra.mxu1 %v3997_v13  ;;  %2721 = vmatprep.subr.bf16.mxu0 %v4002_v33 }
 0x13e   : > { %3522 = vmatprep.subr.bf16.mxu1 %v4002_v33 }
 0x140   : > { %2722 = vmatpush1.bf16.msra.mxu0 %v4000_v34 }
 0x141   : > { %3538 = vmatpush1.bf16.msra.mxu1 %v4000_v34  ;;  %2723 = vmatprep.subr.bf16.mxu0 %v4005_v35 }
 0x142   : > { %3523 = vmatprep.subr.bf16.mxu1 %v4005_v35 }
 0x144   : > { %2724 = vmatpush1.bf16.msra.mxu0 %v4003_v36 }
 0x145   : > { %3539 = vmatpush1.bf16.msra.mxu1 %v4003_v36 }
 0x147   : > { %2726 = vmatmul.mubr.bf16.vlgmr.msra.gmra.mrb[48].mxu0 %v4920_v22 }
 0x148   : > { %2734 = vmatmul.mubr.bf16.vlgmr.msra.gmra.mrb[48].mxu1 %v4938_v27 }
 0x149   : > { %2743 = vmatprep.mubr.bf16.mxu1 %v4366_v28 }
 0x150   : > { %2744 = vmatmul.mubr.bf16.gmra.mrb[52].mxu1 %v4368_v29 }
 0x15a   : > { %v1036_v37 = vpop.f32.mrb[12].mxu0 }
 0x15b   : > { %v1323_v38 = vpop.f32.mrb[12].mxu1  ;;  %v1070_v39 = vrot.slane %v1036_v37, 2  ;;  %v1038_v48 = vpop.f32.mrb[13].mxu0 }
 0x15c   : > { %v1357_v40 = vrot.slane %v1323_v38, 6  ;;  %v1325_v42 = vpop.f32.mrb[13].mxu1  ;;  %v1073_v43 = vrot.slane %v1038_v48, 2  ;;  %v1040_v44 = vpop.f32.mrb[14].mxu0 }
 0x15d   : > { %v1327_v41 = vpop.f32.mrb[14].mxu1  ;;  %v1071_v45 = vrot.slane %v1040_v44, 2  ;;  %v1042_v22 = vpop.f32.mrb[15].mxu0  ;;  %v1360_v27 = vrot.slane %v1325_v42, 6 }
 0x15e   : > { %v1358_v46 = vrot.slane %v1327_v41, 6  ;;  %v1329_v47 = vpop.f32.mrb[15].mxu1  ;;  %v1074_v50 = vrot.slane %v1042_v22, 2 }
 0x15f   : > { %v1361_v28 = vrot.slane %v1329_v47, 6  ;;  %v1072_v29 = vsel %vm1069_vm1, %v1070_v39, %v1071_v45 }
 0x160   : > { %v1359_v51 = vsel %vm1356_vm2, %v1357_v40, %v1358_v46  ;;  %v1090_v53 = vadd.f32 %v1072_v29, %v4972_v49  ;;  %v1075_v54 = vsel %vm1069_vm1, %v1073_v43, %v1074_v50 }
 0x161   : > { %v1362_v55 = vsel %vm1356_vm2, %v1360_v27, %v1361_v28  ;;  %v1091_v56 = vadd.f32 %v1075_v54, %v4978_v52 }
 0x162   : > { %v1046_v57 = vpop.f32.mrb[16].mxu0  ;;  %v1377_v59 = vadd.f32 %v1359_v51, %v1090_v53 }
 0x163   : > { %v1333_v58 = vpop.f32.mrb[16].mxu1  ;;  %v1076_v60 = vrot.slane %v1046_v57, 2  ;;  %v1048_v62 = vpop.f32.mrb[17].mxu0  ;;  %v1378_v0 = vadd.f32 %v1362_v55, %v1091_v56 }
 0x164   : > { %v1363_v61 = vrot.slane %v1333_v58, 6  ;;  %v1335_v63 = vpop.f32.mrb[17].mxu1  ;;  %v1078_v1 = vrot.slane %v1048_v62, 2  ;;  %v1050_v4 = vpop.f32.mrb[18].mxu0 }
 0x165   : > { %v1365_v2 = vrot.slane %v1335_v63, 6  ;;  %v1337_v6 = vpop.f32.mrb[18].mxu1  ;;  %v1077_v49 = vsel %vm1069_vm1, %v1071_v45, %v1076_v60  ;;  %v1080_v10 = vrot.slane %v1050_v4, 2  ;;  %v1052_v11 = vpop.f32.mrb[19].mxu0 }
 0x166   : > { %v1364_v7 = vsel %vm1356_vm2, %v1358_v46, %v1363_v61  ;;  %v1367_v14 = vrot.slane %v1337_v6, 6  ;;  %v1339_v52 = vpop.f32.mrb[19].mxu1  ;;  %v1092_v15 = vadd.f32 %v1077_v49, %v4990_v5  ;;  %v1079_v17 = vsel %vm1069_vm1, %v1074_v50, %v1078_v1 }
 0x167   : > { %v1366_v18 = vsel %vm1356_vm2, %v1361_v28, %v1365_v2  ;;  %v1082_v19 = vrot.slane %v1052_v11, 2  ;;  %v1093_v20 = vadd.f32 %v1079_v17, %v4993_v9  ;;  %v1081_v21 = vsel %vm1069_vm1, %v1076_v60, %v1080_v10 }
 0x168   : > { %v1368_v23 = vsel %vm1356_vm2, %v1363_v61, %v1367_v14  ;;  %v1369_v24 = vrot.slane %v1339_v52, 6  ;;  %v1094_v3 = vadd.f32 %v1081_v21, %v4999_v12  ;;  %v1379_v26 = vadd.f32 %v1364_v7, %v1092_v15 }
 0x169   : > { %v1083_v25 = vsel %vm1069_vm1, %v1078_v1, %v1082_v19  ;;  %v1380_v30 = vadd.f32 %v1366_v18, %v1093_v20 }
 0x16a   : > { %v1095_v8 = vadd.f32 %v1083_v25, %v5005_v16  ;;  %v1370_v5 = vsel %vm1356_vm2, %v1365_v2, %v1369_v24  ;;  %v1056_v32 = vpop.f32.mrb[20].mxu0  ;;  %v1381_v13 = vadd.f32 %v1368_v23, %v1094_v3 }
 0x16b   : > { %v1343_v31 = vpop.f32.mrb[20].mxu1  ;;  %v1057_v9 = vpop.f32.mrb[21].mxu0 }
 0x16c   : > { %v1344_v33 = vpop.f32.mrb[21].mxu1  ;;  %v1382_v34 = vadd.f32 %v1370_v5, %v1095_v8  ;;  %v1058_v36 = vpop.f32.mrb[22].mxu0 }
 0x16d   : > { %v1345_v35 = vpop.f32.mrb[22].mxu1  ;;  %v1059_v38 = vpop.f32.mrb[23].mxu0 }
 0x16e   : > { %v1346_v37 = vpop.f32.mrb[23].mxu1 }
 0x19a   : > { %v1610_v39 = vpop.f32.mrb[24].mxu0 }
 0x19b   : > { %v1897_v12 = vpop.f32.mrb[24].mxu1  ;;  %v1644_v40 = vrot.slane %v1610_v39, 7  ;;  %v1612_v48 = vpop.f32.mrb[25].mxu0 }
 0x19c   : > { %v1898_v42 = vpop.f32.mrb[25].mxu1  ;;  %v1647_v43 = vrot.slane %v1612_v48, 7  ;;  %v1614_v16 = vpop.f32.mrb[26].mxu0 }
 0x19d   : > { %v1899_v44 = vpop.f32.mrb[26].mxu1  ;;  %v1645_v41 = vrot.slane %v1614_v16, 7  ;;  %v1616_v45 = vpop.f32.mrb[27].mxu0 }
 0x19e   : > { %v1901_v46 = vpop.f32.mrb[27].mxu1  ;;  %v1648_v22 = vrot.slane %v1616_v45, 7 }
 0x19f   : > { %v1646_v47 = vsel %vm1643_vm3, %v1644_v40, %v1645_v41 }
 0x1a0   : > { %v1664_v27 = vadd.f32 %v1646_v47, %v1377_v59  ;;  %v1649_v50 = vsel %vm1643_vm3, %v1647_v43, %v1648_v22 }
 0x1a1   : > { %v1665_v28 = vadd.f32 %v1649_v50, %v1378_v0 }
 0x1a2   : > { %v5064_v29 = vadd.f32 %v1899_v44, %v1664_v27  ;;  %v1620_v51 = vpop.f32.mrb[28].mxu0 }
 0x1a3   : > { %v1905_v53 = vpop.f32.mrb[28].mxu1  ;;  %v5066_v54 = vadd.f32 %v1901_v46, %v1665_v28  ;;  %v1650_v55 = vrot.slane %v1620_v51, 7  ;;  %v1622_v56 = vpop.f32.mrb[29].mxu0 }
 0x1a4   : > { %v1907_v57 = vpop.f32.mrb[29].mxu1  ;;  %v1652_v58 = vrot.slane %v1622_v56, 7  ;;  %v1624_v60 = vpop.f32.mrb[30].mxu0 }
 0x1a5   : > { %v1909_v61 = vpop.f32.mrb[30].mxu1  ;;  %v1654_v62 = vrot.slane %v1624_v60, 7  ;;  %v1626_v63 = vpop.f32.mrb[31].mxu0  ;;  %v1651_v1 = vsel %vm1643_vm3, %v1645_v41, %v1650_v55 }
 0x1a6   : > { %v1911_v59 = vpop.f32.mrb[31].mxu1  ;;  %v1656_v2 = vrot.slane %v1626_v63, 7  ;;  %v1666_v4 = vadd.f32 %v1651_v1, %v1379_v26  ;;  %v1653_v0 = vsel %vm1643_vm3, %v1648_v22, %v1652_v58 }
 0x1a7   : > { %v1667_v6 = vadd.f32 %v1653_v0, %v1380_v30  ;;  %v1655_v49 = vsel %vm1643_vm3, %v1650_v55, %v1654_v62 }
 0x1a8   : > { %v1922_v7 = vadd.f32 %v1905_v53, %v1666_v4  ;;  %v1668_v10 = vadd.f32 %v1655_v49, %v1381_v13  ;;  %v1657_v11 = vsel %vm1643_vm3, %v1652_v58, %v1656_v2 }
 0x1a9   : > { %v1923_v14 = vadd.f32 %v1907_v57, %v1667_v6  ;;  %v1669_v52 = vadd.f32 %v1657_v11, %v1382_v34 }
 0x1aa   : > { %v5072_v15 = vadd.f32 %v1909_v61, %v1668_v10  ;;  %v1630_v18 = vpop.f32.mrb[32].mxu0 }
 0x1ab   : > { %v1915_v17 = vpop.f32.mrb[32].mxu1  ;;  %v5074_v19 = vadd.f32 %v1911_v59, %v1669_v52  ;;  %v1631_v21 = vpop.f32.mrb[33].mxu0 }
 0x1ac   : > { %v1916_v20 = vpop.f32.mrb[33].mxu1  ;;  %v1632_v24 = vpop.f32.mrb[34].mxu0 }
 0x1ad   : > { %v1917_v23 = vpop.f32.mrb[34].mxu1  ;;  %v1633_v25 = vpop.f32.mrb[35].mxu0 }
 0x1ae   : > { %v1918_v3 = vpop.f32.mrb[35].mxu1 }
 0x1da   : > { %v2153_v8 = vpop.f32.mrb[36].mxu0 }
 0x1db   : > { %v2440_v26 = vpop.f32.mrb[36].mxu1  ;;  %v2154_v30 = vpop.f32.mrb[37].mxu0 }
 0x1dc   : > { %v2441_v5 = vpop.f32.mrb[37].mxu1  ;;  %v2155_v32 = vpop.f32.mrb[38].mxu0 }
 0x1dd   : > { %v2442_v31 = vpop.f32.mrb[38].mxu1  ;;  %v2157_v33 = vpop.f32.mrb[39].mxu0  ;;  %v2187_v9 = vrot.slane %v2155_v32, 4  ;;  %v2788_v5 = vlaneseq }
 0x1de   : > { %v2444_v13 = vpop.f32.mrb[39].mxu1  ;;  %v2474_v36 = vrot.slane %v2442_v31, 5  ;;  %v2190_v48 = vrot.slane %v2157_v33, 4 }
 0x1df   : > { %v2477_v40 = vrot.slane %v2444_v13, 5  ;;  %v2789_v30 = vshrl.u32 %v2788_v5, 7 }
 0x1e1   : > { %v2790_v13 = vsub.s32 0, %v2789_v30 }
 0x1e2   : > { %v2161_v34 = vpop.f32.mrb[40].mxu0 }
 0x1e3   : > { %v2448_v35 = vpop.f32.mrb[40].mxu1  ;;  %v2188_v37 = vrot.slane %v2161_v34, 4  ;;  %v2163_v39 = vpop.f32.mrb[41].mxu0  ;;  %v2786_v34 = vld [vmem:[%s5116_s2] sm:$0x3] }
 0x1e4   : > { %v2475_v38 = vrot.slane %v2448_v35, 5  ;;  %v2450_v12 = vpop.f32.mrb[41].mxu1  ;;  %v2191_v42 = vrot.slane %v2163_v39, 4  ;;  %v2165_v16 = vpop.f32.mrb[42].mxu0 }
 0x1e5   : > { %v2478_v43 = vrot.slane %v2450_v12, 5  ;;  %v2452_v44 = vpop.f32.mrb[42].mxu1  ;;  %v2189_v41 = vsel %vm2186_vm4, %v2187_v9, %v2188_v37  ;;  %v2193_v46 = vrot.slane %v2165_v16, 4  ;;  %v2167_v22 = vpop.f32.mrb[43].mxu0 }
 0x1e6   : > { %v2476_v45 = vsel %vm2473_vm5, %v2474_v36, %v2475_v38  ;;  %v2480_v47 = vrot.slane %v2452_v44, 5  ;;  %v2454_v27 = vpop.f32.mrb[43].mxu1  ;;  %v2207_v50 = vadd.f32 %v2189_v41, %v5064_v29  ;;  %v2192_v28 = vsel %vm2186_vm4, %v2190_v48, %v2191_v42 }
 0x1e7   : > { %v2479_v51 = vsel %vm2473_vm5, %v2477_v40, %v2478_v43  ;;  %v2195_v53 = vrot.slane %v2167_v22, 4  ;;  %v2208_v55 = vadd.f32 %v2192_v28, %v5066_v54  ;;  %v2194_v56 = vsel %vm2186_vm4, %v2188_v37, %v2193_v46 }
 0x1e8   : > { %v2481_v57 = vsel %vm2473_vm5, %v2475_v38, %v2480_v47  ;;  %v2482_v58 = vrot.slane %v2454_v27, 5  ;;  %v2494_v60 = vadd.f32 %v2476_v45, %v2207_v50  ;;  %v2209_v61 = vadd.f32 %v2194_v56, %v1922_v7 }
 0x1e9   : > { %v2196_v62 = vsel %vm2186_vm4, %v2191_v42, %v2195_v53  ;;  %v2495_v63 = vadd.f32 %v2479_v51, %v2208_v55  ;;  %v2791_v48 = vrot.slane %v2786_v34, %v2790_v13 }
 0x1ea   : > { %v2210_v1 = vadd.f32 %v2196_v62, %v1923_v14  ;;  %v2483_v29 = vsel %vm2473_vm5, %v2478_v43, %v2482_v58  ;;  %v2496_v59 = vadd.f32 %v2481_v57, %v2209_v61  ;;  %v2171_v2 = vpop.f32.mrb[44].mxu0 }
 0x1eb   : > { %v2458_v4 = vpop.f32.mrb[44].mxu1  ;;  %v2197_v6 = vrot.slane %v2171_v2, 4  ;;  %v2173_v49 = vpop.f32.mrb[45].mxu0 }
 0x1ec   : > { %v2497_v0 = vadd.f32 %v2483_v29, %v2210_v1  ;;  %v2484_v54 = vrot.slane %v2458_v4, 5  ;;  %v2460_v10 = vpop.f32.mrb[45].mxu1  ;;  %v2199_v11 = vrot.slane %v2173_v49, 4  ;;  %v2175_v18 = vpop.f32.mrb[46].mxu0 }
 0x1ed   : > { %v2486_v52 = vrot.slane %v2460_v10, 5  ;;  %v2462_v17 = vpop.f32.mrb[46].mxu1  ;;  %v2198_v7 = vsel %vm2186_vm4, %v2193_v46, %v2197_v6  ;;  %v2176_v14 = vpop.f32.mrb[47].mxu0 }
 0x1ee   : > { %v2485_v20 = vsel %vm2473_vm5, %v2480_v47, %v2484_v54  ;;  %v2463_v21 = vpop.f32.mrb[47].mxu1  ;;  %v2211_v23 = vadd.f32 %v2198_v7, %v5072_v15  ;;  %v2200_v24 = vsel %vm2186_vm4, %v2195_v53, %v2199_v11  ;;  %v2794_v15 = vsub.s32 1, %v2789_v30 }
 0x1ef   : > { %v2487_v3 = vsel %vm2473_vm5, %v2482_v58, %v2486_v52  ;;  %v2212_v25 = vadd.f32 %v2200_v24, %v5074_v19 }
 0x1f0   : > { %v2498_v26 = vadd.f32 %v2485_v20, %v2211_v23  ;;  %v2795_v41 = vrot.slane %v2786_v34, %v2794_v15 }
 0x1f1   : > { %v2499_v8 = vadd.f32 %v2487_v3, %v2212_v25 }
 0x21a   : > { %v2727_v31 = vpop.f32.mrb[48].mxu0 }
 0x21b   : > { %v2735_v32 = vpop.f32.mrb[48].mxu1  ;;  %v2728_v33 = vpop.f32.mrb[49].mxu0 }
 0x21c   : > { %v2737_v9 = vpop.f32.mrb[49].mxu1  ;;  %v2729_v35 = vpop.f32.mrb[50].mxu0  ;;  %v2761_v37 = vrot.slane %v2735_v32, 6 }
 0x21d   : > { %v2739_v36 = vpop.f32.mrb[50].mxu1  ;;  %v2760_v38 = vrot.slane %v2729_v35, 6  ;;  %v2731_v19 = vpop.f32.mrb[51].mxu0  ;;  %v2764_v40 = vrot.slane %v2737_v9, 6 }
 0x21e   : > { %v2766_v39 = vrot.slane %v2739_v36, 6  ;;  %v2741_v12 = vpop.f32.mrb[51].mxu1  ;;  %v2763_v42 = vrot.slane %v2731_v19, 6 }
 0x21f   : > { %v2768_v43 = vrot.slane %v2741_v12, 6  ;;  %v2762_v16 = vsel %vm1356_vm2, %v2760_v38, %v2761_v37 }
 0x220   : > { %v2767_v44 = vsel %vm1356_vm2, %v2761_v37, %v2766_v39  ;;  %v2780_v45 = vadd.f32 %v2762_v16, %v2494_v60  ;;  %v2765_v22 = vsel %vm1356_vm2, %v2763_v42, %v2764_v40 }
 0x221   : > { %v2782_v46 = vadd.f32 %v2767_v44, %v2496_v59  ;;  %v2769_v47 = vsel %vm1356_vm2, %v2764_v40, %v2768_v43  ;;  %v2781_v27 = vadd.f32 %v2765_v22, %v2495_v63 }
 0x222   : > { %v2783_v50 = vadd.f32 %v2769_v47, %v2497_v0  ;;  %v2798_v28 = vadd.f32 %v2791_v48, %v2780_v45 }
 0x223   : > { %v2800_v51 = vadd.f32 %v2791_v48, %v2782_v46  ;;  %v2745_v53 = vpop.f32.mrb[52].mxu1  ;;  %v2799_v55 = vadd.f32 %v2795_v41, %v2781_v27 }
 0x224   : > { %v2801_v56 = vadd.f32 %v2795_v41, %v2783_v50  ;;  %v2770_v57 = vrot.slane %v2745_v53, 6  ;;  %v2747_v58 = vpop.f32.mrb[53].mxu1  ;;  %v2804_v61 = vmax.f32 %v2798_v28, 0.0 }
 0x225   : > { %v2806_v62 = vmax.f32 %v2800_v51, 0.0  ;;  %v2772_v1 = vrot.slane %v2747_v58, 6  ;;  %v2749_v29 = vpop.f32.mrb[54].mxu1  ;;  %v2805_v60 = vmax.f32 %v2799_v55, 0.0 }
 0x226   : > { %v2807_v59 = vmax.f32 %v2801_v56, 0.0  ;;  %v2771_v2 = vsel %vm1356_vm2, %v2766_v39, %v2770_v57  ;;  %v2750_v4 = vpop.f32.mrb[55].mxu1 }
 0x227   : > { %v2784_v63 = vadd.f32 %v2771_v2, %v2498_v26  ;;  %v2773_v0 = vsel %vm1356_vm2, %v2768_v43, %v2772_v1  ;;  %v3505_v6 = vpack.c.bf16 %v2805_v60, %v2804_v61 }
 0x228   : > { %v3506_v49 = vpack.c.bf16 %v2807_v59, %v2806_v62  ;;  %v2785_v54 = vadd.f32 %v2773_v0, %v2499_v8 }
 0x229   : > { %v2802_v10 = vadd.f32 %v2791_v48, %v2784_v63  ;;  %2830 = vst [vmem:[%s233_s22] sm:$0xff] %v3505_v6 }
 0x22a   : > { %2831 = vst [vmem:[%s233_s22 + $0x8] sm:$0xff] %v3506_v49  ;;  %v2803_v11 = vadd.f32 %v2795_v41, %v2785_v54 }
 0x22b   : > { %v2808_v52 = vmax.f32 %v2802_v10, 0.0 }
 0x22c   : > { %v2809_v17 = vmax.f32 %v2803_v11, 0.0 }
 0x22e   : > { %v3507_v18 = vpack.c.bf16 %v2809_v17, %v2808_v52 }
 0x230   : > { %2832 = vst [vmem:[%s233_s22 + $0x10] sm:$0xff] %v3507_v18 }
 0x231 PF: > { %s13_s14 = sadd.s32 1, %s4032_s14   ;;  %s5118_s12 = smov %s4028_s13 }
 0x232   : > { %p10_p5 = scmp.ge.s32.totalorder %s13_s14, 4   ;;  %s5119_s13 = smov %s5121_s15 }
 0x234   :  { %12 = sbr.rel (!%p10_p5) target bundleno = 2 (0x2), region = 76 }

</bundles_post_ra>
